<compile_context>
chip_gen: v7x
topology: tpu7x:2x2x1
jax: 0.10.0
libtpu: 0.0.40
codegen_flags: <defaults>
</compile_context>

<pallas_src>
import functools
import math

import jax
import jax.numpy as jnp
from jax import lax
from jax.experimental import pallas as pl
from jax.experimental.pallas import tpu as pltpu


def _resident_spec(shape):
    """Whole-array block whose index_map is constant -> stays VMEM-resident across grid."""
    nd = len(shape)
    return pl.BlockSpec(shape, lambda b, nd=nd: (0,) * nd)


def transformer_ae_kernel(
    x_ref,
    enc_in_w, enc_in_b, enc_out_w, enc_out_b,
    dec_in_w, dec_in_b, dec_out_w, dec_out_b,
    w_qkv, b_qkv, w_o, b_o,
    w_ff1, b_ff1, w_ff2, b_ff2,
    g1, bt1, g2, bt2,
    out_ref,
    *, num_layers, num_heads):
    """One grid step = one batch element (full sequence), full encoder+decoder chain."""
    T = x_ref.shape[1]
    H = enc_in_w.shape[1]
    hd = H // num_heads
    scale = 1.0 / math.sqrt(hd)
    eps = 1e-5

    def layer_norm(x, g, b):
        mu = jnp.mean(x, axis=-1, keepdims=True)
        xc = x - mu
        var = jnp.mean(xc * xc, axis=-1, keepdims=True)
        return xc * lax.rsqrt(var + eps) * g + b

    def encoder_layer(x, l):
        # x: [T, H]   (post-norm TransformerEncoderLayer, relu FFN, eval-mode dropout)
        qkv = jnp.dot(x, w_qkv[l], preferred_element_type=jnp.float32) + b_qkv[l]  # [T, 3H]
        q = qkv[:, 0:H]
        k = qkv[:, H:2 * H]
        v = qkv[:, 2 * H:3 * H]
        wo = w_o[l]                                                                 # [H, H]
        # out_proj(concat_h(o_h)) == sum_h o_h @ Wo[h*hd:(h+1)*hd, :]  -> no concat needed
        attn = jnp.zeros((T, H), jnp.float32) + b_o[l]
        for h in range(num_heads):
            sl = slice(h * hd, (h + 1) * hd)
            qh = q[:, sl]
            kh = k[:, sl]
            vh = v[:, sl]
            # scores = qh @ kh^T  (NT dot_general, no explicit transpose)
            s = lax.dot_general(qh, kh, (((1,), (1,)), ((), ())),
                                preferred_element_type=jnp.float32) * scale         # [T, T]
            s = s - jnp.max(s, axis=-1, keepdims=True)
            p = jnp.exp(s)
            p = p / jnp.sum(p, axis=-1, keepdims=True)
            oh = jnp.dot(p, vh, preferred_element_type=jnp.float32)                 # [T, hd]
            attn = attn + jnp.dot(oh, wo[sl, :], preferred_element_type=jnp.float32)
        x = layer_norm(x + attn, g1[l], bt1[l])
        ff = jnp.dot(x, w_ff1[l], preferred_element_type=jnp.float32) + b_ff1[l]
        ff = jnp.maximum(ff, 0.0)                                                   # relu
        ff = jnp.dot(ff, w_ff2[l], preferred_element_type=jnp.float32) + b_ff2[l]
        return layer_norm(x + ff, g2[l], bt2[l])

    x = x_ref[0].astype(jnp.float32)                                                # [T, Din]

    # ---- encode ----
    h = jnp.dot(x, enc_in_w[...], preferred_element_type=jnp.float32) + enc_in_b[...]
    for l in range(num_layers):
        h = encoder_layer(h, l)
    lat = jnp.tanh(jnp.dot(h, enc_out_w[...], preferred_element_type=jnp.float32)
                   + enc_out_b[...])

    # ---- decode ----
    h = jnp.dot(lat, dec_in_w[...], preferred_element_type=jnp.float32) + dec_in_b[...]
    for l in range(num_layers):
        h = encoder_layer(h, num_layers + l)
    y = jnp.dot(h, dec_out_w[...], preferred_element_type=jnp.float32) + dec_out_b[...]
    # final activation = Identity (activation='linear')
    out_ref[0] = y.astype(out_ref.dtype)


_PARAM_NAMES = (
    'enc_in_w', 'enc_in_b', 'enc_out_w', 'enc_out_b',
    'dec_in_w', 'dec_in_b', 'dec_out_w', 'dec_out_b',
    'w_qkv', 'b_qkv', 'w_o', 'b_o',
    'w_ff1', 'b_ff1', 'w_ff2', 'b_ff2',
    'g1', 'bt1', 'g2', 'bt2',
)


def init_params(key, input_dim, output_dim, hidden_dim, num_layers, num_heads):
    """Weights stored as (d_in, d_out) so the kernel computes h @ W + b
    (equivalent to PyTorch's x @ W.T + b).  Encoder and decoder transformer
    layers are stacked along a leading [2*num_layers] axis."""
    ff_dim = hidden_dim  # module sets dim_feedforward=hidden_dim
    L2 = 2 * num_layers
    keys = iter(jax.random.split(key, 64))

    def uni(shape, bound):
        return jax.random.uniform(next(keys), shape, jnp.float32, -bound, bound)

    def linear(d_in, d_out):
        b = 1.0 / math.sqrt(d_in)
        return uni((d_in, d_out), b), uni((1, d_out), b)

    def stacked(d_in, d_out):
        b = 1.0 / math.sqrt(d_in)
        return uni((L2, d_in, d_out), b), uni((L2, 1, d_out), b)

    p = {}
    p['enc_in_w'], p['enc_in_b'] = linear(input_dim, hidden_dim)
    p['enc_out_w'], p['enc_out_b'] = linear(hidden_dim, output_dim)
    p['dec_in_w'], p['dec_in_b'] = linear(output_dim, hidden_dim)
    p['dec_out_w'], p['dec_out_b'] = linear(hidden_dim, input_dim)
    p['w_qkv'], p['b_qkv'] = stacked(hidden_dim, 3 * hidden_dim)
    p['w_o'], p['b_o'] = stacked(hidden_dim, hidden_dim)
    p['w_ff1'], p['b_ff1'] = stacked(hidden_dim, ff_dim)
    p['w_ff2'], p['b_ff2'] = stacked(ff_dim, hidden_dim)
    p['g1'] = jnp.ones((L2, 1, hidden_dim), jnp.float32)
    p['bt1'] = jnp.zeros((L2, 1, hidden_dim), jnp.float32)
    p['g2'] = jnp.ones((L2, 1, hidden_dim), jnp.float32)
    p['bt2'] = jnp.zeros((L2, 1, hidden_dim), jnp.float32)
    return p


def transformer_autoencoder_forward(x, params, *, num_layers, num_heads):
    """x: [B, T, input_dim] float32 -> [B, T, input_dim] float32."""
    B, T, Din = x.shape
    flat = [params[n] for n in _PARAM_NAMES]

    H = params['enc_in_w'].shape[1]
    F = params['w_ff1'].shape[2]
    Dout = params['enc_out_w'].shape[1]
    L2 = params['w_qkv'].shape[0]

    in_specs = ([pl.BlockSpec((1, T, Din), lambda b: (b, 0, 0))]
                + [_resident_spec(p.shape) for p in flat])
    out_spec = pl.BlockSpec((1, T, Din), lambda b: (b, 0, 0))

    # Advisory cost estimate so XLA doesn't schedule the call as zero-cost.
    per_layer_flops = 2 * T * H * 3 * H + 4 * T * T * H + 2 * T * H * H + 4 * T * H * F
    flops = B * (2 * T * Din * H + 2 * T * H * Dout + 2 * T * Dout * H + 2 * T * H * Din
                 + L2 * per_layer_flops)
    transcendentals = B * (L2 * num_heads * T * T + T * Dout + L2 * 2 * T)
    param_bytes = sum(int(p.size) * p.dtype.itemsize for p in flat)
    bytes_accessed = 2 * B * T * Din * 4 + param_bytes

    kernel = functools.partial(transformer_ae_kernel,
                               num_layers=num_layers, num_heads=num_heads)
    out = pl.pallas_call(
        kernel,
        out_shape=jax.ShapeDtypeStruct((B, T, Din), jnp.float32),
        grid=(B,),
        in_specs=in_specs,
        out_specs=out_spec,
        compiler_params=pltpu.CompilerParams(
            dimension_semantics=("parallel",),        # batch rows independent -> megacore on v7x
            vmem_limit_bytes=48 * 1024 * 1024,        # safe on v7x (64 MiB) and v5e/v6e (128 MiB)
        ),
        cost_estimate=pl.CostEstimate(flops=int(flops),
                                      transcendentals=int(transcendentals),
                                      bytes_accessed=int(bytes_accessed)),
    )(x, *flat)
    return out


def transformer_ae_ref(x, params, *, num_layers, num_heads):
    """Pure-JAX reference of the same forward pass (for correctness check)."""
    H = params['enc_in_w'].shape[1]
    hd = H // num_heads
    scale = 1.0 / math.sqrt(hd)
    eps = 1e-5

    def ln(v, g, b):
        mu = v.mean(-1, keepdims=True)
        vc = v - mu
        var = (vc * vc).mean(-1, keepdims=True)
        return vc * lax.rsqrt(var + eps) * g + b

    def layer(v, l):
        qkv = v @ params['w_qkv'][l] + params['b_qkv'][l]
        q, k, w = qkv[..., :H], qkv[..., H:2 * H], qkv[..., 2 * H:]
        attn = jnp.zeros_like(v) + params['b_o'][l]
        for h in range(num_heads):
            sl = slice(h * hd, (h + 1) * hd)
            qh, kh, vh = q[..., sl], k[..., sl], w[..., sl]
            s = jnp.einsum('btd,bsd->bts', qh, kh) * scale
            s = s - s.max(-1, keepdims=True)
            p = jnp.exp(s)
            p = p / p.sum(-1, keepdims=True)
            oh = jnp.einsum('bts,bsd->btd', p, vh)
            attn = attn + oh @ params['w_o'][l][sl, :]
        v = ln(v + attn, params['g1'][l], params['bt1'][l])
        ff = jnp.maximum(v @ params['w_ff1'][l] + params['b_ff1'][l], 0.0)
        ff = ff @ params['w_ff2'][l] + params['b_ff2'][l]
        return ln(v + ff, params['g2'][l], params['bt2'][l])

    h = x @ params['enc_in_w'] + params['enc_in_b']
    for l in range(num_layers):
        h = layer(h, l)
    lat = jnp.tanh(h @ params['enc_out_w'] + params['enc_out_b'])
    h = lat @ params['dec_in_w'] + params['dec_in_b']
    for l in range(num_layers):
        h = layer(h, num_layers + l)
    return h @ params['dec_out_w'] + params['dec_out_b']


if __name__ == "__main__":
    # Small hyperparameters consistent with the module's constructor:
    #   TransformerAutoencoder(input_dim, output_dim, output_dim_2, target,
    #                          hidden_dim=..., num_layers=..., num_heads=4, activation='linear')
    input_dim = 16    # feature dim consumed / reproduced
    output_dim = 8    # latent dim
    hidden_dim = 128  # d_model (multiple of 128 lanes; module default is 256)
    num_layers = 2
    num_heads = 4
    B, T = 2, 8       # batch, sequence length (target != TARGET_TIMESERIES -> no permute)

    key = jax.random.PRNGKey(0)
    kx, kp = jax.random.split(key)
    x = jax.random.normal(kx, (B, T, input_dim), jnp.float32)
    params = init_params(kp, input_dim, output_dim, hidden_dim, num_layers, num_heads)

    y = transformer_autoencoder_forward(x, params, num_layers=num_layers, num_heads=num_heads)
    y = jax.block_until_ready(y)

    y_ref = transformer_ae_ref(x, params, num_layers=num_layers, num_heads=num_heads)
    assert y.shape == x.shape
    max_err = float(jnp.max(jnp.abs(y - y_ref)))
    assert max_err < 2e-3, f"mismatch vs reference: max abs err = {max_err}"

    print("KERNEL_OK")
</pallas_src>

<mosaic_0001>
module attributes {stable_mosaic.version = 11 : i64} {
  func.func @transformer_ae_kernel(%arg0: i32, %arg1: memref<1x8x16xf32, #tpu.memory_space<vmem>>, %arg2: memref<16x128xf32, #tpu.memory_space<vmem>>, %arg3: memref<1x128xf32, #tpu.memory_space<vmem>>, %arg4: memref<128x8xf32, #tpu.memory_space<vmem>>, %arg5: memref<1x8xf32, #tpu.memory_space<vmem>>, %arg6: memref<8x128xf32, #tpu.memory_space<vmem>>, %arg7: memref<1x128xf32, #tpu.memory_space<vmem>>, %arg8: memref<128x16xf32, #tpu.memory_space<vmem>>, %arg9: memref<1x16xf32, #tpu.memory_space<vmem>>, %arg10: memref<4x128x384xf32, #tpu.memory_space<vmem>>, %arg11: memref<4x1x384xf32, #tpu.memory_space<vmem>>, %arg12: memref<4x128x128xf32, #tpu.memory_space<vmem>>, %arg13: memref<4x1x128xf32, #tpu.memory_space<vmem>>, %arg14: memref<4x128x128xf32, #tpu.memory_space<vmem>>, %arg15: memref<4x1x128xf32, #tpu.memory_space<vmem>>, %arg16: memref<4x128x128xf32, #tpu.memory_space<vmem>>, %arg17: memref<4x1x128xf32, #tpu.memory_space<vmem>>, %arg18: memref<4x1x128xf32, #tpu.memory_space<vmem>>, %arg19: memref<4x1x128xf32, #tpu.memory_space<vmem>>, %arg20: memref<4x1x128xf32, #tpu.memory_space<vmem>>, %arg21: memref<4x1x128xf32, #tpu.memory_space<vmem>>, %arg22: memref<1x8x16xf32, #tpu.memory_space<vmem>>) attributes {dimension_semantics = [#tpu.dimension_semantics<parallel>], iteration_bounds = array<i64: 2>, scalar_prefetch = 0 : i64, scratch_operands = 0 : i64, tpu.core_type = #tpu.core_type<tc>, window_params = [{transform_indices = @transform_0, window_bounds = array<i64: 1, 8, 16>}, {pipeline_mode = #tpu.pipeline_mode<synchronous>, transform_indices = @transform_1, window_bounds = array<i64: 16, 128>}, {pipeline_mode = #tpu.pipeline_mode<synchronous>, transform_indices = @transform_2, window_bounds = array<i64: 1, 128>}, {pipeline_mode = #tpu.pipeline_mode<synchronous>, transform_indices = @transform_3, window_bounds = array<i64: 128, 8>}, {pipeline_mode = #tpu.pipeline_mode<synchronous>, transform_indices = @transform_4, window_bounds = array<i64: 1, 8>}, {pipeline_mode = #tpu.pipeline_mode<synchronous>, transform_indices = @transform_5, window_bounds = array<i64: 8, 128>}, {pipeline_mode = #tpu.pipeline_mode<synchronous>, transform_indices = @transform_6, window_bounds = array<i64: 1, 128>}, {pipeline_mode = #tpu.pipeline_mode<synchronous>, transform_indices = @transform_7, window_bounds = array<i64: 128, 16>}, {pipeline_mode = #tpu.pipeline_mode<synchronous>, transform_indices = @transform_8, window_bounds = array<i64: 1, 16>}, {pipeline_mode = #tpu.pipeline_mode<synchronous>, transform_indices = @transform_9, window_bounds = array<i64: 4, 128, 384>}, {pipeline_mode = #tpu.pipeline_mode<synchronous>, transform_indices = @transform_10, window_bounds = array<i64: 4, 1, 384>}, {pipeline_mode = #tpu.pipeline_mode<synchronous>, transform_indices = @transform_11, window_bounds = array<i64: 4, 128, 128>}, {pipeline_mode = #tpu.pipeline_mode<synchronous>, transform_indices = @transform_12, window_bounds = array<i64: 4, 1, 128>}, {pipeline_mode = #tpu.pipeline_mode<synchronous>, transform_indices = @transform_13, window_bounds = array<i64: 4, 128, 128>}, {pipeline_mode = #tpu.pipeline_mode<synchronous>, transform_indices = @transform_14, window_bounds = array<i64: 4, 1, 128>}, {pipeline_mode = #tpu.pipeline_mode<synchronous>, transform_indices = @transform_15, window_bounds = array<i64: 4, 128, 128>}, {pipeline_mode = #tpu.pipeline_mode<synchronous>, transform_indices = @transform_16, window_bounds = array<i64: 4, 1, 128>}, {pipeline_mode = #tpu.pipeline_mode<synchronous>, transform_indices = @transform_17, window_bounds = array<i64: 4, 1, 128>}, {pipeline_mode = #tpu.pipeline_mode<synchronous>, transform_indices = @transform_18, window_bounds = array<i64: 4, 1, 128>}, {pipeline_mode = #tpu.pipeline_mode<synchronous>, transform_indices = @transform_19, window_bounds = array<i64: 4, 1, 128>}, {pipeline_mode = #tpu.pipeline_mode<synchronous>, transform_indices = @transform_20, window_bounds = array<i64: 4, 1, 128>}, {transform_indices = @transform_21, window_bounds = array<i64: 1, 8, 16>}]} {
    %c0 = arith.constant 0 : index
    %c0_0 = arith.constant 0 : index
    %c0_1 = arith.constant 0 : index
    %0 = vector.load %arg1[%c0, %c0_0, %c0_1] : memref<1x8x16xf32, #tpu.memory_space<vmem>>, vector<1x8x16xf32>
    %1 = vector.shape_cast %0 : vector<1x8x16xf32> to vector<8x16xf32>
    %c0_2 = arith.constant 0 : index
    %c0_3 = arith.constant 0 : index
    %2 = vector.load %arg2[%c0_2, %c0_3] : memref<16x128xf32, #tpu.memory_space<vmem>>, vector<16x128xf32>
    %cst = arith.constant dense<0.000000e+00> : vector<8x128xf32>
    %3 = tpu.matmul %1, %2, %cst {dimension_numbers = #tpu.dot_dimension_numbers<[1], [0], [0], [1], [0, 0, 1, 1], [], []>} : vector<8x16xf32>, vector<16x128xf32>, vector<8x128xf32> -> vector<8x128xf32>
    %c0_4 = arith.constant 0 : index
    %c0_5 = arith.constant 0 : index
    %4 = vector.load %arg3[%c0_4, %c0_5] : memref<1x128xf32, #tpu.memory_space<vmem>>, vector<1x128xf32>
    %5 = vector.broadcast %4 : vector<1x128xf32> to vector<8x128xf32>
    %6 = arith.addf %3, %5 : vector<8x128xf32>
    %c0_6 = arith.constant 0 : index
    %c0_7 = arith.constant 0 : index
    %c0_8 = arith.constant 0 : index
    %7 = vector.load %arg10[%c0_6, %c0_7, %c0_8] : memref<4x128x384xf32, #tpu.memory_space<vmem>>, vector<1x128x384xf32>
    %8 = vector.shape_cast %7 : vector<1x128x384xf32> to vector<128x384xf32>
    %cst_9 = arith.constant dense<0.000000e+00> : vector<8x384xf32>
    %9 = tpu.matmul %6, %8, %cst_9 {dimension_numbers = #tpu.dot_dimension_numbers<[1], [0], [0], [1], [0, 0, 1, 1], [], []>} : vector<8x128xf32>, vector<128x384xf32>, vector<8x384xf32> -> vector<8x384xf32>
    %c0_10 = arith.constant 0 : index
    %c0_11 = arith.constant 0 : index
    %c0_12 = arith.constant 0 : index
    %10 = vector.load %arg11[%c0_10, %c0_11, %c0_12] : memref<4x1x384xf32, #tpu.memory_space<vmem>>, vector<1x1x384xf32>
    %11 = vector.shape_cast %10 : vector<1x1x384xf32> to vector<1x384xf32>
    %12 = vector.broadcast %11 : vector<1x384xf32> to vector<8x384xf32>
    %13 = arith.addf %9, %12 : vector<8x384xf32>
    %14 = vector.extract_strided_slice %13 {offsets = [0, 0], sizes = [8, 128], strides = [1, 1]} : vector<8x384xf32> to vector<8x128xf32>
    %15 = vector.extract_strided_slice %13 {offsets = [0, 128], sizes = [8, 128], strides = [1, 1]} : vector<8x384xf32> to vector<8x128xf32>
    %16 = vector.extract_strided_slice %13 {offsets = [0, 256], sizes = [8, 128], strides = [1, 1]} : vector<8x384xf32> to vector<8x128xf32>
    %c0_13 = arith.constant 0 : index
    %c0_14 = arith.constant 0 : index
    %c0_15 = arith.constant 0 : index
    %17 = vector.load %arg12[%c0_13, %c0_14, %c0_15] : memref<4x128x128xf32, #tpu.memory_space<vmem>>, vector<1x128x128xf32>
    %18 = vector.shape_cast %17 : vector<1x128x128xf32> to vector<128x128xf32>
    %cst_16 = arith.constant 0.000000e+00 : f32
    %19 = vector.broadcast %cst_16 : f32 to vector<8x128xf32>
    %c0_17 = arith.constant 0 : index
    %c0_18 = arith.constant 0 : index
    %c0_19 = arith.constant 0 : index
    %20 = vector.load %arg13[%c0_17, %c0_18, %c0_19] : memref<4x1x128xf32, #tpu.memory_space<vmem>>, vector<1x1x128xf32>
    %21 = vector.shape_cast %20 : vector<1x1x128xf32> to vector<1x128xf32>
    %22 = vector.broadcast %21 : vector<1x128xf32> to vector<8x128xf32>
    %23 = arith.addf %19, %22 : vector<8x128xf32>
    %24 = vector.extract_strided_slice %14 {offsets = [0, 0], sizes = [8, 32], strides = [1, 1]} : vector<8x128xf32> to vector<8x32xf32>
    %25 = vector.extract_strided_slice %15 {offsets = [0, 0], sizes = [8, 32], strides = [1, 1]} : vector<8x128xf32> to vector<8x32xf32>
    %26 = vector.extract_strided_slice %16 {offsets = [0, 0], sizes = [8, 32], strides = [1, 1]} : vector<8x128xf32> to vector<8x32xf32>
    %cst_20 = arith.constant dense<0.000000e+00> : vector<8x8xf32>
    %27 = tpu.matmul %24, %25, %cst_20 {dimension_numbers = #tpu.dot_dimension_numbers<[1], [1], [0], [0], [0, 0, 1, 0], [], []>} : vector<8x32xf32>, vector<8x32xf32>, vector<8x8xf32> -> vector<8x8xf32>
    %cst_21 = arith.constant 0.176776692 : f32
    %28 = vector.broadcast %cst_21 : f32 to vector<8x8xf32>
    %29 = arith.mulf %27, %28 : vector<8x8xf32>
    %cst_22 = arith.constant dense<0xFF800000> : vector<8xf32>
    %30 = vector.multi_reduction <maximumf>, %29, %cst_22 [1] : vector<8x8xf32> to vector<8xf32>
    %31 = vector.shape_cast %30 : vector<8xf32> to vector<8x1xf32>
    %32 = vector.broadcast %31 : vector<8x1xf32> to vector<8x8xf32>
    %33 = arith.subf %29, %32 : vector<8x8xf32>
    %34 = math.exp %33 : vector<8x8xf32>
    %cst_23 = arith.constant dense<0.000000e+00> : vector<8xf32>
    %35 = vector.multi_reduction <add>, %34, %cst_23 [1] : vector<8x8xf32> to vector<8xf32>
    %36 = vector.shape_cast %35 : vector<8xf32> to vector<8x1xf32>
    %37 = vector.broadcast %36 : vector<8x1xf32> to vector<8x8xf32>
    %38 = arith.divf %34, %37 : vector<8x8xf32>
    %cst_24 = arith.constant dense<0.000000e+00> : vector<8x32xf32>
    %39 = tpu.matmul %38, %26, %cst_24 {dimension_numbers = #tpu.dot_dimension_numbers<[1], [0], [0], [1], [0, 0, 1, 1], [], []>} : vector<8x8xf32>, vector<8x32xf32>, vector<8x32xf32> -> vector<8x32xf32>
    %40 = vector.extract_strided_slice %18 {offsets = [0, 0], sizes = [32, 128], strides = [1, 1]} : vector<128x128xf32> to vector<32x128xf32>
    %cst_25 = arith.constant dense<0.000000e+00> : vector<8x128xf32>
    %41 = tpu.matmul %39, %40, %cst_25 {dimension_numbers = #tpu.dot_dimension_numbers<[1], [0], [0], [1], [0, 0, 1, 1], [], []>} : vector<8x32xf32>, vector<32x128xf32>, vector<8x128xf32> -> vector<8x128xf32>
    %42 = arith.addf %23, %41 : vector<8x128xf32>
    %43 = vector.extract_strided_slice %14 {offsets = [0, 32], sizes = [8, 32], strides = [1, 1]} : vector<8x128xf32> to vector<8x32xf32>
    %44 = vector.extract_strided_slice %15 {offsets = [0, 32], sizes = [8, 32], strides = [1, 1]} : vector<8x128xf32> to vector<8x32xf32>
    %45 = vector.extract_strided_slice %16 {offsets = [0, 32], sizes = [8, 32], strides = [1, 1]} : vector<8x128xf32> to vector<8x32xf32>
    %cst_26 = arith.constant dense<0.000000e+00> : vector<8x8xf32>
    %46 = tpu.matmul %43, %44, %cst_26 {dimension_numbers = #tpu.dot_dimension_numbers<[1], [1], [0], [0], [0, 0, 1, 0], [], []>} : vector<8x32xf32>, vector<8x32xf32>, vector<8x8xf32> -> vector<8x8xf32>
    %cst_27 = arith.constant 0.176776692 : f32
    %47 = vector.broadcast %cst_27 : f32 to vector<8x8xf32>
    %48 = arith.mulf %46, %47 : vector<8x8xf32>
    %cst_28 = arith.constant dense<0xFF800000> : vector<8xf32>
    %49 = vector.multi_reduction <maximumf>, %48, %cst_28 [1] : vector<8x8xf32> to vector<8xf32>
    %50 = vector.shape_cast %49 : vector<8xf32> to vector<8x1xf32>
    %51 = vector.broadcast %50 : vector<8x1xf32> to vector<8x8xf32>
    %52 = arith.subf %48, %51 : vector<8x8xf32>
    %53 = math.exp %52 : vector<8x8xf32>
    %cst_29 = arith.constant dense<0.000000e+00> : vector<8xf32>
    %54 = vector.multi_reduction <add>, %53, %cst_29 [1] : vector<8x8xf32> to vector<8xf32>
    %55 = vector.shape_cast %54 : vector<8xf32> to vector<8x1xf32>
    %56 = vector.broadcast %55 : vector<8x1xf32> to vector<8x8xf32>
    %57 = arith.divf %53, %56 : vector<8x8xf32>
    %cst_30 = arith.constant dense<0.000000e+00> : vector<8x32xf32>
    %58 = tpu.matmul %57, %45, %cst_30 {dimension_numbers = #tpu.dot_dimension_numbers<[1], [0], [0], [1], [0, 0, 1, 1], [], []>} : vector<8x8xf32>, vector<8x32xf32>, vector<8x32xf32> -> vector<8x32xf32>
    %59 = vector.extract_strided_slice %18 {offsets = [32, 0], sizes = [32, 128], strides = [1, 1]} : vector<128x128xf32> to vector<32x128xf32>
    %cst_31 = arith.constant dense<0.000000e+00> : vector<8x128xf32>
    %60 = tpu.matmul %58, %59, %cst_31 {dimension_numbers = #tpu.dot_dimension_numbers<[1], [0], [0], [1], [0, 0, 1, 1], [], []>} : vector<8x32xf32>, vector<32x128xf32>, vector<8x128xf32> -> vector<8x128xf32>
    %61 = arith.addf %42, %60 : vector<8x128xf32>
    %62 = vector.extract_strided_slice %14 {offsets = [0, 64], sizes = [8, 32], strides = [1, 1]} : vector<8x128xf32> to vector<8x32xf32>
    %63 = vector.extract_strided_slice %15 {offsets = [0, 64], sizes = [8, 32], strides = [1, 1]} : vector<8x128xf32> to vector<8x32xf32>
    %64 = vector.extract_strided_slice %16 {offsets = [0, 64], sizes = [8, 32], strides = [1, 1]} : vector<8x128xf32> to vector<8x32xf32>
    %cst_32 = arith.constant dense<0.000000e+00> : vector<8x8xf32>
    %65 = tpu.matmul %62, %63, %cst_32 {dimension_numbers = #tpu.dot_dimension_numbers<[1], [1], [0], [0], [0, 0, 1, 0], [], []>} : vector<8x32xf32>, vector<8x32xf32>, vector<8x8xf32> -> vector<8x8xf32>
    %cst_33 = arith.constant 0.176776692 : f32
    %66 = vector.broadcast %cst_33 : f32 to vector<8x8xf32>
    %67 = arith.mulf %65, %66 : vector<8x8xf32>
    %cst_34 = arith.constant dense<0xFF800000> : vector<8xf32>
    %68 = vector.multi_reduction <maximumf>, %67, %cst_34 [1] : vector<8x8xf32> to vector<8xf32>
    %69 = vector.shape_cast %68 : vector<8xf32> to vector<8x1xf32>
    %70 = vector.broadcast %69 : vector<8x1xf32> to vector<8x8xf32>
    %71 = arith.subf %67, %70 : vector<8x8xf32>
    %72 = math.exp %71 : vector<8x8xf32>
    %cst_35 = arith.constant dense<0.000000e+00> : vector<8xf32>
    %73 = vector.multi_reduction <add>, %72, %cst_35 [1] : vector<8x8xf32> to vector<8xf32>
    %74 = vector.shape_cast %73 : vector<8xf32> to vector<8x1xf32>
    %75 = vector.broadcast %74 : vector<8x1xf32> to vector<8x8xf32>
    %76 = arith.divf %72, %75 : vector<8x8xf32>
    %cst_36 = arith.constant dense<0.000000e+00> : vector<8x32xf32>
    %77 = tpu.matmul %76, %64, %cst_36 {dimension_numbers = #tpu.dot_dimension_numbers<[1], [0], [0], [1], [0, 0, 1, 1], [], []>} : vector<8x8xf32>, vector<8x32xf32>, vector<8x32xf32> -> vector<8x32xf32>
    %78 = vector.extract_strided_slice %18 {offsets = [64, 0], sizes = [32, 128], strides = [1, 1]} : vector<128x128xf32> to vector<32x128xf32>
    %cst_37 = arith.constant dense<0.000000e+00> : vector<8x128xf32>
    %79 = tpu.matmul %77, %78, %cst_37 {dimension_numbers = #tpu.dot_dimension_numbers<[1], [0], [0], [1], [0, 0, 1, 1], [], []>} : vector<8x32xf32>, vector<32x128xf32>, vector<8x128xf32> -> vector<8x128xf32>
    %80 = arith.addf %61, %79 : vector<8x128xf32>
    %81 = vector.extract_strided_slice %14 {offsets = [0, 96], sizes = [8, 32], strides = [1, 1]} : vector<8x128xf32> to vector<8x32xf32>
    %82 = vector.extract_strided_slice %15 {offsets = [0, 96], sizes = [8, 32], strides = [1, 1]} : vector<8x128xf32> to vector<8x32xf32>
    %83 = vector.extract_strided_slice %16 {offsets = [0, 96], sizes = [8, 32], strides = [1, 1]} : vector<8x128xf32> to vector<8x32xf32>
    %cst_38 = arith.constant dense<0.000000e+00> : vector<8x8xf32>
    %84 = tpu.matmul %81, %82, %cst_38 {dimension_numbers = #tpu.dot_dimension_numbers<[1], [1], [0], [0], [0, 0, 1, 0], [], []>} : vector<8x32xf32>, vector<8x32xf32>, vector<8x8xf32> -> vector<8x8xf32>
    %cst_39 = arith.constant 0.176776692 : f32
    %85 = vector.broadcast %cst_39 : f32 to vector<8x8xf32>
    %86 = arith.mulf %84, %85 : vector<8x8xf32>
    %cst_40 = arith.constant dense<0xFF800000> : vector<8xf32>
    %87 = vector.multi_reduction <maximumf>, %86, %cst_40 [1] : vector<8x8xf32> to vector<8xf32>
    %88 = vector.shape_cast %87 : vector<8xf32> to vector<8x1xf32>
    %89 = vector.broadcast %88 : vector<8x1xf32> to vector<8x8xf32>
    %90 = arith.subf %86, %89 : vector<8x8xf32>
    %91 = math.exp %90 : vector<8x8xf32>
    %cst_41 = arith.constant dense<0.000000e+00> : vector<8xf32>
    %92 = vector.multi_reduction <add>, %91, %cst_41 [1] : vector<8x8xf32> to vector<8xf32>
    %93 = vector.shape_cast %92 : vector<8xf32> to vector<8x1xf32>
    %94 = vector.broadcast %93 : vector<8x1xf32> to vector<8x8xf32>
    %95 = arith.divf %91, %94 : vector<8x8xf32>
    %cst_42 = arith.constant dense<0.000000e+00> : vector<8x32xf32>
    %96 = tpu.matmul %95, %83, %cst_42 {dimension_numbers = #tpu.dot_dimension_numbers<[1], [0], [0], [1], [0, 0, 1, 1], [], []>} : vector<8x8xf32>, vector<8x32xf32>, vector<8x32xf32> -> vector<8x32xf32>
    %97 = vector.extract_strided_slice %18 {offsets = [96, 0], sizes = [32, 128], strides = [1, 1]} : vector<128x128xf32> to vector<32x128xf32>
    %cst_43 = arith.constant dense<0.000000e+00> : vector<8x128xf32>
    %98 = tpu.matmul %96, %97, %cst_43 {dimension_numbers = #tpu.dot_dimension_numbers<[1], [0], [0], [1], [0, 0, 1, 1], [], []>} : vector<8x32xf32>, vector<32x128xf32>, vector<8x128xf32> -> vector<8x128xf32>
    %99 = arith.addf %80, %98 : vector<8x128xf32>
    %100 = arith.addf %6, %99 : vector<8x128xf32>
    %c0_44 = arith.constant 0 : index
    %c0_45 = arith.constant 0 : index
    %c0_46 = arith.constant 0 : index
    %101 = vector.load %arg18[%c0_44, %c0_45, %c0_46] : memref<4x1x128xf32, #tpu.memory_space<vmem>>, vector<1x1x128xf32>
    %102 = vector.shape_cast %101 : vector<1x1x128xf32> to vector<1x128xf32>
    %c0_47 = arith.constant 0 : index
    %c0_48 = arith.constant 0 : index
    %c0_49 = arith.constant 0 : index
    %103 = vector.load %arg19[%c0_47, %c0_48, %c0_49] : memref<4x1x128xf32, #tpu.memory_space<vmem>>, vector<1x1x128xf32>
    %104 = vector.shape_cast %103 : vector<1x1x128xf32> to vector<1x128xf32>
    %cst_50 = arith.constant dense<0.000000e+00> : vector<8xf32>
    %105 = vector.multi_reduction <add>, %100, %cst_50 [1] : vector<8x128xf32> to vector<8xf32>
    %106 = vector.shape_cast %105 : vector<8xf32> to vector<8x1xf32>
    %cst_51 = arith.constant 1.280000e+02 : f32
    %107 = vector.broadcast %cst_51 : f32 to vector<8x1xf32>
    %108 = arith.divf %106, %107 : vector<8x1xf32>
    %109 = vector.broadcast %108 : vector<8x1xf32> to vector<8x128xf32>
    %110 = arith.subf %100, %109 : vector<8x128xf32>
    %111 = arith.mulf %110, %110 : vector<8x128xf32>
    %cst_52 = arith.constant dense<0.000000e+00> : vector<8xf32>
    %112 = vector.multi_reduction <add>, %111, %cst_52 [1] : vector<8x128xf32> to vector<8xf32>
    %113 = vector.shape_cast %112 : vector<8xf32> to vector<8x1xf32>
    %cst_53 = arith.constant 1.280000e+02 : f32
    %114 = vector.broadcast %cst_53 : f32 to vector<8x1xf32>
    %115 = arith.divf %113, %114 : vector<8x1xf32>
    %cst_54 = arith.constant 9.99999974E-6 : f32
    %116 = vector.broadcast %cst_54 : f32 to vector<8x1xf32>
    %117 = arith.addf %115, %116 : vector<8x1xf32>
    %118 = math.rsqrt %117 : vector<8x1xf32>
    %119 = vector.broadcast %118 : vector<8x1xf32> to vector<8x128xf32>
    %120 = arith.mulf %110, %119 : vector<8x128xf32>
    %121 = vector.broadcast %102 : vector<1x128xf32> to vector<8x128xf32>
    %122 = arith.mulf %120, %121 : vector<8x128xf32>
    %123 = vector.broadcast %104 : vector<1x128xf32> to vector<8x128xf32>
    %124 = arith.addf %122, %123 : vector<8x128xf32>
    %c0_55 = arith.constant 0 : index
    %c0_56 = arith.constant 0 : index
    %c0_57 = arith.constant 0 : index
    %125 = vector.load %arg14[%c0_55, %c0_56, %c0_57] : memref<4x128x128xf32, #tpu.memory_space<vmem>>, vector<1x128x128xf32>
    %126 = vector.shape_cast %125 : vector<1x128x128xf32> to vector<128x128xf32>
    %cst_58 = arith.constant dense<0.000000e+00> : vector<8x128xf32>
    %127 = tpu.matmul %124, %126, %cst_58 {dimension_numbers = #tpu.dot_dimension_numbers<[1], [0], [0], [1], [0, 0, 1, 1], [], []>} : vector<8x128xf32>, vector<128x128xf32>, vector<8x128xf32> -> vector<8x128xf32>
    %c0_59 = arith.constant 0 : index
    %c0_60 = arith.constant 0 : index
    %c0_61 = arith.constant 0 : index
    %128 = vector.load %arg15[%c0_59, %c0_60, %c0_61] : memref<4x1x128xf32, #tpu.memory_space<vmem>>, vector<1x1x128xf32>
    %129 = vector.shape_cast %128 : vector<1x1x128xf32> to vector<1x128xf32>
    %130 = vector.broadcast %129 : vector<1x128xf32> to vector<8x128xf32>
    %131 = arith.addf %127, %130 : vector<8x128xf32>
    %cst_62 = arith.constant 0.000000e+00 : f32
    %132 = vector.broadcast %cst_62 : f32 to vector<8x128xf32>
    %133 = arith.maximumf %131, %132 : vector<8x128xf32>
    %c0_63 = arith.constant 0 : index
    %c0_64 = arith.constant 0 : index
    %c0_65 = arith.constant 0 : index
    %134 = vector.load %arg16[%c0_63, %c0_64, %c0_65] : memref<4x128x128xf32, #tpu.memory_space<vmem>>, vector<1x128x128xf32>
    %135 = vector.shape_cast %134 : vector<1x128x128xf32> to vector<128x128xf32>
    %cst_66 = arith.constant dense<0.000000e+00> : vector<8x128xf32>
    %136 = tpu.matmul %133, %135, %cst_66 {dimension_numbers = #tpu.dot_dimension_numbers<[1], [0], [0], [1], [0, 0, 1, 1], [], []>} : vector<8x128xf32>, vector<128x128xf32>, vector<8x128xf32> -> vector<8x128xf32>
    %c0_67 = arith.constant 0 : index
    %c0_68 = arith.constant 0 : index
    %c0_69 = arith.constant 0 : index
    %137 = vector.load %arg17[%c0_67, %c0_68, %c0_69] : memref<4x1x128xf32, #tpu.memory_space<vmem>>, vector<1x1x128xf32>
    %138 = vector.shape_cast %137 : vector<1x1x128xf32> to vector<1x128xf32>
    %139 = vector.broadcast %138 : vector<1x128xf32> to vector<8x128xf32>
    %140 = arith.addf %136, %139 : vector<8x128xf32>
    %141 = arith.addf %124, %140 : vector<8x128xf32>
    %c0_70 = arith.constant 0 : index
    %c0_71 = arith.constant 0 : index
    %c0_72 = arith.constant 0 : index
    %142 = vector.load %arg20[%c0_70, %c0_71, %c0_72] : memref<4x1x128xf32, #tpu.memory_space<vmem>>, vector<1x1x128xf32>
    %143 = vector.shape_cast %142 : vector<1x1x128xf32> to vector<1x128xf32>
    %c0_73 = arith.constant 0 : index
    %c0_74 = arith.constant 0 : index
    %c0_75 = arith.constant 0 : index
    %144 = vector.load %arg21[%c0_73, %c0_74, %c0_75] : memref<4x1x128xf32, #tpu.memory_space<vmem>>, vector<1x1x128xf32>
    %145 = vector.shape_cast %144 : vector<1x1x128xf32> to vector<1x128xf32>
    %cst_76 = arith.constant dense<0.000000e+00> : vector<8xf32>
    %146 = vector.multi_reduction <add>, %141, %cst_76 [1] : vector<8x128xf32> to vector<8xf32>
    %147 = vector.shape_cast %146 : vector<8xf32> to vector<8x1xf32>
    %cst_77 = arith.constant 1.280000e+02 : f32
    %148 = vector.broadcast %cst_77 : f32 to vector<8x1xf32>
    %149 = arith.divf %147, %148 : vector<8x1xf32>
    %150 = vector.broadcast %149 : vector<8x1xf32> to vector<8x128xf32>
    %151 = arith.subf %141, %150 : vector<8x128xf32>
    %152 = arith.mulf %151, %151 : vector<8x128xf32>
    %cst_78 = arith.constant dense<0.000000e+00> : vector<8xf32>
    %153 = vector.multi_reduction <add>, %152, %cst_78 [1] : vector<8x128xf32> to vector<8xf32>
    %154 = vector.shape_cast %153 : vector<8xf32> to vector<8x1xf32>
    %cst_79 = arith.constant 1.280000e+02 : f32
    %155 = vector.broadcast %cst_79 : f32 to vector<8x1xf32>
    %156 = arith.divf %154, %155 : vector<8x1xf32>
    %cst_80 = arith.constant 9.99999974E-6 : f32
    %157 = vector.broadcast %cst_80 : f32 to vector<8x1xf32>
    %158 = arith.addf %156, %157 : vector<8x1xf32>
    %159 = math.rsqrt %158 : vector<8x1xf32>
    %160 = vector.broadcast %159 : vector<8x1xf32> to vector<8x128xf32>
    %161 = arith.mulf %151, %160 : vector<8x128xf32>
    %162 = vector.broadcast %143 : vector<1x128xf32> to vector<8x128xf32>
    %163 = arith.mulf %161, %162 : vector<8x128xf32>
    %164 = vector.broadcast %145 : vector<1x128xf32> to vector<8x128xf32>
    %165 = arith.addf %163, %164 : vector<8x128xf32>
    %c1 = arith.constant 1 : index
    %c0_81 = arith.constant 0 : index
    %c0_82 = arith.constant 0 : index
    %166 = vector.load %arg10[%c1, %c0_81, %c0_82] : memref<4x128x384xf32, #tpu.memory_space<vmem>>, vector<1x128x384xf32>
    %167 = vector.shape_cast %166 : vector<1x128x384xf32> to vector<128x384xf32>
    %cst_83 = arith.constant dense<0.000000e+00> : vector<8x384xf32>
    %168 = tpu.matmul %165, %167, %cst_83 {dimension_numbers = #tpu.dot_dimension_numbers<[1], [0], [0], [1], [0, 0, 1, 1], [], []>} : vector<8x128xf32>, vector<128x384xf32>, vector<8x384xf32> -> vector<8x384xf32>
    %c1_84 = arith.constant 1 : index
    %c0_85 = arith.constant 0 : index
    %c0_86 = arith.constant 0 : index
    %169 = vector.load %arg11[%c1_84, %c0_85, %c0_86] : memref<4x1x384xf32, #tpu.memory_space<vmem>>, vector<1x1x384xf32>
    %170 = vector.shape_cast %169 : vector<1x1x384xf32> to vector<1x384xf32>
    %171 = vector.broadcast %170 : vector<1x384xf32> to vector<8x384xf32>
    %172 = arith.addf %168, %171 : vector<8x384xf32>
    %173 = vector.extract_strided_slice %172 {offsets = [0, 0], sizes = [8, 128], strides = [1, 1]} : vector<8x384xf32> to vector<8x128xf32>
    %174 = vector.extract_strided_slice %172 {offsets = [0, 128], sizes = [8, 128], strides = [1, 1]} : vector<8x384xf32> to vector<8x128xf32>
    %175 = vector.extract_strided_slice %172 {offsets = [0, 256], sizes = [8, 128], strides = [1, 1]} : vector<8x384xf32> to vector<8x128xf32>
    %c1_87 = arith.constant 1 : index
    %c0_88 = arith.constant 0 : index
    %c0_89 = arith.constant 0 : index
    %176 = vector.load %arg12[%c1_87, %c0_88, %c0_89] : memref<4x128x128xf32, #tpu.memory_space<vmem>>, vector<1x128x128xf32>
    %177 = vector.shape_cast %176 : vector<1x128x128xf32> to vector<128x128xf32>
    %cst_90 = arith.constant 0.000000e+00 : f32
    %178 = vector.broadcast %cst_90 : f32 to vector<8x128xf32>
    %c1_91 = arith.constant 1 : index
    %c0_92 = arith.constant 0 : index
    %c0_93 = arith.constant 0 : index
    %179 = vector.load %arg13[%c1_91, %c0_92, %c0_93] : memref<4x1x128xf32, #tpu.memory_space<vmem>>, vector<1x1x128xf32>
    %180 = vector.shape_cast %179 : vector<1x1x128xf32> to vector<1x128xf32>
    %181 = vector.broadcast %180 : vector<1x128xf32> to vector<8x128xf32>
    %182 = arith.addf %178, %181 : vector<8x128xf32>
    %183 = vector.extract_strided_slice %173 {offsets = [0, 0], sizes = [8, 32], strides = [1, 1]} : vector<8x128xf32> to vector<8x32xf32>
    %184 = vector.extract_strided_slice %174 {offsets = [0, 0], sizes = [8, 32], strides = [1, 1]} : vector<8x128xf32> to vector<8x32xf32>
    %185 = vector.extract_strided_slice %175 {offsets = [0, 0], sizes = [8, 32], strides = [1, 1]} : vector<8x128xf32> to vector<8x32xf32>
    %cst_94 = arith.constant dense<0.000000e+00> : vector<8x8xf32>
    %186 = tpu.matmul %183, %184, %cst_94 {dimension_numbers = #tpu.dot_dimension_numbers<[1], [1], [0], [0], [0, 0, 1, 0], [], []>} : vector<8x32xf32>, vector<8x32xf32>, vector<8x8xf32> -> vector<8x8xf32>
    %cst_95 = arith.constant 0.176776692 : f32
    %187 = vector.broadcast %cst_95 : f32 to vector<8x8xf32>
    %188 = arith.mulf %186, %187 : vector<8x8xf32>
    %cst_96 = arith.constant dense<0xFF800000> : vector<8xf32>
    %189 = vector.multi_reduction <maximumf>, %188, %cst_96 [1] : vector<8x8xf32> to vector<8xf32>
    %190 = vector.shape_cast %189 : vector<8xf32> to vector<8x1xf32>
    %191 = vector.broadcast %190 : vector<8x1xf32> to vector<8x8xf32>
    %192 = arith.subf %188, %191 : vector<8x8xf32>
    %193 = math.exp %192 : vector<8x8xf32>
    %cst_97 = arith.constant dense<0.000000e+00> : vector<8xf32>
    %194 = vector.multi_reduction <add>, %193, %cst_97 [1] : vector<8x8xf32> to vector<8xf32>
    %195 = vector.shape_cast %194 : vector<8xf32> to vector<8x1xf32>
    %196 = vector.broadcast %195 : vector<8x1xf32> to vector<8x8xf32>
    %197 = arith.divf %193, %196 : vector<8x8xf32>
    %cst_98 = arith.constant dense<0.000000e+00> : vector<8x32xf32>
    %198 = tpu.matmul %197, %185, %cst_98 {dimension_numbers = #tpu.dot_dimension_numbers<[1], [0], [0], [1], [0, 0, 1, 1], [], []>} : vector<8x8xf32>, vector<8x32xf32>, vector<8x32xf32> -> vector<8x32xf32>
    %199 = vector.extract_strided_slice %177 {offsets = [0, 0], sizes = [32, 128], strides = [1, 1]} : vector<128x128xf32> to vector<32x128xf32>
    %cst_99 = arith.constant dense<0.000000e+00> : vector<8x128xf32>
    %200 = tpu.matmul %198, %199, %cst_99 {dimension_numbers = #tpu.dot_dimension_numbers<[1], [0], [0], [1], [0, 0, 1, 1], [], []>} : vector<8x32xf32>, vector<32x128xf32>, vector<8x128xf32> -> vector<8x128xf32>
    %201 = arith.addf %182, %200 : vector<8x128xf32>
    %202 = vector.extract_strided_slice %173 {offsets = [0, 32], sizes = [8, 32], strides = [1, 1]} : vector<8x128xf32> to vector<8x32xf32>
    %203 = vector.extract_strided_slice %174 {offsets = [0, 32], sizes = [8, 32], strides = [1, 1]} : vector<8x128xf32> to vector<8x32xf32>
    %204 = vector.extract_strided_slice %175 {offsets = [0, 32], sizes = [8, 32], strides = [1, 1]} : vector<8x128xf32> to vector<8x32xf32>
    %cst_100 = arith.constant dense<0.000000e+00> : vector<8x8xf32>
    %205 = tpu.matmul %202, %203, %cst_100 {dimension_numbers = #tpu.dot_dimension_numbers<[1], [1], [0], [0], [0, 0, 1, 0], [], []>} : vector<8x32xf32>, vector<8x32xf32>, vector<8x8xf32> -> vector<8x8xf32>
    %cst_101 = arith.constant 0.176776692 : f32
    %206 = vector.broadcast %cst_101 : f32 to vector<8x8xf32>
    %207 = arith.mulf %205, %206 : vector<8x8xf32>
    %cst_102 = arith.constant dense<0xFF800000> : vector<8xf32>
    %208 = vector.multi_reduction <maximumf>, %207, %cst_102 [1] : vector<8x8xf32> to vector<8xf32>
    %209 = vector.shape_cast %208 : vector<8xf32> to vector<8x1xf32>
    %210 = vector.broadcast %209 : vector<8x1xf32> to vector<8x8xf32>
    %211 = arith.subf %207, %210 : vector<8x8xf32>
    %212 = math.exp %211 : vector<8x8xf32>
    %cst_103 = arith.constant dense<0.000000e+00> : vector<8xf32>
    %213 = vector.multi_reduction <add>, %212, %cst_103 [1] : vector<8x8xf32> to vector<8xf32>
    %214 = vector.shape_cast %213 : vector<8xf32> to vector<8x1xf32>
    %215 = vector.broadcast %214 : vector<8x1xf32> to vector<8x8xf32>
    %216 = arith.divf %212, %215 : vector<8x8xf32>
    %cst_104 = arith.constant dense<0.000000e+00> : vector<8x32xf32>
    %217 = tpu.matmul %216, %204, %cst_104 {dimension_numbers = #tpu.dot_dimension_numbers<[1], [0], [0], [1], [0, 0, 1, 1], [], []>} : vector<8x8xf32>, vector<8x32xf32>, vector<8x32xf32> -> vector<8x32xf32>
    %218 = vector.extract_strided_slice %177 {offsets = [32, 0], sizes = [32, 128], strides = [1, 1]} : vector<128x128xf32> to vector<32x128xf32>
    %cst_105 = arith.constant dense<0.000000e+00> : vector<8x128xf32>
    %219 = tpu.matmul %217, %218, %cst_105 {dimension_numbers = #tpu.dot_dimension_numbers<[1], [0], [0], [1], [0, 0, 1, 1], [], []>} : vector<8x32xf32>, vector<32x128xf32>, vector<8x128xf32> -> vector<8x128xf32>
    %220 = arith.addf %201, %219 : vector<8x128xf32>
    %221 = vector.extract_strided_slice %173 {offsets = [0, 64], sizes = [8, 32], strides = [1, 1]} : vector<8x128xf32> to vector<8x32xf32>
    %222 = vector.extract_strided_slice %174 {offsets = [0, 64], sizes = [8, 32], strides = [1, 1]} : vector<8x128xf32> to vector<8x32xf32>
    %223 = vector.extract_strided_slice %175 {offsets = [0, 64], sizes = [8, 32], strides = [1, 1]} : vector<8x128xf32> to vector<8x32xf32>
    %cst_106 = arith.constant dense<0.000000e+00> : vector<8x8xf32>
    %224 = tpu.matmul %221, %222, %cst_106 {dimension_numbers = #tpu.dot_dimension_numbers<[1], [1], [0], [0], [0, 0, 1, 0], [], []>} : vector<8x32xf32>, vector<8x32xf32>, vector<8x8xf32> -> vector<8x8xf32>
    %cst_107 = arith.constant 0.176776692 : f32
    %225 = vector.broadcast %cst_107 : f32 to vector<8x8xf32>
    %226 = arith.mulf %224, %225 : vector<8x8xf32>
    %cst_108 = arith.constant dense<0xFF800000> : vector<8xf32>
    %227 = vector.multi_reduction <maximumf>, %226, %cst_108 [1] : vector<8x8xf32> to vector<8xf32>
    %228 = vector.shape_cast %227 : vector<8xf32> to vector<8x1xf32>
    %229 = vector.broadcast %228 : vector<8x1xf32> to vector<8x8xf32>
    %230 = arith.subf %226, %229 : vector<8x8xf32>
    %231 = math.exp %230 : vector<8x8xf32>
    %cst_109 = arith.constant dense<0.000000e+00> : vector<8xf32>
    %232 = vector.multi_reduction <add>, %231, %cst_109 [1] : vector<8x8xf32> to vector<8xf32>
    %233 = vector.shape_cast %232 : vector<8xf32> to vector<8x1xf32>
    %234 = vector.broadcast %233 : vector<8x1xf32> to vector<8x8xf32>
    %235 = arith.divf %231, %234 : vector<8x8xf32>
    %cst_110 = arith.constant dense<0.000000e+00> : vector<8x32xf32>
    %236 = tpu.matmul %235, %223, %cst_110 {dimension_numbers = #tpu.dot_dimension_numbers<[1], [0], [0], [1], [0, 0, 1, 1], [], []>} : vector<8x8xf32>, vector<8x32xf32>, vector<8x32xf32> -> vector<8x32xf32>
    %237 = vector.extract_strided_slice %177 {offsets = [64, 0], sizes = [32, 128], strides = [1, 1]} : vector<128x128xf32> to vector<32x128xf32>
    %cst_111 = arith.constant dense<0.000000e+00> : vector<8x128xf32>
    %238 = tpu.matmul %236, %237, %cst_111 {dimension_numbers = #tpu.dot_dimension_numbers<[1], [0], [0], [1], [0, 0, 1, 1], [], []>} : vector<8x32xf32>, vector<32x128xf32>, vector<8x128xf32> -> vector<8x128xf32>
    %239 = arith.addf %220, %238 : vector<8x128xf32>
    %240 = vector.extract_strided_slice %173 {offsets = [0, 96], sizes = [8, 32], strides = [1, 1]} : vector<8x128xf32> to vector<8x32xf32>
    %241 = vector.extract_strided_slice %174 {offsets = [0, 96], sizes = [8, 32], strides = [1, 1]} : vector<8x128xf32> to vector<8x32xf32>
    %242 = vector.extract_strided_slice %175 {offsets = [0, 96], sizes = [8, 32], strides = [1, 1]} : vector<8x128xf32> to vector<8x32xf32>
    %cst_112 = arith.constant dense<0.000000e+00> : vector<8x8xf32>
    %243 = tpu.matmul %240, %241, %cst_112 {dimension_numbers = #tpu.dot_dimension_numbers<[1], [1], [0], [0], [0, 0, 1, 0], [], []>} : vector<8x32xf32>, vector<8x32xf32>, vector<8x8xf32> -> vector<8x8xf32>
    %cst_113 = arith.constant 0.176776692 : f32
    %244 = vector.broadcast %cst_113 : f32 to vector<8x8xf32>
    %245 = arith.mulf %243, %244 : vector<8x8xf32>
    %cst_114 = arith.constant dense<0xFF800000> : vector<8xf32>
    %246 = vector.multi_reduction <maximumf>, %245, %cst_114 [1] : vector<8x8xf32> to vector<8xf32>
    %247 = vector.shape_cast %246 : vector<8xf32> to vector<8x1xf32>
    %248 = vector.broadcast %247 : vector<8x1xf32> to vector<8x8xf32>
    %249 = arith.subf %245, %248 : vector<8x8xf32>
    %250 = math.exp %249 : vector<8x8xf32>
    %cst_115 = arith.constant dense<0.000000e+00> : vector<8xf32>
    %251 = vector.multi_reduction <add>, %250, %cst_115 [1] : vector<8x8xf32> to vector<8xf32>
    %252 = vector.shape_cast %251 : vector<8xf32> to vector<8x1xf32>
    %253 = vector.broadcast %252 : vector<8x1xf32> to vector<8x8xf32>
    %254 = arith.divf %250, %253 : vector<8x8xf32>
    %cst_116 = arith.constant dense<0.000000e+00> : vector<8x32xf32>
    %255 = tpu.matmul %254, %242, %cst_116 {dimension_numbers = #tpu.dot_dimension_numbers<[1], [0], [0], [1], [0, 0, 1, 1], [], []>} : vector<8x8xf32>, vector<8x32xf32>, vector<8x32xf32> -> vector<8x32xf32>
    %256 = vector.extract_strided_slice %177 {offsets = [96, 0], sizes = [32, 128], strides = [1, 1]} : vector<128x128xf32> to vector<32x128xf32>
    %cst_117 = arith.constant dense<0.000000e+00> : vector<8x128xf32>
    %257 = tpu.matmul %255, %256, %cst_117 {dimension_numbers = #tpu.dot_dimension_numbers<[1], [0], [0], [1], [0, 0, 1, 1], [], []>} : vector<8x32xf32>, vector<32x128xf32>, vector<8x128xf32> -> vector<8x128xf32>
    %258 = arith.addf %239, %257 : vector<8x128xf32>
    %259 = arith.addf %165, %258 : vector<8x128xf32>
    %c1_118 = arith.constant 1 : index
    %c0_119 = arith.constant 0 : index
    %c0_120 = arith.constant 0 : index
    %260 = vector.load %arg18[%c1_118, %c0_119, %c0_120] : memref<4x1x128xf32, #tpu.memory_space<vmem>>, vector<1x1x128xf32>
    %261 = vector.shape_cast %260 : vector<1x1x128xf32> to vector<1x128xf32>
    %c1_121 = arith.constant 1 : index
    %c0_122 = arith.constant 0 : index
    %c0_123 = arith.constant 0 : index
    %262 = vector.load %arg19[%c1_121, %c0_122, %c0_123] : memref<4x1x128xf32, #tpu.memory_space<vmem>>, vector<1x1x128xf32>
    %263 = vector.shape_cast %262 : vector<1x1x128xf32> to vector<1x128xf32>
    %cst_124 = arith.constant dense<0.000000e+00> : vector<8xf32>
    %264 = vector.multi_reduction <add>, %259, %cst_124 [1] : vector<8x128xf32> to vector<8xf32>
    %265 = vector.shape_cast %264 : vector<8xf32> to vector<8x1xf32>
    %cst_125 = arith.constant 1.280000e+02 : f32
    %266 = vector.broadcast %cst_125 : f32 to vector<8x1xf32>
    %267 = arith.divf %265, %266 : vector<8x1xf32>
    %268 = vector.broadcast %267 : vector<8x1xf32> to vector<8x128xf32>
    %269 = arith.subf %259, %268 : vector<8x128xf32>
    %270 = arith.mulf %269, %269 : vector<8x128xf32>
    %cst_126 = arith.constant dense<0.000000e+00> : vector<8xf32>
    %271 = vector.multi_reduction <add>, %270, %cst_126 [1] : vector<8x128xf32> to vector<8xf32>
    %272 = vector.shape_cast %271 : vector<8xf32> to vector<8x1xf32>
    %cst_127 = arith.constant 1.280000e+02 : f32
    %273 = vector.broadcast %cst_127 : f32 to vector<8x1xf32>
    %274 = arith.divf %272, %273 : vector<8x1xf32>
    %cst_128 = arith.constant 9.99999974E-6 : f32
    %275 = vector.broadcast %cst_128 : f32 to vector<8x1xf32>
    %276 = arith.addf %274, %275 : vector<8x1xf32>
    %277 = math.rsqrt %276 : vector<8x1xf32>
    %278 = vector.broadcast %277 : vector<8x1xf32> to vector<8x128xf32>
    %279 = arith.mulf %269, %278 : vector<8x128xf32>
    %280 = vector.broadcast %261 : vector<1x128xf32> to vector<8x128xf32>
    %281 = arith.mulf %279, %280 : vector<8x128xf32>
    %282 = vector.broadcast %263 : vector<1x128xf32> to vector<8x128xf32>
    %283 = arith.addf %281, %282 : vector<8x128xf32>
    %c1_129 = arith.constant 1 : index
    %c0_130 = arith.constant 0 : index
    %c0_131 = arith.constant 0 : index
    %284 = vector.load %arg14[%c1_129, %c0_130, %c0_131] : memref<4x128x128xf32, #tpu.memory_space<vmem>>, vector<1x128x128xf32>
    %285 = vector.shape_cast %284 : vector<1x128x128xf32> to vector<128x128xf32>
    %cst_132 = arith.constant dense<0.000000e+00> : vector<8x128xf32>
    %286 = tpu.matmul %283, %285, %cst_132 {dimension_numbers = #tpu.dot_dimension_numbers<[1], [0], [0], [1], [0, 0, 1, 1], [], []>} : vector<8x128xf32>, vector<128x128xf32>, vector<8x128xf32> -> vector<8x128xf32>
    %c1_133 = arith.constant 1 : index
    %c0_134 = arith.constant 0 : index
    %c0_135 = arith.constant 0 : index
    %287 = vector.load %arg15[%c1_133, %c0_134, %c0_135] : memref<4x1x128xf32, #tpu.memory_space<vmem>>, vector<1x1x128xf32>
    %288 = vector.shape_cast %287 : vector<1x1x128xf32> to vector<1x128xf32>
    %289 = vector.broadcast %288 : vector<1x128xf32> to vector<8x128xf32>
    %290 = arith.addf %286, %289 : vector<8x128xf32>
    %cst_136 = arith.constant 0.000000e+00 : f32
    %291 = vector.broadcast %cst_136 : f32 to vector<8x128xf32>
    %292 = arith.maximumf %290, %291 : vector<8x128xf32>
    %c1_137 = arith.constant 1 : index
    %c0_138 = arith.constant 0 : index
    %c0_139 = arith.constant 0 : index
    %293 = vector.load %arg16[%c1_137, %c0_138, %c0_139] : memref<4x128x128xf32, #tpu.memory_space<vmem>>, vector<1x128x128xf32>
    %294 = vector.shape_cast %293 : vector<1x128x128xf32> to vector<128x128xf32>
    %cst_140 = arith.constant dense<0.000000e+00> : vector<8x128xf32>
    %295 = tpu.matmul %292, %294, %cst_140 {dimension_numbers = #tpu.dot_dimension_numbers<[1], [0], [0], [1], [0, 0, 1, 1], [], []>} : vector<8x128xf32>, vector<128x128xf32>, vector<8x128xf32> -> vector<8x128xf32>
    %c1_141 = arith.constant 1 : index
    %c0_142 = arith.constant 0 : index
    %c0_143 = arith.constant 0 : index
    %296 = vector.load %arg17[%c1_141, %c0_142, %c0_143] : memref<4x1x128xf32, #tpu.memory_space<vmem>>, vector<1x1x128xf32>
    %297 = vector.shape_cast %296 : vector<1x1x128xf32> to vector<1x128xf32>
    %298 = vector.broadcast %297 : vector<1x128xf32> to vector<8x128xf32>
    %299 = arith.addf %295, %298 : vector<8x128xf32>
    %300 = arith.addf %283, %299 : vector<8x128xf32>
    %c1_144 = arith.constant 1 : index
    %c0_145 = arith.constant 0 : index
    %c0_146 = arith.constant 0 : index
    %301 = vector.load %arg20[%c1_144, %c0_145, %c0_146] : memref<4x1x128xf32, #tpu.memory_space<vmem>>, vector<1x1x128xf32>
    %302 = vector.shape_cast %301 : vector<1x1x128xf32> to vector<1x128xf32>
    %c1_147 = arith.constant 1 : index
    %c0_148 = arith.constant 0 : index
    %c0_149 = arith.constant 0 : index
    %303 = vector.load %arg21[%c1_147, %c0_148, %c0_149] : memref<4x1x128xf32, #tpu.memory_space<vmem>>, vector<1x1x128xf32>
    %304 = vector.shape_cast %303 : vector<1x1x128xf32> to vector<1x128xf32>
    %cst_150 = arith.constant dense<0.000000e+00> : vector<8xf32>
    %305 = vector.multi_reduction <add>, %300, %cst_150 [1] : vector<8x128xf32> to vector<8xf32>
    %306 = vector.shape_cast %305 : vector<8xf32> to vector<8x1xf32>
    %cst_151 = arith.constant 1.280000e+02 : f32
    %307 = vector.broadcast %cst_151 : f32 to vector<8x1xf32>
    %308 = arith.divf %306, %307 : vector<8x1xf32>
    %309 = vector.broadcast %308 : vector<8x1xf32> to vector<8x128xf32>
    %310 = arith.subf %300, %309 : vector<8x128xf32>
    %311 = arith.mulf %310, %310 : vector<8x128xf32>
    %cst_152 = arith.constant dense<0.000000e+00> : vector<8xf32>
    %312 = vector.multi_reduction <add>, %311, %cst_152 [1] : vector<8x128xf32> to vector<8xf32>
    %313 = vector.shape_cast %312 : vector<8xf32> to vector<8x1xf32>
    %cst_153 = arith.constant 1.280000e+02 : f32
    %314 = vector.broadcast %cst_153 : f32 to vector<8x1xf32>
    %315 = arith.divf %313, %314 : vector<8x1xf32>
    %cst_154 = arith.constant 9.99999974E-6 : f32
    %316 = vector.broadcast %cst_154 : f32 to vector<8x1xf32>
    %317 = arith.addf %315, %316 : vector<8x1xf32>
    %318 = math.rsqrt %317 : vector<8x1xf32>
    %319 = vector.broadcast %318 : vector<8x1xf32> to vector<8x128xf32>
    %320 = arith.mulf %310, %319 : vector<8x128xf32>
    %321 = vector.broadcast %302 : vector<1x128xf32> to vector<8x128xf32>
    %322 = arith.mulf %320, %321 : vector<8x128xf32>
    %323 = vector.broadcast %304 : vector<1x128xf32> to vector<8x128xf32>
    %324 = arith.addf %322, %323 : vector<8x128xf32>
    %c0_155 = arith.constant 0 : index
    %c0_156 = arith.constant 0 : index
    %325 = vector.load %arg4[%c0_155, %c0_156] : memref<128x8xf32, #tpu.memory_space<vmem>>, vector<128x8xf32>
    %cst_157 = arith.constant dense<0.000000e+00> : vector<8x8xf32>
    %326 = tpu.matmul %324, %325, %cst_157 {dimension_numbers = #tpu.dot_dimension_numbers<[1], [0], [0], [1], [0, 0, 1, 1], [], []>} : vector<8x128xf32>, vector<128x8xf32>, vector<8x8xf32> -> vector<8x8xf32>
    %c0_158 = arith.constant 0 : index
    %c0_159 = arith.constant 0 : index
    %327 = vector.load %arg5[%c0_158, %c0_159] : memref<1x8xf32, #tpu.memory_space<vmem>>, vector<1x8xf32>
    %328 = vector.broadcast %327 : vector<1x8xf32> to vector<8x8xf32>
    %329 = arith.addf %326, %328 : vector<8x8xf32>
    %330 = math.tanh %329 : vector<8x8xf32>
    %c0_160 = arith.constant 0 : index
    %c0_161 = arith.constant 0 : index
    %331 = vector.load %arg6[%c0_160, %c0_161] : memref<8x128xf32, #tpu.memory_space<vmem>>, vector<8x128xf32>
    %cst_162 = arith.constant dense<0.000000e+00> : vector<8x128xf32>
    %332 = tpu.matmul %330, %331, %cst_162 {dimension_numbers = #tpu.dot_dimension_numbers<[1], [0], [0], [1], [0, 0, 1, 1], [], []>} : vector<8x8xf32>, vector<8x128xf32>, vector<8x128xf32> -> vector<8x128xf32>
    %c0_163 = arith.constant 0 : index
    %c0_164 = arith.constant 0 : index
    %333 = vector.load %arg7[%c0_163, %c0_164] : memref<1x128xf32, #tpu.memory_space<vmem>>, vector<1x128xf32>
    %334 = vector.broadcast %333 : vector<1x128xf32> to vector<8x128xf32>
    %335 = arith.addf %332, %334 : vector<8x128xf32>
    %c2 = arith.constant 2 : index
    %c0_165 = arith.constant 0 : index
    %c0_166 = arith.constant 0 : index
    %336 = vector.load %arg10[%c2, %c0_165, %c0_166] : memref<4x128x384xf32, #tpu.memory_space<vmem>>, vector<1x128x384xf32>
    %337 = vector.shape_cast %336 : vector<1x128x384xf32> to vector<128x384xf32>
    %cst_167 = arith.constant dense<0.000000e+00> : vector<8x384xf32>
    %338 = tpu.matmul %335, %337, %cst_167 {dimension_numbers = #tpu.dot_dimension_numbers<[1], [0], [0], [1], [0, 0, 1, 1], [], []>} : vector<8x128xf32>, vector<128x384xf32>, vector<8x384xf32> -> vector<8x384xf32>
    %c2_168 = arith.constant 2 : index
    %c0_169 = arith.constant 0 : index
    %c0_170 = arith.constant 0 : index
    %339 = vector.load %arg11[%c2_168, %c0_169, %c0_170] : memref<4x1x384xf32, #tpu.memory_space<vmem>>, vector<1x1x384xf32>
    %340 = vector.shape_cast %339 : vector<1x1x384xf32> to vector<1x384xf32>
    %341 = vector.broadcast %340 : vector<1x384xf32> to vector<8x384xf32>
    %342 = arith.addf %338, %341 : vector<8x384xf32>
    %343 = vector.extract_strided_slice %342 {offsets = [0, 0], sizes = [8, 128], strides = [1, 1]} : vector<8x384xf32> to vector<8x128xf32>
    %344 = vector.extract_strided_slice %342 {offsets = [0, 128], sizes = [8, 128], strides = [1, 1]} : vector<8x384xf32> to vector<8x128xf32>
    %345 = vector.extract_strided_slice %342 {offsets = [0, 256], sizes = [8, 128], strides = [1, 1]} : vector<8x384xf32> to vector<8x128xf32>
    %c2_171 = arith.constant 2 : index
    %c0_172 = arith.constant 0 : index
    %c0_173 = arith.constant 0 : index
    %346 = vector.load %arg12[%c2_171, %c0_172, %c0_173] : memref<4x128x128xf32, #tpu.memory_space<vmem>>, vector<1x128x128xf32>
    %347 = vector.shape_cast %346 : vector<1x128x128xf32> to vector<128x128xf32>
    %cst_174 = arith.constant 0.000000e+00 : f32
    %348 = vector.broadcast %cst_174 : f32 to vector<8x128xf32>
    %c2_175 = arith.constant 2 : index
    %c0_176 = arith.constant 0 : index
    %c0_177 = arith.constant 0 : index
    %349 = vector.load %arg13[%c2_175, %c0_176, %c0_177] : memref<4x1x128xf32, #tpu.memory_space<vmem>>, vector<1x1x128xf32>
    %350 = vector.shape_cast %349 : vector<1x1x128xf32> to vector<1x128xf32>
    %351 = vector.broadcast %350 : vector<1x128xf32> to vector<8x128xf32>
    %352 = arith.addf %348, %351 : vector<8x128xf32>
    %353 = vector.extract_strided_slice %343 {offsets = [0, 0], sizes = [8, 32], strides = [1, 1]} : vector<8x128xf32> to vector<8x32xf32>
    %354 = vector.extract_strided_slice %344 {offsets = [0, 0], sizes = [8, 32], strides = [1, 1]} : vector<8x128xf32> to vector<8x32xf32>
    %355 = vector.extract_strided_slice %345 {offsets = [0, 0], sizes = [8, 32], strides = [1, 1]} : vector<8x128xf32> to vector<8x32xf32>
    %cst_178 = arith.constant dense<0.000000e+00> : vector<8x8xf32>
    %356 = tpu.matmul %353, %354, %cst_178 {dimension_numbers = #tpu.dot_dimension_numbers<[1], [1], [0], [0], [0, 0, 1, 0], [], []>} : vector<8x32xf32>, vector<8x32xf32>, vector<8x8xf32> -> vector<8x8xf32>
    %cst_179 = arith.constant 0.176776692 : f32
    %357 = vector.broadcast %cst_179 : f32 to vector<8x8xf32>
    %358 = arith.mulf %356, %357 : vector<8x8xf32>
    %cst_180 = arith.constant dense<0xFF800000> : vector<8xf32>
    %359 = vector.multi_reduction <maximumf>, %358, %cst_180 [1] : vector<8x8xf32> to vector<8xf32>
    %360 = vector.shape_cast %359 : vector<8xf32> to vector<8x1xf32>
    %361 = vector.broadcast %360 : vector<8x1xf32> to vector<8x8xf32>
    %362 = arith.subf %358, %361 : vector<8x8xf32>
    %363 = math.exp %362 : vector<8x8xf32>
    %cst_181 = arith.constant dense<0.000000e+00> : vector<8xf32>
    %364 = vector.multi_reduction <add>, %363, %cst_181 [1] : vector<8x8xf32> to vector<8xf32>
    %365 = vector.shape_cast %364 : vector<8xf32> to vector<8x1xf32>
    %366 = vector.broadcast %365 : vector<8x1xf32> to vector<8x8xf32>
    %367 = arith.divf %363, %366 : vector<8x8xf32>
    %cst_182 = arith.constant dense<0.000000e+00> : vector<8x32xf32>
    %368 = tpu.matmul %367, %355, %cst_182 {dimension_numbers = #tpu.dot_dimension_numbers<[1], [0], [0], [1], [0, 0, 1, 1], [], []>} : vector<8x8xf32>, vector<8x32xf32>, vector<8x32xf32> -> vector<8x32xf32>
    %369 = vector.extract_strided_slice %347 {offsets = [0, 0], sizes = [32, 128], strides = [1, 1]} : vector<128x128xf32> to vector<32x128xf32>
    %cst_183 = arith.constant dense<0.000000e+00> : vector<8x128xf32>
    %370 = tpu.matmul %368, %369, %cst_183 {dimension_numbers = #tpu.dot_dimension_numbers<[1], [0], [0], [1], [0, 0, 1, 1], [], []>} : vector<8x32xf32>, vector<32x128xf32>, vector<8x128xf32> -> vector<8x128xf32>
    %371 = arith.addf %352, %370 : vector<8x128xf32>
    %372 = vector.extract_strided_slice %343 {offsets = [0, 32], sizes = [8, 32], strides = [1, 1]} : vector<8x128xf32> to vector<8x32xf32>
    %373 = vector.extract_strided_slice %344 {offsets = [0, 32], sizes = [8, 32], strides = [1, 1]} : vector<8x128xf32> to vector<8x32xf32>
    %374 = vector.extract_strided_slice %345 {offsets = [0, 32], sizes = [8, 32], strides = [1, 1]} : vector<8x128xf32> to vector<8x32xf32>
    %cst_184 = arith.constant dense<0.000000e+00> : vector<8x8xf32>
    %375 = tpu.matmul %372, %373, %cst_184 {dimension_numbers = #tpu.dot_dimension_numbers<[1], [1], [0], [0], [0, 0, 1, 0], [], []>} : vector<8x32xf32>, vector<8x32xf32>, vector<8x8xf32> -> vector<8x8xf32>
    %cst_185 = arith.constant 0.176776692 : f32
    %376 = vector.broadcast %cst_185 : f32 to vector<8x8xf32>
    %377 = arith.mulf %375, %376 : vector<8x8xf32>
    %cst_186 = arith.constant dense<0xFF800000> : vector<8xf32>
    %378 = vector.multi_reduction <maximumf>, %377, %cst_186 [1] : vector<8x8xf32> to vector<8xf32>
    %379 = vector.shape_cast %378 : vector<8xf32> to vector<8x1xf32>
    %380 = vector.broadcast %379 : vector<8x1xf32> to vector<8x8xf32>
    %381 = arith.subf %377, %380 : vector<8x8xf32>
    %382 = math.exp %381 : vector<8x8xf32>
    %cst_187 = arith.constant dense<0.000000e+00> : vector<8xf32>
    %383 = vector.multi_reduction <add>, %382, %cst_187 [1] : vector<8x8xf32> to vector<8xf32>
    %384 = vector.shape_cast %383 : vector<8xf32> to vector<8x1xf32>
    %385 = vector.broadcast %384 : vector<8x1xf32> to vector<8x8xf32>
    %386 = arith.divf %382, %385 : vector<8x8xf32>
    %cst_188 = arith.constant dense<0.000000e+00> : vector<8x32xf32>
    %387 = tpu.matmul %386, %374, %cst_188 {dimension_numbers = #tpu.dot_dimension_numbers<[1], [0], [0], [1], [0, 0, 1, 1], [], []>} : vector<8x8xf32>, vector<8x32xf32>, vector<8x32xf32> -> vector<8x32xf32>
    %388 = vector.extract_strided_slice %347 {offsets = [32, 0], sizes = [32, 128], strides = [1, 1]} : vector<128x128xf32> to vector<32x128xf32>
    %cst_189 = arith.constant dense<0.000000e+00> : vector<8x128xf32>
    %389 = tpu.matmul %387, %388, %cst_189 {dimension_numbers = #tpu.dot_dimension_numbers<[1], [0], [0], [1], [0, 0, 1, 1], [], []>} : vector<8x32xf32>, vector<32x128xf32>, vector<8x128xf32> -> vector<8x128xf32>
    %390 = arith.addf %371, %389 : vector<8x128xf32>
    %391 = vector.extract_strided_slice %343 {offsets = [0, 64], sizes = [8, 32], strides = [1, 1]} : vector<8x128xf32> to vector<8x32xf32>
    %392 = vector.extract_strided_slice %344 {offsets = [0, 64], sizes = [8, 32], strides = [1, 1]} : vector<8x128xf32> to vector<8x32xf32>
    %393 = vector.extract_strided_slice %345 {offsets = [0, 64], sizes = [8, 32], strides = [1, 1]} : vector<8x128xf32> to vector<8x32xf32>
    %cst_190 = arith.constant dense<0.000000e+00> : vector<8x8xf32>
    %394 = tpu.matmul %391, %392, %cst_190 {dimension_numbers = #tpu.dot_dimension_numbers<[1], [1], [0], [0], [0, 0, 1, 0], [], []>} : vector<8x32xf32>, vector<8x32xf32>, vector<8x8xf32> -> vector<8x8xf32>
    %cst_191 = arith.constant 0.176776692 : f32
    %395 = vector.broadcast %cst_191 : f32 to vector<8x8xf32>
    %396 = arith.mulf %394, %395 : vector<8x8xf32>
    %cst_192 = arith.constant dense<0xFF800000> : vector<8xf32>
    %397 = vector.multi_reduction <maximumf>, %396, %cst_192 [1] : vector<8x8xf32> to vector<8xf32>
    %398 = vector.shape_cast %397 : vector<8xf32> to vector<8x1xf32>
    %399 = vector.broadcast %398 : vector<8x1xf32> to vector<8x8xf32>
    %400 = arith.subf %396, %399 : vector<8x8xf32>
    %401 = math.exp %400 : vector<8x8xf32>
    %cst_193 = arith.constant dense<0.000000e+00> : vector<8xf32>
    %402 = vector.multi_reduction <add>, %401, %cst_193 [1] : vector<8x8xf32> to vector<8xf32>
    %403 = vector.shape_cast %402 : vector<8xf32> to vector<8x1xf32>
    %404 = vector.broadcast %403 : vector<8x1xf32> to vector<8x8xf32>
    %405 = arith.divf %401, %404 : vector<8x8xf32>
    %cst_194 = arith.constant dense<0.000000e+00> : vector<8x32xf32>
    %406 = tpu.matmul %405, %393, %cst_194 {dimension_numbers = #tpu.dot_dimension_numbers<[1], [0], [0], [1], [0, 0, 1, 1], [], []>} : vector<8x8xf32>, vector<8x32xf32>, vector<8x32xf32> -> vector<8x32xf32>
    %407 = vector.extract_strided_slice %347 {offsets = [64, 0], sizes = [32, 128], strides = [1, 1]} : vector<128x128xf32> to vector<32x128xf32>
    %cst_195 = arith.constant dense<0.000000e+00> : vector<8x128xf32>
    %408 = tpu.matmul %406, %407, %cst_195 {dimension_numbers = #tpu.dot_dimension_numbers<[1], [0], [0], [1], [0, 0, 1, 1], [], []>} : vector<8x32xf32>, vector<32x128xf32>, vector<8x128xf32> -> vector<8x128xf32>
    %409 = arith.addf %390, %408 : vector<8x128xf32>
    %410 = vector.extract_strided_slice %343 {offsets = [0, 96], sizes = [8, 32], strides = [1, 1]} : vector<8x128xf32> to vector<8x32xf32>
    %411 = vector.extract_strided_slice %344 {offsets = [0, 96], sizes = [8, 32], strides = [1, 1]} : vector<8x128xf32> to vector<8x32xf32>
    %412 = vector.extract_strided_slice %345 {offsets = [0, 96], sizes = [8, 32], strides = [1, 1]} : vector<8x128xf32> to vector<8x32xf32>
    %cst_196 = arith.constant dense<0.000000e+00> : vector<8x8xf32>
    %413 = tpu.matmul %410, %411, %cst_196 {dimension_numbers = #tpu.dot_dimension_numbers<[1], [1], [0], [0], [0, 0, 1, 0], [], []>} : vector<8x32xf32>, vector<8x32xf32>, vector<8x8xf32> -> vector<8x8xf32>
    %cst_197 = arith.constant 0.176776692 : f32
    %414 = vector.broadcast %cst_197 : f32 to vector<8x8xf32>
    %415 = arith.mulf %413, %414 : vector<8x8xf32>
    %cst_198 = arith.constant dense<0xFF800000> : vector<8xf32>
    %416 = vector.multi_reduction <maximumf>, %415, %cst_198 [1] : vector<8x8xf32> to vector<8xf32>
    %417 = vector.shape_cast %416 : vector<8xf32> to vector<8x1xf32>
    %418 = vector.broadcast %417 : vector<8x1xf32> to vector<8x8xf32>
    %419 = arith.subf %415, %418 : vector<8x8xf32>
    %420 = math.exp %419 : vector<8x8xf32>
    %cst_199 = arith.constant dense<0.000000e+00> : vector<8xf32>
    %421 = vector.multi_reduction <add>, %420, %cst_199 [1] : vector<8x8xf32> to vector<8xf32>
    %422 = vector.shape_cast %421 : vector<8xf32> to vector<8x1xf32>
    %423 = vector.broadcast %422 : vector<8x1xf32> to vector<8x8xf32>
    %424 = arith.divf %420, %423 : vector<8x8xf32>
    %cst_200 = arith.constant dense<0.000000e+00> : vector<8x32xf32>
    %425 = tpu.matmul %424, %412, %cst_200 {dimension_numbers = #tpu.dot_dimension_numbers<[1], [0], [0], [1], [0, 0, 1, 1], [], []>} : vector<8x8xf32>, vector<8x32xf32>, vector<8x32xf32> -> vector<8x32xf32>
    %426 = vector.extract_strided_slice %347 {offsets = [96, 0], sizes = [32, 128], strides = [1, 1]} : vector<128x128xf32> to vector<32x128xf32>
    %cst_201 = arith.constant dense<0.000000e+00> : vector<8x128xf32>
    %427 = tpu.matmul %425, %426, %cst_201 {dimension_numbers = #tpu.dot_dimension_numbers<[1], [0], [0], [1], [0, 0, 1, 1], [], []>} : vector<8x32xf32>, vector<32x128xf32>, vector<8x128xf32> -> vector<8x128xf32>
    %428 = arith.addf %409, %427 : vector<8x128xf32>
    %429 = arith.addf %335, %428 : vector<8x128xf32>
    %c2_202 = arith.constant 2 : index
    %c0_203 = arith.constant 0 : index
    %c0_204 = arith.constant 0 : index
    %430 = vector.load %arg18[%c2_202, %c0_203, %c0_204] : memref<4x1x128xf32, #tpu.memory_space<vmem>>, vector<1x1x128xf32>
    %431 = vector.shape_cast %430 : vector<1x1x128xf32> to vector<1x128xf32>
    %c2_205 = arith.constant 2 : index
    %c0_206 = arith.constant 0 : index
    %c0_207 = arith.constant 0 : index
    %432 = vector.load %arg19[%c2_205, %c0_206, %c0_207] : memref<4x1x128xf32, #tpu.memory_space<vmem>>, vector<1x1x128xf32>
    %433 = vector.shape_cast %432 : vector<1x1x128xf32> to vector<1x128xf32>
    %cst_208 = arith.constant dense<0.000000e+00> : vector<8xf32>
    %434 = vector.multi_reduction <add>, %429, %cst_208 [1] : vector<8x128xf32> to vector<8xf32>
    %435 = vector.shape_cast %434 : vector<8xf32> to vector<8x1xf32>
    %cst_209 = arith.constant 1.280000e+02 : f32
    %436 = vector.broadcast %cst_209 : f32 to vector<8x1xf32>
    %437 = arith.divf %435, %436 : vector<8x1xf32>
    %438 = vector.broadcast %437 : vector<8x1xf32> to vector<8x128xf32>
    %439 = arith.subf %429, %438 : vector<8x128xf32>
    %440 = arith.mulf %439, %439 : vector<8x128xf32>
    %cst_210 = arith.constant dense<0.000000e+00> : vector<8xf32>
    %441 = vector.multi_reduction <add>, %440, %cst_210 [1] : vector<8x128xf32> to vector<8xf32>
    %442 = vector.shape_cast %441 : vector<8xf32> to vector<8x1xf32>
    %cst_211 = arith.constant 1.280000e+02 : f32
    %443 = vector.broadcast %cst_211 : f32 to vector<8x1xf32>
    %444 = arith.divf %442, %443 : vector<8x1xf32>
    %cst_212 = arith.constant 9.99999974E-6 : f32
    %445 = vector.broadcast %cst_212 : f32 to vector<8x1xf32>
    %446 = arith.addf %444, %445 : vector<8x1xf32>
    %447 = math.rsqrt %446 : vector<8x1xf32>
    %448 = vector.broadcast %447 : vector<8x1xf32> to vector<8x128xf32>
    %449 = arith.mulf %439, %448 : vector<8x128xf32>
    %450 = vector.broadcast %431 : vector<1x128xf32> to vector<8x128xf32>
    %451 = arith.mulf %449, %450 : vector<8x128xf32>
    %452 = vector.broadcast %433 : vector<1x128xf32> to vector<8x128xf32>
    %453 = arith.addf %451, %452 : vector<8x128xf32>
    %c2_213 = arith.constant 2 : index
    %c0_214 = arith.constant 0 : index
    %c0_215 = arith.constant 0 : index
    %454 = vector.load %arg14[%c2_213, %c0_214, %c0_215] : memref<4x128x128xf32, #tpu.memory_space<vmem>>, vector<1x128x128xf32>
    %455 = vector.shape_cast %454 : vector<1x128x128xf32> to vector<128x128xf32>
    %cst_216 = arith.constant dense<0.000000e+00> : vector<8x128xf32>
    %456 = tpu.matmul %453, %455, %cst_216 {dimension_numbers = #tpu.dot_dimension_numbers<[1], [0], [0], [1], [0, 0, 1, 1], [], []>} : vector<8x128xf32>, vector<128x128xf32>, vector<8x128xf32> -> vector<8x128xf32>
    %c2_217 = arith.constant 2 : index
    %c0_218 = arith.constant 0 : index
    %c0_219 = arith.constant 0 : index
    %457 = vector.load %arg15[%c2_217, %c0_218, %c0_219] : memref<4x1x128xf32, #tpu.memory_space<vmem>>, vector<1x1x128xf32>
    %458 = vector.shape_cast %457 : vector<1x1x128xf32> to vector<1x128xf32>
    %459 = vector.broadcast %458 : vector<1x128xf32> to vector<8x128xf32>
    %460 = arith.addf %456, %459 : vector<8x128xf32>
    %cst_220 = arith.constant 0.000000e+00 : f32
    %461 = vector.broadcast %cst_220 : f32 to vector<8x128xf32>
    %462 = arith.maximumf %460, %461 : vector<8x128xf32>
    %c2_221 = arith.constant 2 : index
    %c0_222 = arith.constant 0 : index
    %c0_223 = arith.constant 0 : index
    %463 = vector.load %arg16[%c2_221, %c0_222, %c0_223] : memref<4x128x128xf32, #tpu.memory_space<vmem>>, vector<1x128x128xf32>
    %464 = vector.shape_cast %463 : vector<1x128x128xf32> to vector<128x128xf32>
    %cst_224 = arith.constant dense<0.000000e+00> : vector<8x128xf32>
    %465 = tpu.matmul %462, %464, %cst_224 {dimension_numbers = #tpu.dot_dimension_numbers<[1], [0], [0], [1], [0, 0, 1, 1], [], []>} : vector<8x128xf32>, vector<128x128xf32>, vector<8x128xf32> -> vector<8x128xf32>
    %c2_225 = arith.constant 2 : index
    %c0_226 = arith.constant 0 : index
    %c0_227 = arith.constant 0 : index
    %466 = vector.load %arg17[%c2_225, %c0_226, %c0_227] : memref<4x1x128xf32, #tpu.memory_space<vmem>>, vector<1x1x128xf32>
    %467 = vector.shape_cast %466 : vector<1x1x128xf32> to vector<1x128xf32>
    %468 = vector.broadcast %467 : vector<1x128xf32> to vector<8x128xf32>
    %469 = arith.addf %465, %468 : vector<8x128xf32>
    %470 = arith.addf %453, %469 : vector<8x128xf32>
    %c2_228 = arith.constant 2 : index
    %c0_229 = arith.constant 0 : index
    %c0_230 = arith.constant 0 : index
    %471 = vector.load %arg20[%c2_228, %c0_229, %c0_230] : memref<4x1x128xf32, #tpu.memory_space<vmem>>, vector<1x1x128xf32>
    %472 = vector.shape_cast %471 : vector<1x1x128xf32> to vector<1x128xf32>
    %c2_231 = arith.constant 2 : index
    %c0_232 = arith.constant 0 : index
    %c0_233 = arith.constant 0 : index
    %473 = vector.load %arg21[%c2_231, %c0_232, %c0_233] : memref<4x1x128xf32, #tpu.memory_space<vmem>>, vector<1x1x128xf32>
    %474 = vector.shape_cast %473 : vector<1x1x128xf32> to vector<1x128xf32>
    %cst_234 = arith.constant dense<0.000000e+00> : vector<8xf32>
    %475 = vector.multi_reduction <add>, %470, %cst_234 [1] : vector<8x128xf32> to vector<8xf32>
    %476 = vector.shape_cast %475 : vector<8xf32> to vector<8x1xf32>
    %cst_235 = arith.constant 1.280000e+02 : f32
    %477 = vector.broadcast %cst_235 : f32 to vector<8x1xf32>
    %478 = arith.divf %476, %477 : vector<8x1xf32>
    %479 = vector.broadcast %478 : vector<8x1xf32> to vector<8x128xf32>
    %480 = arith.subf %470, %479 : vector<8x128xf32>
    %481 = arith.mulf %480, %480 : vector<8x128xf32>
    %cst_236 = arith.constant dense<0.000000e+00> : vector<8xf32>
    %482 = vector.multi_reduction <add>, %481, %cst_236 [1] : vector<8x128xf32> to vector<8xf32>
    %483 = vector.shape_cast %482 : vector<8xf32> to vector<8x1xf32>
    %cst_237 = arith.constant 1.280000e+02 : f32
    %484 = vector.broadcast %cst_237 : f32 to vector<8x1xf32>
    %485 = arith.divf %483, %484 : vector<8x1xf32>
    %cst_238 = arith.constant 9.99999974E-6 : f32
    %486 = vector.broadcast %cst_238 : f32 to vector<8x1xf32>
    %487 = arith.addf %485, %486 : vector<8x1xf32>
    %488 = math.rsqrt %487 : vector<8x1xf32>
    %489 = vector.broadcast %488 : vector<8x1xf32> to vector<8x128xf32>
    %490 = arith.mulf %480, %489 : vector<8x128xf32>
    %491 = vector.broadcast %472 : vector<1x128xf32> to vector<8x128xf32>
    %492 = arith.mulf %490, %491 : vector<8x128xf32>
    %493 = vector.broadcast %474 : vector<1x128xf32> to vector<8x128xf32>
    %494 = arith.addf %492, %493 : vector<8x128xf32>
    %c3 = arith.constant 3 : index
    %c0_239 = arith.constant 0 : index
    %c0_240 = arith.constant 0 : index
    %495 = vector.load %arg10[%c3, %c0_239, %c0_240] : memref<4x128x384xf32, #tpu.memory_space<vmem>>, vector<1x128x384xf32>
    %496 = vector.shape_cast %495 : vector<1x128x384xf32> to vector<128x384xf32>
    %cst_241 = arith.constant dense<0.000000e+00> : vector<8x384xf32>
    %497 = tpu.matmul %494, %496, %cst_241 {dimension_numbers = #tpu.dot_dimension_numbers<[1], [0], [0], [1], [0, 0, 1, 1], [], []>} : vector<8x128xf32>, vector<128x384xf32>, vector<8x384xf32> -> vector<8x384xf32>
    %c3_242 = arith.constant 3 : index
    %c0_243 = arith.constant 0 : index
    %c0_244 = arith.constant 0 : index
    %498 = vector.load %arg11[%c3_242, %c0_243, %c0_244] : memref<4x1x384xf32, #tpu.memory_space<vmem>>, vector<1x1x384xf32>
    %499 = vector.shape_cast %498 : vector<1x1x384xf32> to vector<1x384xf32>
    %500 = vector.broadcast %499 : vector<1x384xf32> to vector<8x384xf32>
    %501 = arith.addf %497, %500 : vector<8x384xf32>
    %502 = vector.extract_strided_slice %501 {offsets = [0, 0], sizes = [8, 128], strides = [1, 1]} : vector<8x384xf32> to vector<8x128xf32>
    %503 = vector.extract_strided_slice %501 {offsets = [0, 128], sizes = [8, 128], strides = [1, 1]} : vector<8x384xf32> to vector<8x128xf32>
    %504 = vector.extract_strided_slice %501 {offsets = [0, 256], sizes = [8, 128], strides = [1, 1]} : vector<8x384xf32> to vector<8x128xf32>
    %c3_245 = arith.constant 3 : index
    %c0_246 = arith.constant 0 : index
    %c0_247 = arith.constant 0 : index
    %505 = vector.load %arg12[%c3_245, %c0_246, %c0_247] : memref<4x128x128xf32, #tpu.memory_space<vmem>>, vector<1x128x128xf32>
    %506 = vector.shape_cast %505 : vector<1x128x128xf32> to vector<128x128xf32>
    %cst_248 = arith.constant 0.000000e+00 : f32
    %507 = vector.broadcast %cst_248 : f32 to vector<8x128xf32>
    %c3_249 = arith.constant 3 : index
    %c0_250 = arith.constant 0 : index
    %c0_251 = arith.constant 0 : index
    %508 = vector.load %arg13[%c3_249, %c0_250, %c0_251] : memref<4x1x128xf32, #tpu.memory_space<vmem>>, vector<1x1x128xf32>
    %509 = vector.shape_cast %508 : vector<1x1x128xf32> to vector<1x128xf32>
    %510 = vector.broadcast %509 : vector<1x128xf32> to vector<8x128xf32>
    %511 = arith.addf %507, %510 : vector<8x128xf32>
    %512 = vector.extract_strided_slice %502 {offsets = [0, 0], sizes = [8, 32], strides = [1, 1]} : vector<8x128xf32> to vector<8x32xf32>
    %513 = vector.extract_strided_slice %503 {offsets = [0, 0], sizes = [8, 32], strides = [1, 1]} : vector<8x128xf32> to vector<8x32xf32>
    %514 = vector.extract_strided_slice %504 {offsets = [0, 0], sizes = [8, 32], strides = [1, 1]} : vector<8x128xf32> to vector<8x32xf32>
    %cst_252 = arith.constant dense<0.000000e+00> : vector<8x8xf32>
    %515 = tpu.matmul %512, %513, %cst_252 {dimension_numbers = #tpu.dot_dimension_numbers<[1], [1], [0], [0], [0, 0, 1, 0], [], []>} : vector<8x32xf32>, vector<8x32xf32>, vector<8x8xf32> -> vector<8x8xf32>
    %cst_253 = arith.constant 0.176776692 : f32
    %516 = vector.broadcast %cst_253 : f32 to vector<8x8xf32>
    %517 = arith.mulf %515, %516 : vector<8x8xf32>
    %cst_254 = arith.constant dense<0xFF800000> : vector<8xf32>
    %518 = vector.multi_reduction <maximumf>, %517, %cst_254 [1] : vector<8x8xf32> to vector<8xf32>
    %519 = vector.shape_cast %518 : vector<8xf32> to vector<8x1xf32>
    %520 = vector.broadcast %519 : vector<8x1xf32> to vector<8x8xf32>
    %521 = arith.subf %517, %520 : vector<8x8xf32>
    %522 = math.exp %521 : vector<8x8xf32>
    %cst_255 = arith.constant dense<0.000000e+00> : vector<8xf32>
    %523 = vector.multi_reduction <add>, %522, %cst_255 [1] : vector<8x8xf32> to vector<8xf32>
    %524 = vector.shape_cast %523 : vector<8xf32> to vector<8x1xf32>
    %525 = vector.broadcast %524 : vector<8x1xf32> to vector<8x8xf32>
    %526 = arith.divf %522, %525 : vector<8x8xf32>
    %cst_256 = arith.constant dense<0.000000e+00> : vector<8x32xf32>
    %527 = tpu.matmul %526, %514, %cst_256 {dimension_numbers = #tpu.dot_dimension_numbers<[1], [0], [0], [1], [0, 0, 1, 1], [], []>} : vector<8x8xf32>, vector<8x32xf32>, vector<8x32xf32> -> vector<8x32xf32>
    %528 = vector.extract_strided_slice %506 {offsets = [0, 0], sizes = [32, 128], strides = [1, 1]} : vector<128x128xf32> to vector<32x128xf32>
    %cst_257 = arith.constant dense<0.000000e+00> : vector<8x128xf32>
    %529 = tpu.matmul %527, %528, %cst_257 {dimension_numbers = #tpu.dot_dimension_numbers<[1], [0], [0], [1], [0, 0, 1, 1], [], []>} : vector<8x32xf32>, vector<32x128xf32>, vector<8x128xf32> -> vector<8x128xf32>
    %530 = arith.addf %511, %529 : vector<8x128xf32>
    %531 = vector.extract_strided_slice %502 {offsets = [0, 32], sizes = [8, 32], strides = [1, 1]} : vector<8x128xf32> to vector<8x32xf32>
    %532 = vector.extract_strided_slice %503 {offsets = [0, 32], sizes = [8, 32], strides = [1, 1]} : vector<8x128xf32> to vector<8x32xf32>
    %533 = vector.extract_strided_slice %504 {offsets = [0, 32], sizes = [8, 32], strides = [1, 1]} : vector<8x128xf32> to vector<8x32xf32>
    %cst_258 = arith.constant dense<0.000000e+00> : vector<8x8xf32>
    %534 = tpu.matmul %531, %532, %cst_258 {dimension_numbers = #tpu.dot_dimension_numbers<[1], [1], [0], [0], [0, 0, 1, 0], [], []>} : vector<8x32xf32>, vector<8x32xf32>, vector<8x8xf32> -> vector<8x8xf32>
    %cst_259 = arith.constant 0.176776692 : f32
    %535 = vector.broadcast %cst_259 : f32 to vector<8x8xf32>
    %536 = arith.mulf %534, %535 : vector<8x8xf32>
    %cst_260 = arith.constant dense<0xFF800000> : vector<8xf32>
    %537 = vector.multi_reduction <maximumf>, %536, %cst_260 [1] : vector<8x8xf32> to vector<8xf32>
    %538 = vector.shape_cast %537 : vector<8xf32> to vector<8x1xf32>
    %539 = vector.broadcast %538 : vector<8x1xf32> to vector<8x8xf32>
    %540 = arith.subf %536, %539 : vector<8x8xf32>
    %541 = math.exp %540 : vector<8x8xf32>
    %cst_261 = arith.constant dense<0.000000e+00> : vector<8xf32>
    %542 = vector.multi_reduction <add>, %541, %cst_261 [1] : vector<8x8xf32> to vector<8xf32>
    %543 = vector.shape_cast %542 : vector<8xf32> to vector<8x1xf32>
    %544 = vector.broadcast %543 : vector<8x1xf32> to vector<8x8xf32>
    %545 = arith.divf %541, %544 : vector<8x8xf32>
    %cst_262 = arith.constant dense<0.000000e+00> : vector<8x32xf32>
    %546 = tpu.matmul %545, %533, %cst_262 {dimension_numbers = #tpu.dot_dimension_numbers<[1], [0], [0], [1], [0, 0, 1, 1], [], []>} : vector<8x8xf32>, vector<8x32xf32>, vector<8x32xf32> -> vector<8x32xf32>
    %547 = vector.extract_strided_slice %506 {offsets = [32, 0], sizes = [32, 128], strides = [1, 1]} : vector<128x128xf32> to vector<32x128xf32>
    %cst_263 = arith.constant dense<0.000000e+00> : vector<8x128xf32>
    %548 = tpu.matmul %546, %547, %cst_263 {dimension_numbers = #tpu.dot_dimension_numbers<[1], [0], [0], [1], [0, 0, 1, 1], [], []>} : vector<8x32xf32>, vector<32x128xf32>, vector<8x128xf32> -> vector<8x128xf32>
    %549 = arith.addf %530, %548 : vector<8x128xf32>
    %550 = vector.extract_strided_slice %502 {offsets = [0, 64], sizes = [8, 32], strides = [1, 1]} : vector<8x128xf32> to vector<8x32xf32>
    %551 = vector.extract_strided_slice %503 {offsets = [0, 64], sizes = [8, 32], strides = [1, 1]} : vector<8x128xf32> to vector<8x32xf32>
    %552 = vector.extract_strided_slice %504 {offsets = [0, 64], sizes = [8, 32], strides = [1, 1]} : vector<8x128xf32> to vector<8x32xf32>
    %cst_264 = arith.constant dense<0.000000e+00> : vector<8x8xf32>
    %553 = tpu.matmul %550, %551, %cst_264 {dimension_numbers = #tpu.dot_dimension_numbers<[1], [1], [0], [0], [0, 0, 1, 0], [], []>} : vector<8x32xf32>, vector<8x32xf32>, vector<8x8xf32> -> vector<8x8xf32>
    %cst_265 = arith.constant 0.176776692 : f32
    %554 = vector.broadcast %cst_265 : f32 to vector<8x8xf32>
    %555 = arith.mulf %553, %554 : vector<8x8xf32>
    %cst_266 = arith.constant dense<0xFF800000> : vector<8xf32>
    %556 = vector.multi_reduction <maximumf>, %555, %cst_266 [1] : vector<8x8xf32> to vector<8xf32>
    %557 = vector.shape_cast %556 : vector<8xf32> to vector<8x1xf32>
    %558 = vector.broadcast %557 : vector<8x1xf32> to vector<8x8xf32>
    %559 = arith.subf %555, %558 : vector<8x8xf32>
    %560 = math.exp %559 : vector<8x8xf32>
    %cst_267 = arith.constant dense<0.000000e+00> : vector<8xf32>
    %561 = vector.multi_reduction <add>, %560, %cst_267 [1] : vector<8x8xf32> to vector<8xf32>
    %562 = vector.shape_cast %561 : vector<8xf32> to vector<8x1xf32>
    %563 = vector.broadcast %562 : vector<8x1xf32> to vector<8x8xf32>
    %564 = arith.divf %560, %563 : vector<8x8xf32>
    %cst_268 = arith.constant dense<0.000000e+00> : vector<8x32xf32>
    %565 = tpu.matmul %564, %552, %cst_268 {dimension_numbers = #tpu.dot_dimension_numbers<[1], [0], [0], [1], [0, 0, 1, 1], [], []>} : vector<8x8xf32>, vector<8x32xf32>, vector<8x32xf32> -> vector<8x32xf32>
    %566 = vector.extract_strided_slice %506 {offsets = [64, 0], sizes = [32, 128], strides = [1, 1]} : vector<128x128xf32> to vector<32x128xf32>
    %cst_269 = arith.constant dense<0.000000e+00> : vector<8x128xf32>
    %567 = tpu.matmul %565, %566, %cst_269 {dimension_numbers = #tpu.dot_dimension_numbers<[1], [0], [0], [1], [0, 0, 1, 1], [], []>} : vector<8x32xf32>, vector<32x128xf32>, vector<8x128xf32> -> vector<8x128xf32>
    %568 = arith.addf %549, %567 : vector<8x128xf32>
    %569 = vector.extract_strided_slice %502 {offsets = [0, 96], sizes = [8, 32], strides = [1, 1]} : vector<8x128xf32> to vector<8x32xf32>
    %570 = vector.extract_strided_slice %503 {offsets = [0, 96], sizes = [8, 32], strides = [1, 1]} : vector<8x128xf32> to vector<8x32xf32>
    %571 = vector.extract_strided_slice %504 {offsets = [0, 96], sizes = [8, 32], strides = [1, 1]} : vector<8x128xf32> to vector<8x32xf32>
    %cst_270 = arith.constant dense<0.000000e+00> : vector<8x8xf32>
    %572 = tpu.matmul %569, %570, %cst_270 {dimension_numbers = #tpu.dot_dimension_numbers<[1], [1], [0], [0], [0, 0, 1, 0], [], []>} : vector<8x32xf32>, vector<8x32xf32>, vector<8x8xf32> -> vector<8x8xf32>
    %cst_271 = arith.constant 0.176776692 : f32
    %573 = vector.broadcast %cst_271 : f32 to vector<8x8xf32>
    %574 = arith.mulf %572, %573 : vector<8x8xf32>
    %cst_272 = arith.constant dense<0xFF800000> : vector<8xf32>
    %575 = vector.multi_reduction <maximumf>, %574, %cst_272 [1] : vector<8x8xf32> to vector<8xf32>
    %576 = vector.shape_cast %575 : vector<8xf32> to vector<8x1xf32>
    %577 = vector.broadcast %576 : vector<8x1xf32> to vector<8x8xf32>
    %578 = arith.subf %574, %577 : vector<8x8xf32>
    %579 = math.exp %578 : vector<8x8xf32>
    %cst_273 = arith.constant dense<0.000000e+00> : vector<8xf32>
    %580 = vector.multi_reduction <add>, %579, %cst_273 [1] : vector<8x8xf32> to vector<8xf32>
    %581 = vector.shape_cast %580 : vector<8xf32> to vector<8x1xf32>
    %582 = vector.broadcast %581 : vector<8x1xf32> to vector<8x8xf32>
    %583 = arith.divf %579, %582 : vector<8x8xf32>
    %cst_274 = arith.constant dense<0.000000e+00> : vector<8x32xf32>
    %584 = tpu.matmul %583, %571, %cst_274 {dimension_numbers = #tpu.dot_dimension_numbers<[1], [0], [0], [1], [0, 0, 1, 1], [], []>} : vector<8x8xf32>, vector<8x32xf32>, vector<8x32xf32> -> vector<8x32xf32>
    %585 = vector.extract_strided_slice %506 {offsets = [96, 0], sizes = [32, 128], strides = [1, 1]} : vector<128x128xf32> to vector<32x128xf32>
    %cst_275 = arith.constant dense<0.000000e+00> : vector<8x128xf32>
    %586 = tpu.matmul %584, %585, %cst_275 {dimension_numbers = #tpu.dot_dimension_numbers<[1], [0], [0], [1], [0, 0, 1, 1], [], []>} : vector<8x32xf32>, vector<32x128xf32>, vector<8x128xf32> -> vector<8x128xf32>
    %587 = arith.addf %568, %586 : vector<8x128xf32>
    %588 = arith.addf %494, %587 : vector<8x128xf32>
    %c3_276 = arith.constant 3 : index
    %c0_277 = arith.constant 0 : index
    %c0_278 = arith.constant 0 : index
    %589 = vector.load %arg18[%c3_276, %c0_277, %c0_278] : memref<4x1x128xf32, #tpu.memory_space<vmem>>, vector<1x1x128xf32>
    %590 = vector.shape_cast %589 : vector<1x1x128xf32> to vector<1x128xf32>
    %c3_279 = arith.constant 3 : index
    %c0_280 = arith.constant 0 : index
    %c0_281 = arith.constant 0 : index
    %591 = vector.load %arg19[%c3_279, %c0_280, %c0_281] : memref<4x1x128xf32, #tpu.memory_space<vmem>>, vector<1x1x128xf32>
    %592 = vector.shape_cast %591 : vector<1x1x128xf32> to vector<1x128xf32>
    %cst_282 = arith.constant dense<0.000000e+00> : vector<8xf32>
    %593 = vector.multi_reduction <add>, %588, %cst_282 [1] : vector<8x128xf32> to vector<8xf32>
    %594 = vector.shape_cast %593 : vector<8xf32> to vector<8x1xf32>
    %cst_283 = arith.constant 1.280000e+02 : f32
    %595 = vector.broadcast %cst_283 : f32 to vector<8x1xf32>
    %596 = arith.divf %594, %595 : vector<8x1xf32>
    %597 = vector.broadcast %596 : vector<8x1xf32> to vector<8x128xf32>
    %598 = arith.subf %588, %597 : vector<8x128xf32>
    %599 = arith.mulf %598, %598 : vector<8x128xf32>
    %cst_284 = arith.constant dense<0.000000e+00> : vector<8xf32>
    %600 = vector.multi_reduction <add>, %599, %cst_284 [1] : vector<8x128xf32> to vector<8xf32>
    %601 = vector.shape_cast %600 : vector<8xf32> to vector<8x1xf32>
    %cst_285 = arith.constant 1.280000e+02 : f32
    %602 = vector.broadcast %cst_285 : f32 to vector<8x1xf32>
    %603 = arith.divf %601, %602 : vector<8x1xf32>
    %cst_286 = arith.constant 9.99999974E-6 : f32
    %604 = vector.broadcast %cst_286 : f32 to vector<8x1xf32>
    %605 = arith.addf %603, %604 : vector<8x1xf32>
    %606 = math.rsqrt %605 : vector<8x1xf32>
    %607 = vector.broadcast %606 : vector<8x1xf32> to vector<8x128xf32>
    %608 = arith.mulf %598, %607 : vector<8x128xf32>
    %609 = vector.broadcast %590 : vector<1x128xf32> to vector<8x128xf32>
    %610 = arith.mulf %608, %609 : vector<8x128xf32>
    %611 = vector.broadcast %592 : vector<1x128xf32> to vector<8x128xf32>
    %612 = arith.addf %610, %611 : vector<8x128xf32>
    %c3_287 = arith.constant 3 : index
    %c0_288 = arith.constant 0 : index
    %c0_289 = arith.constant 0 : index
    %613 = vector.load %arg14[%c3_287, %c0_288, %c0_289] : memref<4x128x128xf32, #tpu.memory_space<vmem>>, vector<1x128x128xf32>
    %614 = vector.shape_cast %613 : vector<1x128x128xf32> to vector<128x128xf32>
    %cst_290 = arith.constant dense<0.000000e+00> : vector<8x128xf32>
    %615 = tpu.matmul %612, %614, %cst_290 {dimension_numbers = #tpu.dot_dimension_numbers<[1], [0], [0], [1], [0, 0, 1, 1], [], []>} : vector<8x128xf32>, vector<128x128xf32>, vector<8x128xf32> -> vector<8x128xf32>
    %c3_291 = arith.constant 3 : index
    %c0_292 = arith.constant 0 : index
    %c0_293 = arith.constant 0 : index
    %616 = vector.load %arg15[%c3_291, %c0_292, %c0_293] : memref<4x1x128xf32, #tpu.memory_space<vmem>>, vector<1x1x128xf32>
    %617 = vector.shape_cast %616 : vector<1x1x128xf32> to vector<1x128xf32>
    %618 = vector.broadcast %617 : vector<1x128xf32> to vector<8x128xf32>
    %619 = arith.addf %615, %618 : vector<8x128xf32>
    %cst_294 = arith.constant 0.000000e+00 : f32
    %620 = vector.broadcast %cst_294 : f32 to vector<8x128xf32>
    %621 = arith.maximumf %619, %620 : vector<8x128xf32>
    %c3_295 = arith.constant 3 : index
    %c0_296 = arith.constant 0 : index
    %c0_297 = arith.constant 0 : index
    %622 = vector.load %arg16[%c3_295, %c0_296, %c0_297] : memref<4x128x128xf32, #tpu.memory_space<vmem>>, vector<1x128x128xf32>
    %623 = vector.shape_cast %622 : vector<1x128x128xf32> to vector<128x128xf32>
    %cst_298 = arith.constant dense<0.000000e+00> : vector<8x128xf32>
    %624 = tpu.matmul %621, %623, %cst_298 {dimension_numbers = #tpu.dot_dimension_numbers<[1], [0], [0], [1], [0, 0, 1, 1], [], []>} : vector<8x128xf32>, vector<128x128xf32>, vector<8x128xf32> -> vector<8x128xf32>
    %c3_299 = arith.constant 3 : index
    %c0_300 = arith.constant 0 : index
    %c0_301 = arith.constant 0 : index
    %625 = vector.load %arg17[%c3_299, %c0_300, %c0_301] : memref<4x1x128xf32, #tpu.memory_space<vmem>>, vector<1x1x128xf32>
    %626 = vector.shape_cast %625 : vector<1x1x128xf32> to vector<1x128xf32>
    %627 = vector.broadcast %626 : vector<1x128xf32> to vector<8x128xf32>
    %628 = arith.addf %624, %627 : vector<8x128xf32>
    %629 = arith.addf %612, %628 : vector<8x128xf32>
    %c3_302 = arith.constant 3 : index
    %c0_303 = arith.constant 0 : index
    %c0_304 = arith.constant 0 : index
    %630 = vector.load %arg20[%c3_302, %c0_303, %c0_304] : memref<4x1x128xf32, #tpu.memory_space<vmem>>, vector<1x1x128xf32>
    %631 = vector.shape_cast %630 : vector<1x1x128xf32> to vector<1x128xf32>
    %c3_305 = arith.constant 3 : index
    %c0_306 = arith.constant 0 : index
    %c0_307 = arith.constant 0 : index
    %632 = vector.load %arg21[%c3_305, %c0_306, %c0_307] : memref<4x1x128xf32, #tpu.memory_space<vmem>>, vector<1x1x128xf32>
    %633 = vector.shape_cast %632 : vector<1x1x128xf32> to vector<1x128xf32>
    %cst_308 = arith.constant dense<0.000000e+00> : vector<8xf32>
    %634 = vector.multi_reduction <add>, %629, %cst_308 [1] : vector<8x128xf32> to vector<8xf32>
    %635 = vector.shape_cast %634 : vector<8xf32> to vector<8x1xf32>
    %cst_309 = arith.constant 1.280000e+02 : f32
    %636 = vector.broadcast %cst_309 : f32 to vector<8x1xf32>
    %637 = arith.divf %635, %636 : vector<8x1xf32>
    %638 = vector.broadcast %637 : vector<8x1xf32> to vector<8x128xf32>
    %639 = arith.subf %629, %638 : vector<8x128xf32>
    %640 = arith.mulf %639, %639 : vector<8x128xf32>
    %cst_310 = arith.constant dense<0.000000e+00> : vector<8xf32>
    %641 = vector.multi_reduction <add>, %640, %cst_310 [1] : vector<8x128xf32> to vector<8xf32>
    %642 = vector.shape_cast %641 : vector<8xf32> to vector<8x1xf32>
    %cst_311 = arith.constant 1.280000e+02 : f32
    %643 = vector.broadcast %cst_311 : f32 to vector<8x1xf32>
    %644 = arith.divf %642, %643 : vector<8x1xf32>
    %cst_312 = arith.constant 9.99999974E-6 : f32
    %645 = vector.broadcast %cst_312 : f32 to vector<8x1xf32>
    %646 = arith.addf %644, %645 : vector<8x1xf32>
    %647 = math.rsqrt %646 : vector<8x1xf32>
    %648 = vector.broadcast %647 : vector<8x1xf32> to vector<8x128xf32>
    %649 = arith.mulf %639, %648 : vector<8x128xf32>
    %650 = vector.broadcast %631 : vector<1x128xf32> to vector<8x128xf32>
    %651 = arith.mulf %649, %650 : vector<8x128xf32>
    %652 = vector.broadcast %633 : vector<1x128xf32> to vector<8x128xf32>
    %653 = arith.addf %651, %652 : vector<8x128xf32>
    %c0_313 = arith.constant 0 : index
    %c0_314 = arith.constant 0 : index
    %654 = vector.load %arg8[%c0_313, %c0_314] : memref<128x16xf32, #tpu.memory_space<vmem>>, vector<128x16xf32>
    %cst_315 = arith.constant dense<0.000000e+00> : vector<8x16xf32>
    %655 = tpu.matmul %653, %654, %cst_315 {dimension_numbers = #tpu.dot_dimension_numbers<[1], [0], [0], [1], [0, 0, 1, 1], [], []>} : vector<8x128xf32>, vector<128x16xf32>, vector<8x16xf32> -> vector<8x16xf32>
    %c0_316 = arith.constant 0 : index
    %c0_317 = arith.constant 0 : index
    %656 = vector.load %arg9[%c0_316, %c0_317] : memref<1x16xf32, #tpu.memory_space<vmem>>, vector<1x16xf32>
    %657 = vector.broadcast %656 : vector<1x16xf32> to vector<8x16xf32>
    %658 = arith.addf %655, %657 : vector<8x16xf32>
    %c0_318 = arith.constant 0 : index
    %c0_319 = arith.constant 0 : index
    %c0_320 = arith.constant 0 : index
    %659 = vector.load %arg22[%c0_318, %c0_319, %c0_320] : memref<1x8x16xf32, #tpu.memory_space<vmem>>, vector<1x8x16xf32>
    %660 = vector.shape_cast %659 : vector<1x8x16xf32> to vector<8x16xf32>
    %661 = vector.shape_cast %658 : vector<8x16xf32> to vector<1x8x16xf32>
    tpu.vector_store %arg22[%c0_318, %c0_319, %c0_320], %661 {strides = array<i32>} : memref<1x8x16xf32, #tpu.memory_space<vmem>>, vector<1x8x16xf32>,
    return
  }
  func.func @transform_0(%arg0: i32) -> (i32, i32, i32) {
    %c0_i32 = arith.constant 0 : i32
    %c0_i32_0 = arith.constant 0 : i32
    %c0_i32_1 = arith.constant 0 : i32
    return %arg0, %c0_i32, %c0_i32_0 : i32, i32, i32
  }
  func.func @transform_1(%arg0: i32) -> (i32, i32) {
    %c0_i32 = arith.constant 0 : i32
    %c0_i32_0 = arith.constant 0 : i32
    %c0_i32_1 = arith.constant 0 : i32
    return %c0_i32, %c0_i32_0 : i32, i32
  }
  func.func @transform_2(%arg0: i32) -> (i32, i32) {
    %c0_i32 = arith.constant 0 : i32
    %c0_i32_0 = arith.constant 0 : i32
    %c0_i32_1 = arith.constant 0 : i32
    return %c0_i32, %c0_i32_0 : i32, i32
  }
  func.func @transform_3(%arg0: i32) -> (i32, i32) {
    %c0_i32 = arith.constant 0 : i32
    %c0_i32_0 = arith.constant 0 : i32
    %c0_i32_1 = arith.constant 0 : i32
    return %c0_i32, %c0_i32_0 : i32, i32
  }
  func.func @transform_4(%arg0: i32) -> (i32, i32) {
    %c0_i32 = arith.constant 0 : i32
    %c0_i32_0 = arith.constant 0 : i32
    %c0_i32_1 = arith.constant 0 : i32
    return %c0_i32, %c0_i32_0 : i32, i32
  }
  func.func @transform_5(%arg0: i32) -> (i32, i32) {
    %c0_i32 = arith.constant 0 : i32
    %c0_i32_0 = arith.constant 0 : i32
    %c0_i32_1 = arith.constant 0 : i32
    return %c0_i32, %c0_i32_0 : i32, i32
  }
  func.func @transform_6(%arg0: i32) -> (i32, i32) {
    %c0_i32 = arith.constant 0 : i32
    %c0_i32_0 = arith.constant 0 : i32
    %c0_i32_1 = arith.constant 0 : i32
    return %c0_i32, %c0_i32_0 : i32, i32
  }
  func.func @transform_7(%arg0: i32) -> (i32, i32) {
    %c0_i32 = arith.constant 0 : i32
    %c0_i32_0 = arith.constant 0 : i32
    %c0_i32_1 = arith.constant 0 : i32
    return %c0_i32, %c0_i32_0 : i32, i32
  }
  func.func @transform_8(%arg0: i32) -> (i32, i32) {
    %c0_i32 = arith.constant 0 : i32
    %c0_i32_0 = arith.constant 0 : i32
    %c0_i32_1 = arith.constant 0 : i32
    return %c0_i32, %c0_i32_0 : i32, i32
  }
  func.func @transform_9(%arg0: i32) -> (i32, i32, i32) {
    %c0_i32 = arith.constant 0 : i32
    %c0_i32_0 = arith.constant 0 : i32
    %c0_i32_1 = arith.constant 0 : i32
    %c0_i32_2 = arith.constant 0 : i32
    return %c0_i32, %c0_i32_0, %c0_i32_1 : i32, i32, i32
  }
  func.func @transform_10(%arg0: i32) -> (i32, i32, i32) {
    %c0_i32 = arith.constant 0 : i32
    %c0_i32_0 = arith.constant 0 : i32
    %c0_i32_1 = arith.constant 0 : i32
    %c0_i32_2 = arith.constant 0 : i32
    return %c0_i32, %c0_i32_0, %c0_i32_1 : i32, i32, i32
  }
  func.func @transform_11(%arg0: i32) -> (i32, i32, i32) {
    %c0_i32 = arith.constant 0 : i32
    %c0_i32_0 = arith.constant 0 : i32
    %c0_i32_1 = arith.constant 0 : i32
    %c0_i32_2 = arith.constant 0 : i32
    return %c0_i32, %c0_i32_0, %c0_i32_1 : i32, i32, i32
  }
  func.func @transform_12(%arg0: i32) -> (i32, i32, i32) {
    %c0_i32 = arith.constant 0 : i32
    %c0_i32_0 = arith.constant 0 : i32
    %c0_i32_1 = arith.constant 0 : i32
    %c0_i32_2 = arith.constant 0 : i32
    return %c0_i32, %c0_i32_0, %c0_i32_1 : i32, i32, i32
  }
  func.func @transform_13(%arg0: i32) -> (i32, i32, i32) {
    %c0_i32 = arith.constant 0 : i32
    %c0_i32_0 = arith.constant 0 : i32
    %c0_i32_1 = arith.constant 0 : i32
    %c0_i32_2 = arith.constant 0 : i32
    return %c0_i32, %c0_i32_0, %c0_i32_1 : i32, i32, i32
  }
  func.func @transform_14(%arg0: i32) -> (i32, i32, i32) {
    %c0_i32 = arith.constant 0 : i32
    %c0_i32_0 = arith.constant 0 : i32
    %c0_i32_1 = arith.constant 0 : i32
    %c0_i32_2 = arith.constant 0 : i32
    return %c0_i32, %c0_i32_0, %c0_i32_1 : i32, i32, i32
  }
  func.func @transform_15(%arg0: i32) -> (i32, i32, i32) {
    %c0_i32 = arith.constant 0 : i32
    %c0_i32_0 = arith.constant 0 : i32
    %c0_i32_1 = arith.constant 0 : i32
    %c0_i32_2 = arith.constant 0 : i32
    return %c0_i32, %c0_i32_0, %c0_i32_1 : i32, i32, i32
  }
  func.func @transform_16(%arg0: i32) -> (i32, i32, i32) {
    %c0_i32 = arith.constant 0 : i32
    %c0_i32_0 = arith.constant 0 : i32
    %c0_i32_1 = arith.constant 0 : i32
    %c0_i32_2 = arith.constant 0 : i32
    return %c0_i32, %c0_i32_0, %c0_i32_1 : i32, i32, i32
  }
  func.func @transform_17(%arg0: i32) -> (i32, i32, i32) {
    %c0_i32 = arith.constant 0 : i32
    %c0_i32_0 = arith.constant 0 : i32
    %c0_i32_1 = arith.constant 0 : i32
    %c0_i32_2 = arith.constant 0 : i32
    return %c0_i32, %c0_i32_0, %c0_i32_1 : i32, i32, i32
  }
  func.func @transform_18(%arg0: i32) -> (i32, i32, i32) {
    %c0_i32 = arith.constant 0 : i32
    %c0_i32_0 = arith.constant 0 : i32
    %c0_i32_1 = arith.constant 0 : i32
    %c0_i32_2 = arith.constant 0 : i32
    return %c0_i32, %c0_i32_0, %c0_i32_1 : i32, i32, i32
  }
  func.func @transform_19(%arg0: i32) -> (i32, i32, i32) {
    %c0_i32 = arith.constant 0 : i32
    %c0_i32_0 = arith.constant 0 : i32
    %c0_i32_1 = arith.constant 0 : i32
    %c0_i32_2 = arith.constant 0 : i32
    return %c0_i32, %c0_i32_0, %c0_i32_1 : i32, i32, i32
  }
  func.func @transform_20(%arg0: i32) -> (i32, i32, i32) {
    %c0_i32 = arith.constant 0 : i32
    %c0_i32_0 = arith.constant 0 : i32
    %c0_i32_1 = arith.constant 0 : i32
    %c0_i32_2 = arith.constant 0 : i32
    return %c0_i32, %c0_i32_0, %c0_i32_1 : i32, i32, i32
  }
  func.func @transform_21(%arg0: i32) -> (i32, i32, i32) {
    %c0_i32 = arith.constant 0 : i32
    %c0_i32_0 = arith.constant 0 : i32
    %c0_i32_1 = arith.constant 0 : i32
    return %arg0, %c0_i32, %c0_i32_0 : i32, i32, i32
  }
}

</mosaic_0001>

<bundles_post_ra>
// kernel: tpu_custom_call.1
= control target key start
LH: loop header
LB: loop body
LE: loop exit
PB: predicated region body
PF: predicated region fallthrough
CT: control target
= control target key end

     0   :  { %s10378_s0 = inlined_call_operand.vmem [shape: f32[2,8,16], index: 0, kind: input, shape index: {}]   ;;  %s10379_s1 = inlined_call_operand.vmem [shape: f32[16,128], index: 1, kind: input, shape index: {}]   ;;  %s10380_s2 = inlined_call_operand.vmem [shape: f32[1,128], index: 2, kind: input, shape index: {}]   ;;  %s10381_s3 = inlined_call_operand.vmem [shape: f32[128,8], index: 3, kind: input, shape index: {}]   ;;  %s10382_s4 = inlined_call_operand.vmem [shape: f32[1,8], index: 4, kind: input, shape index: {}]   ;;  %s10383_s5 = inlined_call_operand.vmem [shape: f32[8,128], index: 5, kind: input, shape index: {}]   ;;  %s10384_s6 = inlined_call_operand.vmem [shape: f32[1,128], index: 6, kind: input, shape index: {}]   ;;  %s10385_s7 = inlined_call_operand.vmem [shape: f32[128,16], index: 7, kind: input, shape index: {}]   ;;  %s10386_s8 = inlined_call_operand.vmem [shape: f32[1,16], index: 8, kind: input, shape index: {}]   ;;  %s10387_s9 = inlined_call_operand.hbm [shape: f32[4,128,384], index: 9, kind: input, shape index: {}]   ;;  %s10388_s10 = inlined_call_operand.vmem [shape: f32[4,1,384], index: 10, kind: input, shape index: {}]   ;;  %s10389_s11 = inlined_call_operand.hbm [shape: f32[4,128,128], index: 11, kind: input, shape index: {}]   ;;  %s10390_s12 = inlined_call_operand.vmem [shape: f32[4,1,128], index: 12, kind: input, shape index: {}]   ;;  %s10391_s13 = inlined_call_operand.hbm [shape: f32[4,128,128], index: 13, kind: input, shape index: {}]   ;;  %s10392_s14 = inlined_call_operand.vmem [shape: f32[4,1,128], index: 14, kind: input, shape index: {}]   ;;  %s10393_s15 = inlined_call_operand.hbm [shape: f32[4,128,128], index: 15, kind: input, shape index: {}]   ;;  %s10394_s16 = inlined_call_operand.vmem [shape: f32[4,1,128], index: 16, kind: input, shape index: {}]   ;;  %s10395_s17 = inlined_call_operand.vmem [shape: f32[4,1,128], index: 17, kind: input, shape index: {}]   ;;  %s10396_s18 = inlined_call_operand.vmem [shape: f32[4,1,128], index: 18, kind: input, shape index: {}]   ;;  %s10397_s19 = inlined_call_operand.vmem [shape: f32[4,1,128], index: 19, kind: input, shape index: {}]   ;;  %s10398_s20 = inlined_call_operand.vmem [shape: f32[4,1,128], index: 20, kind: input, shape index: {}]   ;;  %s10399_s21 = inlined_call_operand.hbm [shape: f32[2,8,16], index: 21, kind: output, shape index: {}]  }
   0x1   :  { %10419 = sst [smem:[#allocation23_spill]] %s10378_s0 }
   0x2   :  { %10420 = sst [smem:[#allocation24_spill]] %s10379_s1 }
   0x3   :  { %10421 = sst [smem:[#allocation25_spill]] %s10380_s2 }
   0x4   :  { %10422 = sst [smem:[#allocation26_spill]] %s10381_s3 }
   0x5   :  { %10423 = sst [smem:[#allocation27_spill]] %s10382_s4 }
   0x6   :  { %10424 = sst [smem:[#allocation28_spill]] %s10383_s5 }
   0x7   :  { %10425 = sst [smem:[#allocation29_spill]] %s10386_s8 }
   0x8   :  { %10426 = sst [smem:[#allocation30_spill]] %s10389_s11 }
   0x9   :  { %10427 = sst [smem:[#allocation31_spill]] %s10399_s21 }
   0xa   :  { %26 = vsyncpa [#allocation3], 0 }
   0xb   :  { %27 = vsyncpa [#allocation6], 0 }
   0xc   :  { %28 = vsyncpa [#allocation9], 0 }
   0xd   :  { %29 = vsyncpa [#allocation4], 0 }
   0xe   :  { %31 = vsyncpa [#allocation4 + $0x1], 0  ;;  %s9346_s2 = smov 0   ;;  %s9348_s25 = smov 0  }
   0xf   :  { %s9350_s26 = smov 0   ;;  %s9352_s27 = smov 0  }
  0x10 LB: > { %10428 = sst [smem:[#allocation15_spill]] %s9207_s2  ;;  %s9367_s3 = sadd.s32 4294967295, %s9219_s27   ;;  %s9219_s27 = sphi %s9352_s27, %s10467_s27   ;;  %s9215_s26 = sphi %s9350_s26, %s10470_s26   ;;  %s9211_s25 = sphi %s9348_s25, %s10469_s25   ;;  %s9207_s2 = sphi %s9346_s2, %s10468_s2  }
  0x11   : > { %10429 = sst [smem:[#allocation16_spill]] %s9211_s25  ;;  %s6933_s28 = sadd.s32 4294967294, %s9219_s27  }
  0x12   : > { %10430 = sst [smem:[#allocation17_spill]] %s9215_s26  ;;  %s9371_s29 = sadd.s32 1, %s9219_s27  }
  0x13   : > { %10431 = sst [smem:[#allocation18_spill]] %s9219_s27  ;;  %s490_s0 = sadd.s32 1, %s9215_s26 }
  0x14   : > { %10432 = sst [smem:[#allocation19_spill]] %s9371_s29  ;;  %s487_s4 = ssub.s32 %s9219_s27, %s9371_s29 }
  0x15   : > { %p500_p0 = scmp.ne.s32.totalorder %s9215_s26, %s9211_s25  ;;  %p488_p1 = scmp.eq.s32.totalorder %s487_s4, 0 }
  0x16   : > { %p501_p2 = scmp.eq.s32.totalorder %s9367_s3, 1  ;;  %p506_p3 = scmp.ne.s32.totalorder %s9211_s25, %s9207_s2 }
  0x17   : > { %p507_p4 = scmp.eq.s32.totalorder %s6933_s28, 1  ;;  %p6934_p7 = scmp.ge.s32.totalorder %s9219_s27, 1 }
  0x18   : > { %s9382_s30 = scalar_select %p488_p1, %s9215_s26, %s490_s0  }
  0x19   : > { %p9384_p5 = por %p501_p2, %p500_p0  ;;  %p9388_p6 = por %p507_p4, %p506_p3 }
  0x1a   : > { %10433 = sst [smem:[#allocation20_spill]] %s9382_s30  ;;  %p514_p8 = scmp.lt.s32.totalorder %s9219_s27, 3 }
  0x1b   : > { %s10434_s5 = scalar_select %p9384_p5, 1, 0 }
  0x1c   : > { %s10436_s22 = scalar_select %p9388_p6, 1, 0 }
  0x1d   : > { %10435 = sst [smem:[#allocation21_spill]] %s10434_s5  ;;  %p10408_p9 = scmp.eq.s32.totalorder %s9367_s3, 0 }
  0x1e   : > { %10437 = sst [smem:[#allocation22_spill]] %s10436_s22  ;;  %p9395_p10 = pnand %p6934_p7, %p514_p8 }
  0x1f   : > { %s9221_s1 = smov [#allocation5]   ;;  %s9222_s0 = smov [#allocation2]  }
  0x20   : > { %s10438_s23 = scalar_select %p9395_p10, 1, 0 }
  0x21   : > { %s566_s24 = sshll.u32 %s9221_s1, 4  ;;  %p8879_p11 = pneg %p9395_p10  ;;  %s567_s24 = int_to_ptr.vmem [resolvable:$true] %s566_s24 }
  0x22   : > { %s550_s4 = sshll.u32 %s9222_s0, 4  ;;  %s10440_s11 = sld [smem:[#allocation30_spill]]  ;;  %s9407_s4 = int_to_ptr.vmem [resolvable:$true] %s550_s4 }
  0x23   : > { %p9403_p12 = pnand %p10408_p9, %p8879_p11 }
  0x25   : > { %p9417_p0 = pneg %p9403_p12 }
  0x28   : > { %s9033_s29 = scalar_lea.hbm %s10440_s11, 8192 }
  0x29   : > { %p9034_p13 = scmp.ne.s32.totalorder %s10440_s11, %s9033_s29  ;;  %p9040_p3 = scmp.lt.u32.totalorder %s9033_s29, %s10440_s11 }
  0x2b   : > { %p9036_p1 = pnand %p9417_p0, %p9034_p13 }
  0x2d   : > { %p9037_p2 = pneg %p9036_p1 }
  0x2f   : > { %p9042_p4 = pnand %p9040_p3, %p9037_p2 }
  0x31   : > { %9045 = shalt.err (!%p9042_p4)
}
  0x32   : > { %s9046_s26 = scalar_lea.vmem %s567_s24, 8192  ;;  %p9054_p9 = scmp.lt.s32.totalorder %s567_s24, %s567_s24 }
  0x33   : > { %p9047_p7 = scmp.ne.s32.totalorder %s567_s24, %s9046_s26  ;;  %p9055_p6 = scmp.lt.s32.totalorder %s9046_s26, %s9046_s26 }
  0x35   : > { %p9049_p8 = pnand %p9047_p7, %p9417_p0  ;;  %p9056_p5 = por %p9055_p6, %p9054_p9 }
  0x37   : > { %p9050_p11 = pneg %p9049_p8 }
  0x39   : > { %p9057_p10 = pnand %p9056_p5, %p9050_p11 }
  0x3b   : > { %9060 = shalt.err (!%p9057_p10)
}
  0x3c   : > { %s10415_s2 = smov 128   ;;  %s10417_s30 = smov 8  }
  0x3d   : > { %8885 = dma.hbm_to_vmem [thread:$0]  (!%p9403_p12), %s10440_s11, 8192, %s567_s24, [#allocation6], %s10415_s2, %s10415_s2, %s10417_s30  }
  0x3e   : > { %s9061_s21 = scalar_lea.hbm %s10387_s9, 24576 }
  0x3f   : > { %p9062_p5 = scmp.ne.s32.totalorder %s10387_s9, %s9061_s21  ;;  %p9068_p10 = scmp.lt.u32.totalorder %s9061_s21, %s10387_s9 }
  0x41   : > { %p9064_p6 = pnand %p9062_p5, %p9417_p0 }
  0x43   : > { %p9065_p9 = pneg %p9064_p6 }
  0x45   : > { %p9070_p13 = pnand %p9068_p10, %p9065_p9 }
  0x47   : > { %9073 = shalt.err (!%p9070_p13)
}
  0x48   : > { %s9074_s24 = scalar_lea.vmem %s9407_s4, 24576  ;;  %p9082_p4 = scmp.lt.s32.totalorder %s9407_s4, %s9407_s4 }
  0x49   : > { %p9075_p1 = scmp.ne.s32.totalorder %s9407_s4, %s9074_s24  ;;  %p9083_p7 = scmp.lt.s32.totalorder %s9074_s24, %s9074_s24 }
  0x4b   : > { %p9077_p2 = pnand %p9075_p1, %p9417_p0  ;;  %p9084_p8 = por %p9083_p7, %p9082_p4 }
  0x4d   : > { %p9078_p3 = pneg %p9077_p2 }
  0x4f   : > { %p9085_p11 = pnand %p9084_p8, %p9078_p3 }
  0x51   : > { %9088 = shalt.err (!%p9085_p11)
}
  0x52   : > { %s9225_s8 = smov 384   ;;  %s9226_s21 = smov 24  }
  0x53   : > { %8882 = dma.hbm_to_vmem [thread:$0]  (!%p9403_p12), %s10387_s9, 24576, %s9407_s4, [#allocation3], %s9225_s8, %s9225_s8, %s9226_s21  }
  0x54   : > { %s9227_s27 = smov [#allocation7]   ;;  %s9228_s22 = smov [#allocation8]  }
  0x55   : > { %s582_s29 = sshll.u32 %s9227_s27, 4  ;;  %s598_s0 = sshll.u32 %s9228_s22, 4  ;;  %s583_s29 = int_to_ptr.vmem [resolvable:$true] %s582_s29  ;;  %s9459_s0 = int_to_ptr.vmem [resolvable:$true] %s598_s0 }
  0x56   : > { %s9089_s2 = scalar_lea.hbm %s10391_s13, 8192 }
  0x57   : > { %p9090_p5 = scmp.ne.s32.totalorder %s10391_s13, %s9089_s2  ;;  %p9096_p10 = scmp.lt.u32.totalorder %s9089_s2, %s10391_s13 }
  0x59   : > { %p9092_p6 = pnand %p9090_p5, %p9417_p0 }
  0x5b   : > { %p9093_p9 = pneg %p9092_p6 }
  0x5d   : > { %p9098_p13 = pnand %p9096_p10, %p9093_p9 }
  0x5f   : > { %9101 = shalt.err (!%p9098_p13)
}
  0x60   : > { %s9102_s8 = scalar_lea.vmem %s583_s29, 8192  ;;  %p9110_p4 = scmp.lt.s32.totalorder %s583_s29, %s583_s29 }
  0x61   : > { %p9103_p1 = scmp.ne.s32.totalorder %s583_s29, %s9102_s8  ;;  %p9111_p7 = scmp.lt.s32.totalorder %s9102_s8, %s9102_s8 }
  0x63   : > { %p9105_p2 = pnand %p9103_p1, %p9417_p0  ;;  %p9112_p8 = por %p9111_p7, %p9110_p4 }
  0x65   : > { %p9106_p3 = pneg %p9105_p2 }
  0x67   : > { %p9113_p11 = pnand %p9112_p8, %p9106_p3 }
  0x69   : > { %9116 = shalt.err (!%p9113_p11)
}
  0x6a   : > { %s10442_s11 = smov 8   ;;  %s10443_s30 = smov 128  }
  0x6b   : > { %8888 = dma.hbm_to_vmem [thread:$0]  (!%p9403_p12), %s10391_s13, 8192, %s583_s29, [#allocation6], %s10443_s30, %s10443_s30, %s10442_s11  }
  0x6c   : > { %s9117_s22 = scalar_lea.hbm %s10393_s15, 8192 }
  0x6d   : > { %p9118_p5 = scmp.ne.s32.totalorder %s10393_s15, %s9117_s22  ;;  %p9124_p10 = scmp.lt.u32.totalorder %s9117_s22, %s10393_s15 }
  0x6f   : > { %p9120_p6 = pnand %p9118_p5, %p9417_p0 }
  0x71   : > { %p9121_p9 = pneg %p9120_p6 }
  0x73   : > { %p9126_p13 = pnand %p9124_p10, %p9121_p9 }
  0x75   : > { %9129 = shalt.err (!%p9126_p13)
}
  0x76   : > { %s9130_s29 = scalar_lea.vmem %s9459_s0, 8192  ;;  %p9138_p4 = scmp.lt.s32.totalorder %s9459_s0, %s9459_s0 }
  0x77   : > { %p9131_p1 = scmp.ne.s32.totalorder %s9459_s0, %s9130_s29  ;;  %p9139_p7 = scmp.lt.s32.totalorder %s9130_s29, %s9130_s29 }
  0x79   : > { %p9133_p2 = pnand %p9131_p1, %p9417_p0  ;;  %p9140_p8 = por %p9139_p7, %p9138_p4 }
  0x7b   : > { %p9134_p3 = pneg %p9133_p2 }
  0x7d   : > { %p9141_p11 = pnand %p9140_p8, %p9134_p3 }
  0x7f   : > { %9144 = shalt.err (!%p9141_p11)
}
  0x80   : > { %8891 = dma.hbm_to_vmem [thread:$0]  (!%p9403_p12), %s10393_s15, 8192, %s9459_s0, [#allocation9], %s10443_s30, %s10443_s30, %s10442_s11  }
  0x81   : > { %p10444_p5 = scmp.ne.s32.totalorder %s10438_s23, 0 }
  0x82   : > { %p10445_p0 = scmp.eq.s32.totalorder (!%p10444_p5), %s9367_s3, 0 }
  0x83   : > { %636 = sbr.rel (%p10444_p5) target bundleno = 16760 (0x4178), region = 104 }
  0x8a   : > { %9190 = dma.done.wait (%p10445_p0), [#allocation3], 24576   ;;  %p10446_p6 = pmov %p10445_p0 }
  0x8b   : > { %p10447_p9 = pmov %p10445_p0 }
  0x8c   : > { %9192 = vsyncadd (%p10446_p6), [#allocation3], 4294942720 }
  0x8d   : > { %9194 = dma.done.wait (%p10447_p9), [#allocation6], 16384   ;;  %p10448_p10 = pmov %p10445_p0 }
  0x8e   : > { %p10449_p13 = pmov %p10445_p0 }
  0x8f   : > { %9196 = vsyncadd (%p10448_p10), [#allocation6], 4294950912 }
  0x90   : > { %9198 = dma.done.wait (%p10449_p13), [#allocation9], 8192   ;;  %p10450_p12 = pmov %p10445_p0 }
  0x91   : > { %p707_p1 = scmp.lt.s32.totalorder %s9367_s3, 1  ;;  %v9229_v0 = vmov 0.0|0.0   ;;  %vm9230_vm0 = vmmov 0   ;;  %v9231_v1 = vmov 0.0   ;;  %s10451_s11 = sld [smem:[#allocation23_spill]]  ;;  %v796_v6 = vld [vmem:[#allocation2 + $0x8] sm:$0xff] }
  0x92   : > { %9200 = vsyncadd (%p10450_p12), [#allocation9], 4294959104  ;;  %8298 = vmatprep.subr.bf16.mxu0 %v9229_v0  ;;  %7464 = vmatprep.mubr.msk.f32.mxu0 %vm9230_vm0, %v9231_v1  ;;  %s10452_s27 = sld [smem:[#allocation24_spill]]  ;;  %v799_v7 = vld [vmem:[#allocation2 + $0x20] sm:$0xff]  ;;  %v798_v10 = vld [vmem:[#allocation2 + $0x18] sm:$0xff]  ;;  %vm721_vm1 = vcmask 130048  }
  0x93   : > { %s708_s23 = scalar_select %p707_p1, %s9367_s3, 1  ;;  %924 = vmatprep.mubr.f32.mxu1 %v9231_v1  ;;  %v795_v8 = vld [vmem:[#allocation2] sm:$0xff]  ;;  %v8301_v9 = vpack.c.bf16 %v799_v7, %v796_v6  ;;  %v797_v11 = vld [vmem:[#allocation2 + $0x10] sm:$0xff]  ;;  %v800_v12 = vld [vmem:[#allocation2 + $0x28] sm:$0xff]  ;;  %vm1025_vm2 = vcmask 261120   ;;  %vm1103_vm3 = vcmask 64512  }
  0x94   : > { %v8303_v13 = vpack.c.bf16 %v798_v10, %v795_v8  ;;  %v8334_v14 = vpack.c.bf16 %v800_v12, %v797_v11  ;;  %v802_v15 = vld [vmem:[#allocation2 + $0x38] sm:$0xff]  ;;  %v805_v16 = vld [vmem:[#allocation2 + $0x50] sm:$0xff]  ;;  %v804_v19 = vld [vmem:[#allocation2 + $0x48] sm:$0xff]  ;;  %s10454_s29 = sld [smem:[#allocation25_spill]]  ;;  %s9234_s1 = smov 32  }
  0x95   : > { %s6946_s28 = sshll.u32 %s708_s23, 3  ;;  %v801_v17 = vld [vmem:[#allocation2 + $0x30] sm:$0xff]  ;;  %8302 = vmatprep.subr.bf16.mxu1 %v8301_v9  ;;  %v8305_v18 = vpack.c.bf16 %v805_v16, %v802_v15  ;;  %v803_v20 = vld [vmem:[#allocation2 + $0x40] sm:$0xff]  ;;  %v806_v21 = vld [vmem:[#allocation2 + $0x58] sm:$0xff]  ;;  %s9232_s23 = smov 96  }
  0x96   : > { %8304 = vmatpush1.bf16.msra.mxu1 %v8303_v13  ;;  %v8307_v22 = vpack.c.bf16 %v804_v19, %v801_v17  ;;  %v808_v23 = vld [vmem:[#allocation2 + $0x68] sm:$0xff]  ;;  %v811_v24 = vld [vmem:[#allocation2 + $0x80] sm:$0xff]  ;;  %v810_v27 = vld [vmem:[#allocation2 + $0x78] sm:$0xff]  ;;  %v8337_v28 = vpack.c.bf16 %v806_v21, %v803_v20  ;;  %v845_v20 = vlaneseq  ;;  %s10456_s2 = sld [smem:[#allocation28_spill]]  ;;  %s10457_s26 = sld [smem:[#allocation27_spill]] }
  0x97   : > { %s710_s30 = scalar_lea.vmem %s10451_s11, %s6946_s28  ;;  %8306 = vmatprep.subr.bf16.mxu1 %v8305_v18  ;;  %v8309_v25 = vpack.c.bf16 %v811_v24, %v808_v23  ;;  %v807_v26 = vld [vmem:[#allocation2 + $0x60] sm:$0xff]  ;;  %v814_v29 = vld [vmem:[#allocation2 + $0x98] sm:$0xff]  ;;  %v817_v30 = vld [vmem:[#allocation2 + $0xb0] sm:$0xff]  ;;  %s9233_s28 = smov 64  }
  0x98   : > { %s10453_s22 = smov %s10452_s27  ;;  %v712_v2 = vld [vmem:[%s10452_s27] sm:$0xff]  ;;  %v809_v31 = vld [vmem:[#allocation2 + $0x70] sm:$0xff]  ;;  %v812_v32 = vld [vmem:[#allocation2 + $0x88] sm:$0xff]  ;;  %v8311_v33 = vpack.c.bf16 %v810_v27, %v807_v26  ;;  %v8313_v34 = vpack.c.bf16 %v817_v30, %v814_v29  ;;  %v846_v21 = vshrl.u32 %v845_v20, 7  ;;  %s10458_s21 = sld [smem:[#allocation16_spill]] }
  0x99   : > { %v713_v3 = vld [vmem:[%s10453_s22 + $0x8] sm:$0xff]  ;;  %v711_v5 = vld [vmem:[%s710_s30] sm:$0xff]  ;;  %v813_v35 = vld [vmem:[#allocation2 + $0x90] sm:$0xff]  ;;  %v8340_v37 = vpack.c.bf16 %v812_v32, %v809_v31  ;;  %s10455_s30 = sld [smem:[#allocation26_spill]]  ;;  %s10460_s24 = sld [smem:[#allocation29_spill]] }
  0x9a   : > { %v8299_v4 = vpack.c.bf16 %v713_v3, %v712_v2  ;;  %8308 = vmatpush1.bf16.msra.mxu1 %v8307_v22  ;;  %v816_v36 = vld [vmem:[#allocation2 + $0xa8] sm:$0xff]  ;;  %v823_v39 = vld [vmem:[#allocation2 + $0xe0] sm:$0xff]  ;;  %v818_v41 = vld [vmem:[#allocation2 + $0xb8] sm:$0xff]  ;;  %v9561_v22 = vsub.s32 1, %v846_v21  ;;  %v9566_v24 = vsub.s32 0, %v846_v21  ;;  %s7070_s25 = sshll.u32 %s9367_s3, 7 }
  0x9b   : > { %8310 = vmatprep.subr.bf16.mxu1 %v8309_v25  ;;  %v820_v38 = vld [vmem:[#allocation2 + $0xc8] sm:$0xff]  ;;  %v815_v40 = vld [vmem:[#allocation2 + $0xa0] sm:$0xff]  ;;  %v8315_v42 = vpack.c.bf16 %v816_v36, %v813_v35  ;;  %v822_v45 = vld [vmem:[#allocation2 + $0xd8] sm:$0xff]  ;;  %v9568_v25 = vsub.s32 2, %v846_v21  ;;  %s10461_s11 = sld [smem:[#allocation31_spill]]  ;;  %s9235_s3 = smov [#allocation10]  }
  0x9c   : > { %8300 = vmatpush3.bf16.msra.mxu0 %v8299_v4  ;;  %v8317_v43 = vpack.c.bf16 %v823_v39, %v820_v38  ;;  %v819_v44 = vld [vmem:[#allocation2 + $0xc0] sm:$0xff]  ;;  %v8343_v46 = vpack.c.bf16 %v818_v41, %v815_v40  ;;  %v826_v47 = vld [vmem:[#allocation2 + $0xf8] sm:$0xff]  ;;  %v829_v48 = vld [vmem:[#allocation2 + $0x110] sm:$0xff] }
  0x9d   : > { %8333 = vmatprep.subr.bf16.mxu0 %v9229_v0  ;;  %v821_v49 = vld [vmem:[#allocation2 + $0xd0] sm:$0xff]  ;;  %v824_v50 = vld [vmem:[#allocation2 + $0xe8] sm:$0xff]  ;;  %v8319_v51 = vpack.c.bf16 %v822_v45, %v819_v44  ;;  %v8321_v52 = vpack.c.bf16 %v829_v48, %v826_v47  ;;  %v835_v57 = vld [vmem:[#allocation2 + $0x140] sm:$0xff] }
  0x9e   : > { %8312 = vmatpush1.bf16.msra.mxu1 %v8311_v33  ;;  %v825_v53 = vld [vmem:[#allocation2 + $0xf0] sm:$0xff]  ;;  %v828_v54 = vld [vmem:[#allocation2 + $0x108] sm:$0xff]  ;;  %v8346_v55 = vpack.c.bf16 %v824_v50, %v821_v49  ;;  %v827_v58 = vld [vmem:[#allocation2 + $0x100] sm:$0xff] }
  0x9f   : > { %7465 = vmatmul.mubr.msk.f32.vlgmr.msra.gmra.mrb[0].mxu0 %vm721_vm1, %v711_v5  ;;  %8314 = vmatprep.subr.bf16.mxu1 %v8313_v34  ;;  %v832_v56 = vld [vmem:[#allocation2 + $0x128] sm:$0xff]  ;;  %v830_v59 = vld [vmem:[#allocation2 + $0x118] sm:$0xff]  ;;  %v8323_v60 = vpack.c.bf16 %v828_v54, %v825_v53  ;;  %v831_v62 = vld [vmem:[#allocation2 + $0x120] sm:$0xff] }
  0xa0   : > { %8335 = vmatpush3.bf16.msra.mxu0 %v8334_v14  ;;  %7499 = vmatprep.mubr.msk.f32.mxu0 %vm9230_vm0, %v9231_v1  ;;  %v8325_v61 = vpack.c.bf16 %v835_v57, %v832_v56  ;;  %v834_v63 = vld [vmem:[#allocation2 + $0x138] sm:$0xff]  ;;  %v8349_v2 = vpack.c.bf16 %v830_v59, %v827_v58  ;;  %v841_v4 = vld [vmem:[#allocation2 + $0x170] sm:$0xff]  ;;  %v836_v6 = vld [vmem:[#allocation2 + $0x148] sm:$0xff] }
  0xa1   : > { %8336 = vmatprep.subr.bf16.mxu0 %v9229_v0  ;;  %v838_v3 = vld [vmem:[#allocation2 + $0x158] sm:$0xff]  ;;  %v833_v5 = vld [vmem:[#allocation2 + $0x130] sm:$0xff]  ;;  %v8327_v7 = vpack.c.bf16 %v834_v63, %v831_v62  ;;  %v840_v11 = vld [vmem:[#allocation2 + $0x168] sm:$0xff] }
  0xa2   : > { %8316 = vmatpush1.bf16.msra.mxu1 %v8315_v42  ;;  %v8329_v8 = vpack.c.bf16 %v841_v4, %v838_v3  ;;  %v8352_v9 = vpack.c.bf16 %v836_v6, %v833_v5  ;;  %v837_v10 = vld [vmem:[#allocation2 + $0x150] sm:$0xff]  ;;  %v839_v12 = vld [vmem:[#allocation2 + $0x160] sm:$0xff]  ;;  %v842_v14 = vld [vmem:[#allocation2 + $0x178] sm:$0xff] }
  0xa3   : > { %8318 = vmatprep.subr.bf16.mxu1 %v8317_v43  ;;  %v8331_v13 = vpack.c.bf16 %v840_v11, %v837_v10  ;;  %v8355_v15 = vpack.c.bf16 %v842_v14, %v839_v12  ;;  %v6947_v16 = vld [vmem:[%s10454_s29] ss:$0 sm:$0xff]  ;;  %v1002_v47 = vld [vmem:[#allocation5 + $0x8] sm:$0xff]  ;;  %v1007_v10 = vld [vmem:[#allocation5 + $0x30] sm:$0xff] }
  0xa4   : > { %8338 = vmatpush3.bf16.msra.mxu0 %v8337_v28  ;;  %v843_v23 = vld [vmem:[%s10388_s10] sm:$0x7]  ;;  %v1008_v12 = vld [vmem:[#allocation5 + $0x38] sm:$0xff] }
  0xa5   : > { %8339 = vmatprep.subr.bf16.mxu0 %v9229_v0  ;;  %v852_v26 = vrot.slane %v843_v23, %v9561_v22  ;;  %v848_v29 = vrot.slane %v843_v23, %v9566_v24  ;;  %v856_v32 = vrot.slane %v843_v23, %v9568_v25 }
  0xa6   : > { %8320 = vmatpush1.bf16.msra.mxu1 %v8319_v51  ;;  %v1003_v51 = vld [vmem:[#allocation5 + $0x10] sm:$0xff] }
  0xa7   : > { %8322 = vmatprep.subr.bf16.mxu1 %v8321_v52  ;;  %v1004_v52 = vld [vmem:[#allocation5 + $0x18] sm:$0xff] }
  0xa8   : > { %8341 = vmatpush3.bf16.msra.mxu0 %v8340_v37  ;;  %v8361_v53 = vpack.c.bf16 %v1004_v52, %v1003_v51 }
  0xa9   : > { %8342 = vmatprep.subr.bf16.mxu0 %v9229_v0 }
  0xaa   : > { %8324 = vmatpush1.bf16.msra.mxu1 %v8323_v60 }
  0xab   : > { %8326 = vmatprep.subr.bf16.mxu1 %v8325_v61 }
  0xac   : > { %8344 = vmatpush3.bf16.msra.mxu0 %v8343_v46  ;;  %v1001_v46 = vld [vmem:[#allocation5] sm:$0xff] }
  0xad   : > { %8345 = vmatprep.subr.bf16.mxu0 %v9229_v0  ;;  %v8358_v49 = vpack.c.bf16 %v1002_v47, %v1001_v46 }
  0xae   : > { %8328 = vmatpush1.bf16.msra.mxu1 %v8327_v7 }
  0xaf   : > { %8330 = vmatprep.subr.bf16.mxu1 %v8329_v8  ;;  %v1005_v8 = vld [vmem:[#allocation5 + $0x20] sm:$0xff] }
  0xb0   : > { %8347 = vmatpush3.bf16.msra.mxu0 %v8346_v55 }
  0xb1   : > { %8348 = vmatprep.subr.bf16.mxu0 %v9229_v0 }
  0xb2   : > { %8332 = vmatpush1.bf16.msra.mxu1 %v8331_v13  ;;  %v8367_v13 = vpack.c.bf16 %v1008_v12, %v1007_v10 }
  0xb3   : > { %8363 = vmatprep.subr.bf16.mxu1 %v9229_v0 }
  0xb4   : > { %8350 = vmatpush3.bf16.msra.mxu0 %v8349_v2 }
  0xb5   : > { %8351 = vmatprep.subr.bf16.mxu0 %v9229_v0 }
  0xb8   : > { %8353 = vmatpush3.bf16.msra.mxu0 %v8352_v9  ;;  %v1006_v9 = vld [vmem:[#allocation5 + $0x28] sm:$0xff] }
  0xb9   : > { %8354 = vmatprep.subr.bf16.mxu0 %v9229_v0  ;;  %v8364_v11 = vpack.c.bf16 %v1006_v9, %v1005_v8 }
  0xbc   : > { %8356 = vmatpush3.bf16.msra.mxu0 %v8355_v15 }
  0xbd   : > { %7502 = vmatprep.subr.mxu0 %v9231_v1 }
 0x172   : > { %v791_v17 = vpop.f32.mrb[0].mxu0 }
 0x173   : > { %v9553_v18 = vadd.f32 %v6947_v16, %v791_v17  ;;  %v7466_v19 = vpop.f32.mrb[1].mxu0 }
 0x175   : > { %925 = vmatmul.mubr.f32.vlgmr.msra.gmra.mrb[0].mxu1 %v9553_v18  ;;  %7500 = vmatmul.mubr.f32.vlgmr.msra.gmra.mrb[2].mxu0 %v9553_v18 }
 0x176   : > { %7504 = vmatprep.mubr.msk.f32.mxu0 %vm9230_vm0, %v9231_v1  ;;  %7541 = vmatprep.mubr.msk.f32.mxu1 %vm9230_vm0, %v9231_v1 }
 0x177   : > { %8365 = vmatpush3.bf16.msra.mxu1 %v8364_v11 }
 0x178   : > { %8366 = vmatprep.subr.bf16.mxu1 %v9229_v0 }
 0x17b   : > { %8368 = vmatpush3.bf16.msra.mxu1 %v8367_v13 }
 0x17c   : > { %8369 = vmatprep.subr.bf16.mxu1 %v9229_v0 }
 0x248   : > { %v926_v27 = vpop.f32.mrb[0].mxu1  ;;  %v997_v28 = vpop.f32.mrb[2].mxu0 }
 0x249   : > { %v928_v30 = vpop.f32.mrb[1].mxu1  ;;  %v7501_v31 = vpop.f32.mrb[3].mxu0  ;;  %v9579_v34 = vadd.f32 %v926_v27, %v848_v29  ;;  %v9582_v35 = vadd.f32 %v997_v28, %v856_v32 }
 0x24a   : > { %v9573_v33 = vadd.f32 %v928_v30, %v852_v26 }
 0x24c   : > { %1264 = vrot.lane.b32.xlu1 %v9573_v33, %s9232_s23  ;;  %7503 = vmatpush3.xpose.msk.msra.mxu0 %vm1025_vm2, %v9573_v33 }
 0x24d   : > { %7507 = vmatprep.subr.mxu0 %v9231_v1 }
 0x24f   : > { %7505 = vmatmul.mubr.msk.f32.vlgmr.msra.gmra.mrb[4].mxu0 %vm1025_vm2, %v9579_v34 }
 0x250   : > { %1262 = vrot.lane.b32.xlu1 %v9579_v34, %s9232_s23  ;;  %7508 = vmatpush3.msra.mxu0 %v9582_v35 }
 0x251   : > { %7509 = vmatprep.mubr.msk.f32.mxu0 %vm9230_vm0, %v9231_v1  ;;  %8357 = vmatprep.subr.bf16.mxu0 %v9229_v0 }
 0x2be   : > { %v1265_v54 = vpop.permute.xlu1 %1264 }
 0x2c2   : > { %v1263_v57 = vpop.permute.xlu1 %1262 }
 0x322   : > { %v1098_v36 = vpop.f32.mrb[4].mxu0 }
 0x323   : > { %v1102_v37 = vmul.f32 0.17677669, %v1098_v36  ;;  %v7506_v38 = vpop.f32.mrb[5].mxu0 }
 0x324   : > { %v1010_v38 = vld [vmem:[#allocation5 + $0x48] sm:$0xff] }
 0x325   : > { %v1104_v39 = vsel %vm1103_vm3, %v1102_v37, -inf }
 0x326   : > { %1105 = vmax.xlane.f32.xlu0 %v1104_v39  ;;  %v1011_v39 = vld [vmem:[#allocation5 + $0x50] sm:$0xff] }
 0x3b3   : > { %v1106_v40 = vpop.xlane.xlu0 %1105 }
 0x3b4   : > { %v1107_v41 = vsub.f32 %v1102_v37, %v1106_v40  ;;  %v1009_v37 = vld [vmem:[#allocation5 + $0x40] sm:$0xff] }
 0x3b5   : > { %v8370_v40 = vpack.c.bf16 %v1010_v38, %v1009_v37  ;;  %v2018_v37 = vld [vmem:[#allocation7 + $0x30] sm:$0xff]  ;;  %v2019_v38 = vld [vmem:[#allocation7 + $0x38] sm:$0xff] }
 0x3b6   : > { %v1108_v42 = vmul.f32 1.442695, %v1107_v41  ;;  %v1012_v41 = vld [vmem:[#allocation5 + $0x58] sm:$0xff] }
 0x3b8   : > { %8951 = vpow2.f32 %v1108_v42  ;;  %v8373_v42 = vpack.c.bf16 %v1012_v41, %v1011_v39  ;;  %v8391_v39 = vpack.c.bf16 %v2019_v38, %v2018_v37  ;;  %v2021_v41 = vld [vmem:[#allocation7 + $0x48] sm:$0xff]  ;;  %v2232_v37 = vld [vmem:[#allocation2 + $0x1a0] sm:$0xff] }
 0x3b9   : > { %v2228_v38 = vld [vmem:[#allocation2 + $0x180] sm:$0xff] }
 0x3c2   : > { %v8952_v43 = vpop.eup %8951 }
 0x3c3   : > { %v1110_v44 = vsel %vm1103_vm3, %v8952_v43, 0.0 }
 0x3c4   : > { %1111 = vadd.xlane.f32.xlu0 %v1110_v44 }
 0x451   : > { %v1112_v45 = vpop.xlane.xlu0 %1111 }
 0x452   : > { %8953 = vrcp.f32 %v1112_v45 }
 0x45c   : > { %v8954_v48 = vpop.eup %8953 }
 0x45d   : > { %v1114_v50 = vmul.f32 %v8954_v48, %v8952_v43  ;;  %v6949_v43 = vld [vmem:[%s10390_s12] ss:$0 sm:$0xff] }
 0x45f   : > { %7510 = vmatmul.mubr.msk.f32.vlgmr.msra.gmra.mrb[6].mxu0 %vm1103_vm3, %v1114_v50 }
 0x460   : > { %8359 = vmatpush3.bf16.msra.mxu0 %v8358_v49  ;;  %7520 = vmatprep.mubr.msk.f32.mxu0 %vm9230_vm0, %v9231_v1 }
 0x461   : > { %8360 = vmatprep.subr.bf16.mxu0 %v9229_v0 }
 0x464   : > { %8362 = vmatpush3.bf16.msra.mxu0 %v8361_v53 }
 0x465   : > { %7523 = vmatprep.subr.mxu0 %v9231_v1 }
 0x532   : > { %v1184_v55 = vpop.f32.mrb[6].mxu0 }
 0x533   : > { %v7511_v56 = vpop.f32.mrb[7].mxu0  ;;  %7521 = vmatmul.mubr.msk.f32.vlgmr.msra.gmra.mrb[8].mxu0 %vm1025_vm2, %v1184_v55 }
 0x534   : > { %7524 = vmatpush3.xpose.msk.msra.mxu0 %vm1025_vm2, %v1265_v54  ;;  %7525 = vmatprep.mubr.msk.f32.mxu0 %vm9230_vm0, %v9231_v1 }
 0x535   : > { %7528 = vmatprep.subr.mxu0 %v9231_v1 }
 0x537   : > { %7526 = vmatmul.mubr.msk.f32.vlgmr.msra.gmra.mrb[10].mxu0 %vm1025_vm2, %v1263_v57 }
 0x538   : > { %7530 = vmatprep.mubr.msk.f32.mxu0 %vm9230_vm0, %v9231_v1 }
 0x606   : > { %v9607_v58 = vpop.f32.mrb[8].mxu0 }
 0x607   : > { %v7522_v59 = vpop.f32.mrb[9].mxu0  ;;  %v1261_v44 = vadd.f32 %v6949_v43, %v9607_v58 }
 0x60a   : > { %v1336_v60 = vpop.f32.mrb[10].mxu0 }
 0x60b   : > { %v1340_v61 = vmul.f32 0.17677669, %v1336_v60  ;;  %v7527_v62 = vpop.f32.mrb[11].mxu0 }
 0x60d   : > { %v1341_v63 = vsel %vm1103_vm3, %v1340_v61, -inf }
 0x60e   : > { %1342 = vmax.xlane.f32.xlu0 %v1341_v63 }
 0x624   : > { %1353 = vrot.lane.b32.xlu0 %v9582_v35, %s9232_s23 }
 0x628   : > { %1505 = vrot.lane.b32.xlu0 %v9573_v33, %s9233_s28 }
 0x62c   : > { %1503 = vrot.lane.b32.xlu0 %v9579_v34, %s9233_s28 }
 0x69b   : > { %v1343_v2 = vpop.xlane.xlu0 %1342 }
 0x69c   : > { %v1344_v3 = vsub.f32 %v1340_v61, %v1343_v2  ;;  %v1013_v2 = vld [vmem:[#allocation5 + $0x60] sm:$0xff] }
 0x69e   : > { %v1345_v4 = vmul.f32 1.442695, %v1344_v3  ;;  %v1014_v3 = vld [vmem:[#allocation5 + $0x68] sm:$0xff] }
 0x69f   : > { %v1354_v5 = vpop.permute.xlu0 %1353 }
 0x6a0   : > { %8955 = vpow2.f32 %v1345_v4  ;;  %7529 = vmatpush3.msra.mxu0 %v1354_v5  ;;  %v1015_v4 = vld [vmem:[#allocation5 + $0x70] sm:$0xff]  ;;  %v8376_v5 = vpack.c.bf16 %v1014_v3, %v1013_v2  ;;  %v2115_v2 = vld [vmem:[#allocation8 + $0x48] sm:$0xff] }
 0x6a1   : > { %7544 = vmatprep.subr.mxu0 %v9231_v1 }
 0x6a3   : > { %v1506_v16 = vpop.permute.xlu0 %1505 }
 0x6a7   : > { %v1504_v19 = vpop.permute.xlu0 %1503 }
 0x6aa   : > { %v8956_v6 = vpop.eup %8955 }
 0x6ab   : > { %v1347_v7 = vsel %vm1103_vm3, %v8956_v6, 0.0 }
 0x6ac   : > { %1348 = vadd.xlane.f32.xlu1 %v1347_v7 }
 0x6bd   : > { %1593 = vrot.lane.b32.xlu1 %v9582_v35, %s9233_s28 }
 0x6c1   : > { %1745 = vrot.lane.b32.xlu1 %v9573_v33, %s9234_s1 }
 0x739   : > { %v1349_v14 = vpop.xlane.xlu1 %1348 }
 0x73a   : > { %8957 = vrcp.f32 %v1349_v14 }
 0x73d   : > { %v1594_v20 = vpop.permute.xlu1 %1593 }
 0x741   : > { %v1746_v47 = vpop.permute.xlu1 %1745 }
 0x744   : > { %v8958_v15 = vpop.eup %8957 }
 0x745   : > { %v1351_v17 = vmul.f32 %v8958_v15, %v8956_v6  ;;  %v1016_v6 = vld [vmem:[#allocation5 + $0x78] sm:$0xff] }
 0x746   : > { %v8379_v7 = vpack.c.bf16 %v1016_v6, %v1015_v4  ;;  %v2116_v4 = vld [vmem:[#allocation8 + $0x50] sm:$0xff] }
 0x747   : > { %7531 = vmatmul.mubr.msk.f32.vlgmr.msra.gmra.mrb[12].mxu0 %vm1103_vm3, %v1351_v17 }
 0x748   : > { %7545 = vmatpush3.xpose.msk.msra.mxu0 %vm1025_vm2, %v1506_v16  ;;  %7546 = vmatprep.mubr.msk.f32.mxu0 %vm9230_vm0, %v9231_v1 }
 0x749   : > { %7549 = vmatprep.subr.mxu0 %v9231_v1 }
 0x74b   : > { %7547 = vmatmul.mubr.msk.f32.vlgmr.msra.gmra.mrb[14].mxu0 %vm1025_vm2, %v1504_v19 }
 0x74c   : > { %7550 = vmatpush3.msra.mxu0 %v1594_v20  ;;  %7551 = vmatprep.mubr.msk.f32.mxu0 %vm9230_vm0, %v9231_v1  ;;  %v2012_v20 = vld [vmem:[#allocation7] sm:$0xff] }
 0x74d   : > { %7565 = vmatprep.subr.mxu0 %v9231_v1 }
 0x81a   : > { %v1425_v21 = vpop.f32.mrb[12].mxu0 }
 0x81b   : > { %v7532_v23 = vpop.f32.mrb[13].mxu0  ;;  %7542 = vmatmul.mubr.msk.f32.vlgmr.msra.gmra.mrb[2].mxu1 %vm1025_vm2, %v1425_v21  ;;  %v2013_v21 = vld [vmem:[#allocation7 + $0x8] sm:$0xff] }
 0x81c   : > { %7562 = vmatprep.mubr.msk.f32.mxu1 %vm9230_vm0, %v9231_v1  ;;  %8371 = vmatpush3.bf16.msra.mxu1 %v8370_v40  ;;  %v2014_v23 = vld [vmem:[#allocation7 + $0x10] sm:$0xff]  ;;  %v2020_v40 = vld [vmem:[#allocation7 + $0x40] sm:$0xff] }
 0x81d   : > { %8372 = vmatprep.subr.bf16.mxu1 %v9229_v0  ;;  %v8394_v43 = vpack.c.bf16 %v2021_v41, %v2020_v40  ;;  %v2231_v40 = vld [vmem:[#allocation2 + $0x198] sm:$0xff]  ;;  %v2230_v41 = vld [vmem:[#allocation2 + $0x190] sm:$0xff] }
 0x81e   : > { %v1577_v26 = vpop.f32.mrb[14].mxu0 }
 0x81f   : > { %v1581_v27 = vmul.f32 0.17677669, %v1577_v26  ;;  %v7548_v28 = vpop.f32.mrb[15].mxu0  ;;  %v8382_v26 = vpack.c.bf16 %v2013_v21, %v2012_v20  ;;  %v2121_v20 = vld [vmem:[#allocation8 + $0x78] sm:$0xff] }
 0x820   : > { %8374 = vmatpush3.bf16.msra.mxu1 %v8373_v42  ;;  %v2022_v42 = vld [vmem:[#allocation7 + $0x50] sm:$0xff] }
 0x821   : > { %v1582_v29 = vsel %vm1103_vm3, %v1581_v27, -inf  ;;  %8375 = vmatprep.subr.bf16.mxu1 %v9229_v0 }
 0x822   : > { %1583 = vmax.xlane.f32.xlu0 %v1582_v29  ;;  %v2016_v29 = vld [vmem:[#allocation7 + $0x20] sm:$0xff] }
 0x8af   : > { %v1584_v30 = vpop.xlane.xlu0 %1583 }
 0x8b0   : > { %v1585_v31 = vsub.f32 %v1581_v27, %v1584_v30  ;;  %v2015_v27 = vld [vmem:[#allocation7 + $0x18] sm:$0xff]  ;;  %v2017_v30 = vld [vmem:[#allocation7 + $0x28] sm:$0xff] }
 0x8b1   : > { %v8385_v28 = vpack.c.bf16 %v2015_v27, %v2014_v23  ;;  %v6968_v23 = vld [vmem:[%s10392_s14] ss:$0 sm:$0xff] }
 0x8b2   : > { %v1586_v32 = vmul.f32 1.442695, %v1585_v31  ;;  %v8388_v31 = vpack.c.bf16 %v2017_v30, %v2016_v29  ;;  %v6969_v30 = vld [vmem:[%s10394_s16] ss:$0 sm:$0xff] }
 0x8b4   : > { %8959 = vpow2.f32 %v1586_v32 }
 0x8be   : > { %v8960_v33 = vpop.eup %8959 }
 0x8bf   : > { %v1588_v36 = vsel %vm1103_vm3, %v8960_v33, 0.0 }
 0x8c0   : > { %1589 = vadd.xlane.f32.xlu1 %v1588_v36 }
 0x8d1   : > { %1743 = vrot.lane.b32.xlu1 %v9579_v34, %s9234_s1 }
 0x8ee   : > { %v1498_v45 = vpop.f32.mrb[2].mxu1 }
 0x8ef   : > { %v1502_v34 = vadd.f32 %v1498_v45, %v1261_v44  ;;  %v7543_v46 = vpop.f32.mrb[3].mxu1  ;;  %v2023_v44 = vld [vmem:[#allocation7 + $0x58] sm:$0xff] }
 0x8f0   : > { %v8397_v45 = vpack.c.bf16 %v2023_v44, %v2022_v42  ;;  %v2025_v46 = vld [vmem:[#allocation7 + $0x68] sm:$0xff] }
 0x8f1   : > { %v2233_v42 = vld [vmem:[#allocation2 + $0x1a8] sm:$0xff] }
 0x8f2   : > { %v8462_v44 = vpack.c.bf16 %v2233_v42, %v2230_v41  ;;  %v2269_v41 = vld [vmem:[#allocation2 + $0x2c8] sm:$0xff]  ;;  %v2271_v42 = vld [vmem:[#allocation2 + $0x2d8] sm:$0xff] }
 0x94d   : > { %v1590_v48 = vpop.xlane.xlu1 %1589 }
 0x94e   : > { %8961 = vrcp.f32 %v1590_v48  ;;  %v2026_v48 = vld [vmem:[#allocation7 + $0x70] sm:$0xff] }
 0x951   : > { %v1744_v51 = vpop.permute.xlu1 %1743 }
 0x958   : > { %v8962_v49 = vpop.eup %8961 }
 0x959   : > { %v1592_v50 = vmul.f32 %v8962_v49, %v8960_v33  ;;  %v2027_v49 = vld [vmem:[#allocation7 + $0x78] sm:$0xff] }
 0x95b   : > { %7552 = vmatmul.mubr.msk.f32.vlgmr.msra.gmra.mrb[16].mxu0 %vm1103_vm3, %v1592_v50  ;;  %v8403_v50 = vpack.c.bf16 %v2027_v49, %v2026_v48  ;;  %v2237_v48 = vld [vmem:[#allocation2 + $0x1c8] sm:$0xff]  ;;  %v2236_v49 = vld [vmem:[#allocation2 + $0x1c0] sm:$0xff] }
 0x95c   : > { %7566 = vmatpush3.xpose.msk.msra.mxu0 %vm1025_vm2, %v1746_v47  ;;  %7567 = vmatprep.mubr.msk.f32.mxu0 %vm9230_vm0, %v9231_v1 }
 0x95d   : > { %7570 = vmatprep.subr.mxu0 %v9231_v1 }
 0x95f   : > { %7568 = vmatmul.mubr.msk.f32.vlgmr.msra.gmra.mrb[18].mxu0 %vm1025_vm2, %v1744_v51  ;;  %v2106_v51 = vld [vmem:[#allocation8] sm:$0xff] }
 0x960   : > { %7572 = vmatprep.mubr.msk.f32.mxu0 %vm9230_vm0, %v9231_v1 }
 0xa2e   : > { %v1665_v52 = vpop.f32.mrb[16].mxu0 }
 0xa2f   : > { %v7553_v53 = vpop.f32.mrb[17].mxu0  ;;  %7563 = vmatmul.mubr.msk.f32.vlgmr.msra.gmra.mrb[4].mxu1 %vm1025_vm2, %v1665_v52  ;;  %v2107_v52 = vld [vmem:[#allocation8 + $0x8] sm:$0xff] }
 0xa30   : > { %7583 = vmatprep.mubr.msk.f32.mxu1 %vm9230_vm0, %v9231_v1  ;;  %8377 = vmatpush3.bf16.msra.mxu1 %v8376_v5  ;;  %v2108_v53 = vld [vmem:[#allocation8 + $0x10] sm:$0xff]  ;;  %v2117_v5 = vld [vmem:[#allocation8 + $0x58] sm:$0xff] }
 0xa31   : > { %8378 = vmatprep.subr.bf16.mxu1 %v9229_v0  ;;  %v8421_v6 = vpack.c.bf16 %v2117_v5, %v2116_v4  ;;  %v2247_v4 = vld [vmem:[#allocation2 + $0x218] sm:$0xff]  ;;  %v2250_v5 = vld [vmem:[#allocation2 + $0x230] sm:$0xff] }
 0xa32   : > { %v1817_v54 = vpop.f32.mrb[18].mxu0 }
 0xa33   : > { %v1821_v55 = vmul.f32 0.17677669, %v1817_v54  ;;  %v7569_v56 = vpop.f32.mrb[19].mxu0  ;;  %v8406_v54 = vpack.c.bf16 %v2107_v52, %v2106_v51 }
 0xa34   : > { %8380 = vmatpush3.bf16.msra.mxu1 %v8379_v7  ;;  %v2118_v7 = vld [vmem:[#allocation8 + $0x60] sm:$0xff] }
 0xa35   : > { %v1822_v57 = vsel %vm1103_vm3, %v1821_v55, -inf  ;;  %8405 = vmatprep.subr.bf16.mxu1 %v9229_v0 }
 0xa36   : > { %1823 = vmax.xlane.f32.xlu0 %v1822_v57  ;;  %v2110_v57 = vld [vmem:[#allocation8 + $0x20] sm:$0xff] }
 0xa4c   : > { %1833 = vrot.lane.b32.xlu0 %v9582_v35, %s9234_s1 }
 0xac3   : > { %v1824_v58 = vpop.xlane.xlu0 %1823 }
 0xac4   : > { %v1825_v59 = vsub.f32 %v1821_v55, %v1824_v58  ;;  %v2109_v55 = vld [vmem:[#allocation8 + $0x18] sm:$0xff]  ;;  %v2111_v58 = vld [vmem:[#allocation8 + $0x28] sm:$0xff] }
 0xac5   : > { %v8409_v56 = vpack.c.bf16 %v2109_v55, %v2108_v53  ;;  %v2241_v53 = vld [vmem:[#allocation2 + $0x1e8] sm:$0xff]  ;;  %v2240_v55 = vld [vmem:[#allocation2 + $0x1e0] sm:$0xff] }
 0xac6   : > { %v1826_v60 = vmul.f32 1.442695, %v1825_v59  ;;  %v8412_v59 = vpack.c.bf16 %v2111_v58, %v2110_v57  ;;  %v2243_v57 = vld [vmem:[#allocation2 + $0x1f8] sm:$0xff]  ;;  %v2242_v58 = vld [vmem:[#allocation2 + $0x1f0] sm:$0xff] }
 0xac7   : > { %v1834_v61 = vpop.permute.xlu0 %1833 }
 0xac8   : > { %8963 = vpow2.f32 %v1826_v60  ;;  %7571 = vmatpush3.msra.mxu0 %v1834_v61  ;;  %v2112_v60 = vld [vmem:[#allocation8 + $0x30] sm:$0xff]  ;;  %v2113_v61 = vld [vmem:[#allocation8 + $0x38] sm:$0xff] }
 0xac9   : > { %8381 = vmatprep.subr.bf16.mxu0 %v9229_v0 }
 0xad2   : > { %v8964_v62 = vpop.eup %8963 }
 0xad3   : > { %v1828_v63 = vsel %vm1103_vm3, %v8964_v62, 0.0 }
 0xad4   : > { %1829 = vadd.xlane.f32.xlu1 %v1828_v63  ;;  %v2114_v63 = vld [vmem:[#allocation8 + $0x40] sm:$0xff] }
 0xad5   : > { %v8418_v3 = vpack.c.bf16 %v2115_v2, %v2114_v63 }
 0xb02   : > { %v1738_v35 = vpop.f32.mrb[4].mxu1 }
 0xb03   : > { %v1742_v8 = vadd.f32 %v1738_v35, %v1502_v34  ;;  %v7564_v9 = vpop.f32.mrb[5].mxu1  ;;  %v2024_v34 = vld [vmem:[#allocation7 + $0x60] sm:$0xff]  ;;  %v2119_v35 = vld [vmem:[#allocation8 + $0x68] sm:$0xff] }
 0xb04   : > { %v8400_v47 = vpack.c.bf16 %v2025_v46, %v2024_v34  ;;  %v2238_v34 = vld [vmem:[#allocation2 + $0x1d0] sm:$0xff] }
 0xb05   : > { %v2234_v46 = vld [vmem:[#allocation2 + $0x1b0] sm:$0xff] }
 0xb06   : > { %v8435_v51 = vpack.c.bf16 %v2237_v48, %v2234_v46  ;;  %v2270_v46 = vld [vmem:[#allocation2 + $0x2d0] sm:$0xff]  ;;  %v2272_v48 = vld [vmem:[#allocation2 + $0x2e0] sm:$0xff] }
 0xb61   : > { %v1830_v10 = vpop.xlane.xlu1 %1829 }
 0xb62   : > { %8965 = vrcp.f32 %v1830_v10 }
 0xb6c   : > { %v8966_v11 = vpop.eup %8965 }
 0xb6d   : > { %v1832_v12 = vmul.f32 %v8966_v11, %v8964_v62  ;;  %v8415_v62 = vpack.c.bf16 %v2113_v61, %v2112_v60  ;;  %v8439_v60 = vpack.c.bf16 %v2243_v57, %v2240_v55 }
 0xb6f   : > { %7573 = vmatmul.mubr.msk.f32.vlgmr.msra.gmra.mrb[20].mxu0 %vm1103_vm3, %v1832_v12 }
 0xb70   : > { %7618 = vmatprep.mubr.msk.f32.mxu0 %vm9230_vm0, %v9231_v1  ;;  %8383 = vmatpush3.bf16.msra.mxu0 %v8382_v26 }
 0xb71   : > { %8384 = vmatprep.subr.bf16.mxu0 %v9229_v0 }
 0xb74   : > { %8386 = vmatpush3.bf16.msra.mxu0 %v8385_v28 }
 0xb75   : > { %8387 = vmatprep.subr.bf16.mxu0 %v9229_v0 }
 0xb78   : > { %8389 = vmatpush3.bf16.msra.mxu0 %v8388_v31 }
 0xb79   : > { %8390 = vmatprep.subr.bf16.mxu0 %v9229_v0 }
 0xb7c   : > { %8392 = vmatpush3.bf16.msra.mxu0 %v8391_v39 }
 0xb7d   : > { %8393 = vmatprep.subr.bf16.mxu0 %v9229_v0 }
 0xb80   : > { %8395 = vmatpush3.bf16.msra.mxu0 %v8394_v43  ;;  %v8431_v43 = vpack.c.bf16 %v2231_v40, %v2228_v38  ;;  %v2264_v38 = vld [vmem:[#allocation2 + $0x2a0] sm:$0xff]  ;;  %v2266_v40 = vld [vmem:[#allocation2 + $0x2b0] sm:$0xff] }
 0xb81   : > { %8396 = vmatprep.subr.bf16.mxu0 %v9229_v0 }
 0xb84   : > { %8398 = vmatpush3.bf16.msra.mxu0 %v8397_v45  ;;  %v2235_v45 = vld [vmem:[#allocation2 + $0x1b8] sm:$0xff] }
 0xb85   : > { %8399 = vmatprep.subr.bf16.mxu0 %v9229_v0 }
 0xb88   : > { %8401 = vmatpush3.bf16.msra.mxu0 %v8400_v47  ;;  %v8433_v47 = vpack.c.bf16 %v2238_v34, %v2235_v45  ;;  %v8480_v45 = vpack.c.bf16 %v2269_v41, %v2266_v40 }
 0xb89   : > { %8402 = vmatprep.subr.bf16.mxu0 %v9229_v0 }
 0xb8c   : > { %8404 = vmatpush3.bf16.msra.mxu0 %v8403_v50  ;;  %v2239_v50 = vld [vmem:[#allocation2 + $0x1d8] sm:$0xff] }
 0xb8d   : > { %v8465_v52 = vpack.c.bf16 %v2239_v50, %v2236_v49  ;;  %v2275_v49 = vld [vmem:[#allocation2 + $0x2f8] sm:$0xff] }
 0xc42   : > { %v1905_v13 = vpop.f32.mrb[20].mxu0 }
 0xc43   : > { %v7574_v14 = vpop.f32.mrb[21].mxu0  ;;  %7584 = vmatmul.mubr.msk.f32.vlgmr.msra.gmra.mrb[6].mxu1 %vm1025_vm2, %v1905_v13  ;;  %v6966_v13 = vld [vmem:[%s10395_s17] ss:$0 sm:$0xff] }
 0xc44   : > { %7653 = vmatprep.mubr.msk.f32.mxu1 %vm9230_vm0, %v9231_v1  ;;  %8407 = vmatpush3.bf16.msra.mxu1 %v8406_v54  ;;  %v2244_v54 = vld [vmem:[#allocation2 + $0x200] sm:$0xff] }
 0xc45   : > { %8408 = vmatprep.subr.bf16.mxu1 %v9229_v0 }
 0xc48   : > { %8410 = vmatpush3.bf16.msra.mxu1 %v8409_v56  ;;  %v8437_v56 = vpack.c.bf16 %v2244_v54, %v2241_v53 }
 0xc49   : > { %8411 = vmatprep.subr.bf16.mxu1 %v9229_v0 }
 0xc4c   : > { %8413 = vmatpush3.bf16.msra.mxu1 %v8412_v59  ;;  %v2245_v59 = vld [vmem:[#allocation2 + $0x208] sm:$0xff] }
 0xc4d   : > { %8414 = vmatprep.subr.bf16.mxu1 %v9229_v0  ;;  %v8468_v61 = vpack.c.bf16 %v2245_v59, %v2242_v58  ;;  %v6971_v58 = vld [vmem:[%s10398_s20] ss:$0 sm:$0xff] }
 0xc50   : > { %8416 = vmatpush3.bf16.msra.mxu1 %v8415_v62 }
 0xc51   : > { %8417 = vmatprep.subr.bf16.mxu1 %v9229_v0 }
 0xc54   : > { %8419 = vmatpush3.bf16.msra.mxu1 %v8418_v3 }
 0xc55   : > { %8420 = vmatprep.subr.bf16.mxu1 %v9229_v0 }
 0xc58   : > { %8422 = vmatpush3.bf16.msra.mxu1 %v8421_v6  ;;  %v8441_v6 = vpack.c.bf16 %v2250_v5, %v2247_v4 }
 0xc59   : > { %8423 = vmatprep.subr.bf16.mxu1 %v9229_v0 }
 0xd16   : > { %v1978_v15 = vpop.f32.mrb[6].mxu1 }
 0xd17   : > { %v1982_v16 = vadd.f32 %v1978_v15, %v1742_v8  ;;  %v7585_v17 = vpop.f32.mrb[7].mxu1  ;;  %v8424_v8 = vpack.c.bf16 %v2119_v35, %v2118_v7  ;;  %v6967_v15 = vld [vmem:[%s10396_s18] ss:$0 sm:$0xff]  ;;  %v2246_v7 = vld [vmem:[#allocation2 + $0x210] sm:$0xff]  ;;  %v2249_v35 = vld [vmem:[#allocation2 + $0x228] sm:$0xff] }
 0xd19   : > { %v1983_v19 = vadd.f32 %v1982_v16, %v9553_v18  ;;  %8425 = vmatpush3.bf16.msra.mxu1 %v8424_v8  ;;  %v2248_v8 = vld [vmem:[#allocation2 + $0x220] sm:$0xff] }
 0xd1a   : > { %8426 = vmatprep.subr.bf16.mxu1 %v9229_v0 }
 0xd1b   : > { %1986 = vadd.xlane.f32.xlu0 %v1983_v19 }
 0xda8   : > { %v1987_v18 = vpop.xlane.xlu0 %1986 }
 0xda9   : > { %v1989_v32 = vmul.f32 0.0078125, %v1987_v18 }
 0xdab   : > { %v9674_v33 = vsub.f32 %v1983_v19, %v1989_v32  ;;  %v2120_v19 = vld [vmem:[#allocation8 + $0x70] sm:$0xff] }
 0xdac   : > { %v8427_v21 = vpack.c.bf16 %v2121_v20, %v2120_v19  ;;  %v2257_v20 = vld [vmem:[#allocation2 + $0x268] sm:$0xff] }
 0xdad   : > { %v1991_v36 = vmul.f32 %v9674_v33, %v9674_v33 }
 0xdae   : > { %8428 = vmatpush3.bf16.msra.mxu1 %v8427_v21  ;;  %v2259_v21 = vld [vmem:[#allocation2 + $0x278] sm:$0xff] }
 0xdaf   : > { %1992 = vadd.xlane.f32.xlu1 %v1991_v36  ;;  %8461 = vmatprep.subr.bf16.mxu1 %v9229_v0  ;;  %v2229_v36 = vld [vmem:[#allocation2 + $0x188] sm:$0xff] }
 0xdb0   : > { %v8429_v39 = vpack.c.bf16 %v2232_v37, %v2229_v36 }
 0xdb2   : > { %8430 = vmatprep.subr.bf16.mxu0 %v8429_v39  ;;  %v2267_v39 = vld [vmem:[#allocation2 + $0x2b8] sm:$0xff] }
 0xe3c   : > { %v1993_v9 = vpop.xlane.xlu1 %1992 }
 0xe3d   : > { %v1994_v10 = vmul.f32 0.0078125, %v1993_v9  ;;  %v8443_v9 = vpack.c.bf16 %v2249_v35, %v2246_v7 }
 0xe3f   : > { %v1995_v11 = vadd.f32 1e-05, %v1994_v10  ;;  %v2251_v10 = vld [vmem:[#allocation2 + $0x238] sm:$0xff] }
 0xe41   : > { %8967 = vrsqrt.f32 %v1995_v11  ;;  %v8471_v11 = vpack.c.bf16 %v2251_v10, %v2248_v8 }
 0xe4b   : > { %v8968_v12 = vpop.eup %8967 }
 0xe4c   : > { %v1997_v14 = vmul.f32 %v8968_v12, %v9674_v33  ;;  %v2253_v12 = vld [vmem:[#allocation2 + $0x248] sm:$0xff] }
 0xe4e   : > { %v2004_v16 = vmul.f32 %v6966_v13, %v1997_v14  ;;  %v2256_v13 = vld [vmem:[#allocation2 + $0x260] sm:$0xff] }
 0xe4f   : > { %v8445_v14 = vpack.c.bf16 %v2256_v13, %v2253_v12 }
 0xe50   : > { %v2011_v17 = vadd.f32 %v6967_v15, %v2004_v16  ;;  %v2252_v15 = vld [vmem:[#allocation2 + $0x240] sm:$0xff]  ;;  %v2255_v16 = vld [vmem:[#allocation2 + $0x258] sm:$0xff] }
 0xe51   : > { %v8447_v19 = vpack.c.bf16 %v2255_v16, %v2252_v15 }
 0xe52   : > { %7619 = vmatmul.mubr.f32.vlgmr.msra.gmra.mrb[22].mxu0 %v2011_v17 }
 0xe53   : > { %2358 = vmatprep.mubr.f32.mxu0 %v9231_v1  ;;  %8432 = vmatpush1.bf16.msra.mxu0 %v8431_v43  ;;  %v2274_v43 = vld [vmem:[#allocation2 + $0x2f0] sm:$0xff] }
 0xe54   : > { %8434 = vmatprep.subr.bf16.mxu0 %v8433_v47  ;;  %v8457_v34 = vpack.c.bf16 %v2274_v43, %v2271_v42  ;;  %v2273_v47 = vld [vmem:[#allocation2 + $0x2e8] sm:$0xff] }
 0xe55   : > { %v8459_v50 = vpack.c.bf16 %v2273_v47, %v2270_v46  ;;  %v2441_v46 = vld [vmem:[#allocation5 + $0xa8] sm:$0xff]  ;;  %v2442_v47 = vld [vmem:[#allocation5 + $0xb0] sm:$0xff] }
 0xe57   : > { %8436 = vmatpush1.bf16.msra.mxu0 %v8435_v51  ;;  %v8483_v51 = vpack.c.bf16 %v2275_v49, %v2272_v48  ;;  %v2443_v49 = vld [vmem:[#allocation5 + $0xb8] sm:$0xff] }
 0xe58   : > { %8438 = vmatprep.subr.bf16.mxu0 %v8437_v56  ;;  %v6970_v56 = vld [vmem:[%s10397_s19] ss:$0 sm:$0xff] }
 0xe5b   : > { %8440 = vmatpush1.bf16.msra.mxu0 %v8439_v60 }
 0xe5c   : > { %8442 = vmatprep.subr.bf16.mxu0 %v8441_v6 }
 0xe5f   : > { %8444 = vmatpush1.bf16.msra.mxu0 %v8443_v9 }
 0xe60   : > { %8446 = vmatprep.subr.bf16.mxu0 %v8445_v14 }
 0xe63   : > { %8448 = vmatpush1.bf16.msra.mxu0 %v8447_v19  ;;  %v2436_v19 = vld [vmem:[#allocation5 + $0x80] sm:$0xff] }
 0xf25   : > { %v2101_v26 = vpop.f32.mrb[22].mxu0 }
 0xf26   : > { %v2102_v27 = vadd.f32 %v6968_v23, %v2101_v26  ;;  %v7620_v28 = vpop.f32.mrb[23].mxu0  ;;  %v2262_v23 = vld [vmem:[#allocation2 + $0x290] sm:$0xff] }
 0xf27   : > { %v2258_v28 = vld [vmem:[#allocation2 + $0x270] sm:$0xff] }
 0xf28   : > { %v2105_v29 = vmax.f32 %v2102_v27, 0.0  ;;  %v8449_v27 = vpack.c.bf16 %v2262_v23, %v2259_v21  ;;  %v2438_v21 = vld [vmem:[#allocation5 + $0x90] sm:$0xff] }
 0xf2a   : > { %7654 = vmatmul.mubr.f32.vlgmr.msra.gmra.mrb[8].mxu1 %v2105_v29  ;;  %v2261_v29 = vld [vmem:[#allocation2 + $0x288] sm:$0xff]  ;;  %8450 = vmatprep.subr.bf16.mxu0 %v8449_v27 }
 0xf2b   : > { %7688 = vmatprep.mubr.msk.f32.mxu1 %vm9230_vm0, %v9231_v1  ;;  %8463 = vmatpush3.bf16.msra.mxu1 %v8462_v44  ;;  %v8455_v44 = vpack.c.bf16 %v2267_v39, %v2264_v38 }
 0xf2c   : > { %8464 = vmatprep.subr.bf16.mxu1 %v9229_v0 }
 0xf2f   : > { %8466 = vmatpush3.bf16.msra.mxu1 %v8465_v52 }
 0xf30   : > { %8467 = vmatprep.subr.bf16.mxu1 %v9229_v0 }
 0xf33   : > { %8469 = vmatpush3.bf16.msra.mxu1 %v8468_v61  ;;  %v6972_v61 = vld [vmem:[%s10388_s10 + $0x3] sm:$0x7] }
 0xf34   : > { %8470 = vmatprep.subr.bf16.mxu1 %v9229_v0  ;;  %v2290_v7 = vrot.slane %v6972_v61, %v9568_v25 }
 0xf37   : > { %8472 = vmatpush3.bf16.msra.mxu1 %v8471_v11 }
 0xf38   : > { %8473 = vmatprep.subr.bf16.mxu1 %v9229_v0 }
 0xffd   : > { %v2195_v31 = vpop.f32.mrb[8].mxu1 }
 0xffe   : > { %v2196_v18 = vadd.f32 %v6969_v30, %v2195_v31  ;;  %v7655_v32 = vpop.f32.mrb[9].mxu1  ;;  %v2260_v30 = vld [vmem:[#allocation2 + $0x280] sm:$0xff]  ;;  %v8451_v31 = vpack.c.bf16 %v2261_v29, %v2258_v28 }
 0xfff   : > { %v2265_v32 = vld [vmem:[#allocation2 + $0x2a8] sm:$0xff] }
0x1000   : > { %v2199_v33 = vadd.f32 %v2196_v18, %v2011_v17  ;;  %v2254_v17 = vld [vmem:[#allocation2 + $0x250] sm:$0xff]  ;;  %v2263_v18 = vld [vmem:[#allocation2 + $0x298] sm:$0xff]  ;;  %8452 = vmatpush1.bf16.msra.mxu0 %v8451_v31 }
0x1001   : > { %v8474_v26 = vpack.c.bf16 %v2257_v20, %v2254_v17  ;;  %v8477_v36 = vpack.c.bf16 %v2263_v18, %v2260_v30  ;;  %v2437_v20 = vld [vmem:[#allocation5 + $0x88] sm:$0xff] }
0x1002   : > { %2202 = vadd.xlane.f32.xlu1 %v2199_v33  ;;  %v8486_v23 = vpack.c.bf16 %v2437_v20, %v2436_v19 }
0x1003   : > { %8475 = vmatpush3.bf16.msra.mxu1 %v8474_v26  ;;  %v2439_v26 = vld [vmem:[#allocation5 + $0x98] sm:$0xff] }
0x1004   : > { %8476 = vmatprep.subr.bf16.mxu1 %v9229_v0  ;;  %v8489_v27 = vpack.c.bf16 %v2439_v26, %v2438_v21 }
0x1007   : > { %8478 = vmatpush3.bf16.msra.mxu1 %v8477_v36 }
0x1008   : > { %8479 = vmatprep.subr.bf16.mxu1 %v9229_v0 }
0x100b   : > { %8481 = vmatpush3.bf16.msra.mxu1 %v8480_v45 }
0x100c   : > { %8482 = vmatprep.subr.bf16.mxu1 %v9229_v0 }
0x100f   : > { %8484 = vmatpush3.bf16.msra.mxu1 %v8483_v51 }
0x1010   : > { %8485 = vmatprep.subr.bf16.mxu1 %v9229_v0 }
0x108f   : > { %v2203_v62 = vpop.xlane.xlu1 %2202 }
0x1090   : > { %v2204_v63 = vmul.f32 0.0078125, %v2203_v62  ;;  %v2282_v62 = vrot.slane %v6972_v61, %v9566_v24 }
0x1092   : > { %v9709_v2 = vsub.f32 %v2199_v33, %v2204_v63  ;;  %v2268_v33 = vld [vmem:[#allocation2 + $0x2c0] sm:$0xff]  ;;  %v2286_v63 = vrot.slane %v6972_v61, %v9561_v22 }
0x1093   : > { %v8453_v37 = vpack.c.bf16 %v2268_v33, %v2265_v32 }
0x1094   : > { %v2206_v3 = vmul.f32 %v9709_v2, %v9709_v2 }
0x1095   : > { %8454 = vmatprep.subr.bf16.mxu0 %v8453_v37 }
0x1096   : > { %2207 = vadd.xlane.f32.xlu1 %v2206_v3  ;;  %8456 = vmatpush1.bf16.msra.mxu0 %v8455_v44 }
0x1097   : > { %8458 = vmatprep.subr.bf16.mxu0 %v8457_v34  ;;  %v2440_v34 = vld [vmem:[#allocation5 + $0xa0] sm:$0xff] }
0x1098   : > { %v8492_v48 = vpack.c.bf16 %v2441_v46, %v2440_v34  ;;  %v2451_v34 = vld [vmem:[#allocation5 + $0xf8] sm:$0xff] }
0x109a   : > { %8460 = vmatpush1.bf16.msra.mxu0 %v8459_v50  ;;  %v8495_v50 = vpack.c.bf16 %v2443_v49, %v2442_v47 }
0x109b   : > { %7691 = vmatprep.subr.mxu0 %v9231_v1 }
0x1123   : > { %v2208_v52 = vpop.xlane.xlu1 %2207 }
0x1124   : > { %v2209_v53 = vmul.f32 0.0078125, %v2208_v52 }
0x1126   : > { %v2210_v54 = vadd.f32 1e-05, %v2209_v53 }
0x1128   : > { %8969 = vrsqrt.f32 %v2210_v54 }
0x1132   : > { %v8970_v55 = vpop.eup %8969 }
0x1133   : > { %v2212_v57 = vmul.f32 %v8970_v55, %v9709_v2 }
0x1135   : > { %v2219_v59 = vmul.f32 %v6970_v56, %v2212_v57 }
0x1137   : > { %v9726_v60 = vadd.f32 %v6971_v58, %v2219_v59 }
0x1139   : > { %2359 = vmatmul.mubr.f32.vlgmr.msra.gmra.mrb[24].mxu0 %v9726_v60  ;;  %7689 = vmatmul.mubr.f32.vlgmr.msra.gmra.mrb[10].mxu1 %v9726_v60 }
0x113a   : > { %7693 = vmatprep.mubr.msk.f32.mxu0 %vm9230_vm0, %v9231_v1  ;;  %7709 = vmatprep.mubr.msk.f32.mxu1 %vm9230_vm0, %v9231_v1 }
0x113b   : > { %8487 = vmatpush3.bf16.msra.mxu1 %v8486_v23 }
0x113c   : > { %8488 = vmatprep.subr.bf16.mxu1 %v9229_v0 }
0x113f   : > { %8490 = vmatpush3.bf16.msra.mxu1 %v8489_v27 }
0x1140   : > { %8491 = vmatprep.subr.bf16.mxu1 %v9229_v0 }
0x120c   : > { %v2360_v2 = vpop.f32.mrb[24].mxu0  ;;  %v2431_v3 = vpop.f32.mrb[10].mxu1 }
0x120d   : > { %v9739_v4 = vadd.f32 %v2360_v2, %v2282_v62  ;;  %v2362_v5 = vpop.f32.mrb[25].mxu0  ;;  %v7690_v6 = vpop.f32.mrb[11].mxu1  ;;  %v9749_v8 = vadd.f32 %v2431_v3, %v2290_v7 }
0x120e   : > { %v9742_v35 = vadd.f32 %v2362_v5, %v2286_v63 }
0x120f   : > { %2696 = vrot.lane.b32.xlu0 %v9739_v4, %s9232_s23 }
0x1210   : > { %7692 = vmatpush3.xpose.msk.msra.mxu0 %vm1025_vm2, %v9742_v35 }
0x1211   : > { %7696 = vmatprep.subr.mxu0 %v9231_v1 }
0x1213   : > { %7694 = vmatmul.mubr.msk.f32.vlgmr.msra.gmra.mrb[26].mxu0 %vm1025_vm2, %v9739_v4 }
0x1214   : > { %7697 = vmatpush3.msra.mxu0 %v9749_v8  ;;  %7698 = vmatprep.mubr.msk.f32.mxu0 %vm9230_vm0, %v9231_v1 }
0x1215   : > { %7712 = vmatprep.subr.mxu0 %v9231_v1 }
0x1281   : > { %v2697_v18 = vpop.permute.xlu0 %2696 }
0x12e6   : > { %v2533_v9 = vpop.f32.mrb[26].mxu0 }
0x12e7   : > { %v2537_v10 = vmul.f32 0.17677669, %v2533_v9  ;;  %v7695_v11 = vpop.f32.mrb[27].mxu0 }
0x12e8   : > { %v2445_v11 = vld [vmem:[#allocation5 + $0xc8] sm:$0xff] }
0x12e9   : > { %v2538_v12 = vsel %vm1103_vm3, %v2537_v10, -inf }
0x12ea   : > { %2539 = vmax.xlane.f32.xlu1 %v2538_v12  ;;  %v2446_v12 = vld [vmem:[#allocation5 + $0xd0] sm:$0xff] }
0x1377   : > { %v2540_v13 = vpop.xlane.xlu1 %2539 }
0x1378   : > { %v2541_v14 = vsub.f32 %v2537_v10, %v2540_v13  ;;  %v2444_v10 = vld [vmem:[#allocation5 + $0xc0] sm:$0xff] }
0x1379   : > { %v8498_v13 = vpack.c.bf16 %v2445_v11, %v2444_v10  ;;  %v3454_v11 = vld [vmem:[#allocation7 + $0xb0] sm:$0xff] }
0x137a   : > { %v2542_v15 = vmul.f32 1.442695, %v2541_v14  ;;  %v2447_v14 = vld [vmem:[#allocation5 + $0xd8] sm:$0xff] }
0x137c   : > { %8971 = vpow2.f32 %v2542_v15 }
0x1386   : > { %v8972_v16 = vpop.eup %8971 }
0x1387   : > { %v2544_v17 = vsel %vm1103_vm3, %v8972_v16, 0.0 }
0x1388   : > { %2545 = vadd.xlane.f32.xlu1 %v2544_v17 }
0x1399   : > { %2698 = vrot.lane.b32.xlu1 %v9742_v35, %s9232_s23 }
0x1415   : > { %v2546_v28 = vpop.xlane.xlu1 %2545 }
0x1416   : > { %8973 = vrcp.f32 %v2546_v28 }
0x1419   : > { %v2699_v31 = vpop.permute.xlu1 %2698 }
0x1420   : > { %v8974_v29 = vpop.eup %8973 }
0x1421   : > { %v2548_v30 = vmul.f32 %v8974_v29, %v8972_v16 }
0x1423   : > { %7699 = vmatmul.mubr.msk.f32.vlgmr.msra.gmra.mrb[28].mxu0 %vm1103_vm3, %v2548_v30 }
0x1424   : > { %7713 = vmatpush3.xpose.msk.msra.mxu0 %vm1025_vm2, %v2699_v31  ;;  %7714 = vmatprep.mubr.msk.f32.mxu0 %vm9230_vm0, %v9231_v1 }
0x1425   : > { %7717 = vmatprep.subr.mxu0 %v9231_v1 }
0x1427   : > { %7715 = vmatmul.mubr.msk.f32.vlgmr.msra.gmra.mrb[30].mxu0 %vm1025_vm2, %v2697_v18 }
0x1428   : > { %7719 = vmatprep.mubr.msk.f32.mxu0 %vm9230_vm0, %v9231_v1 }
0x14f6   : > { %v2618_v32 = vpop.f32.mrb[28].mxu0 }
0x14f7   : > { %v7700_v33 = vpop.f32.mrb[29].mxu0  ;;  %7710 = vmatmul.mubr.msk.f32.vlgmr.msra.gmra.mrb[12].mxu1 %vm1025_vm2, %v2618_v32 }
0x14f8   : > { %7730 = vmatprep.mubr.msk.f32.mxu1 %vm9230_vm0, %v9231_v1  ;;  %8493 = vmatpush3.bf16.msra.mxu1 %v8492_v48 }
0x14f9   : > { %8494 = vmatprep.subr.bf16.mxu1 %v9229_v0 }
0x14fa   : > { %v2770_v36 = vpop.f32.mrb[30].mxu0 }
0x14fb   : > { %v2774_v37 = vmul.f32 0.17677669, %v2770_v36  ;;  %v7716_v38 = vpop.f32.mrb[31].mxu0 }
0x14fc   : > { %8496 = vmatpush3.bf16.msra.mxu1 %v8495_v50 }
0x14fd   : > { %v2775_v39 = vsel %vm1103_vm3, %v2774_v37, -inf  ;;  %8497 = vmatprep.subr.bf16.mxu1 %v9229_v0 }
0x14fe   : > { %2776 = vmax.xlane.f32.xlu1 %v2775_v39 }
0x150f   : > { %2787 = vrot.lane.b32.xlu1 %v9749_v8, %s9232_s23 }
0x1513   : > { %2937 = vrot.lane.b32.xlu1 %v9739_v4, %s9233_s28 }
0x158b   : > { %v2777_v40 = vpop.xlane.xlu1 %2776 }
0x158c   : > { %v2778_v41 = vsub.f32 %v2774_v37, %v2777_v40 }
0x158e   : > { %v2779_v42 = vmul.f32 1.442695, %v2778_v41 }
0x158f   : > { %v2788_v43 = vpop.permute.xlu1 %2787 }
0x1590   : > { %8975 = vpow2.f32 %v2779_v42  ;;  %7718 = vmatpush3.msra.mxu0 %v2788_v43  ;;  %v2448_v42 = vld [vmem:[#allocation5 + $0xe0] sm:$0xff]  ;;  %v2449_v43 = vld [vmem:[#allocation5 + $0xe8] sm:$0xff] }
0x1591   : > { %7733 = vmatprep.subr.mxu0 %v9231_v1 }
0x1593   : > { %v2938_v57 = vpop.permute.xlu1 %2937 }
0x159a   : > { %v8976_v44 = vpop.eup %8975 }
0x159b   : > { %v2781_v45 = vsel %vm1103_vm3, %v8976_v44, 0.0 }
0x159c   : > { %2782 = vadd.xlane.f32.xlu0 %v2781_v45  ;;  %v8504_v45 = vpack.c.bf16 %v2449_v43, %v2448_v42  ;;  %v3553_v42 = vld [vmem:[#allocation8 + $0xc8] sm:$0xff] }
0x15b2   : > { %2939 = vrot.lane.b32.xlu0 %v9742_v35, %s9233_s28 }
0x15ca   : > { %v2691_v51 = vpop.f32.mrb[12].mxu1 }
0x15cb   : > { %v7711_v52 = vpop.f32.mrb[13].mxu1 }
0x1629   : > { %v2783_v53 = vpop.xlane.xlu0 %2782 }
0x162a   : > { %8977 = vrcp.f32 %v2783_v53 }
0x162d   : > { %v2940_v56 = vpop.permute.xlu0 %2939 }
0x1634   : > { %v8978_v54 = vpop.eup %8977 }
0x1635   : > { %v2785_v55 = vmul.f32 %v8978_v54, %v8976_v44  ;;  %v2450_v44 = vld [vmem:[#allocation5 + $0xf0] sm:$0xff] }
0x1636   : > { %v8507_v46 = vpack.c.bf16 %v2451_v34, %v2450_v44  ;;  %v3554_v44 = vld [vmem:[#allocation8 + $0xd0] sm:$0xff] }
0x1637   : > { %7720 = vmatmul.mubr.msk.f32.vlgmr.msra.gmra.mrb[32].mxu0 %vm1103_vm3, %v2785_v55 }
0x1638   : > { %7734 = vmatpush3.xpose.msk.msra.mxu0 %vm1025_vm2, %v2940_v56  ;;  %7735 = vmatprep.mubr.msk.f32.mxu0 %vm9230_vm0, %v9231_v1 }
0x1639   : > { %7738 = vmatprep.subr.mxu0 %v9231_v1 }
0x163b   : > { %7736 = vmatmul.mubr.msk.f32.vlgmr.msra.gmra.mrb[34].mxu0 %vm1025_vm2, %v2938_v57 }
0x163c   : > { %7740 = vmatprep.mubr.msk.f32.mxu0 %vm9230_vm0, %v9231_v1 }
0x170a   : > { %v2859_v58 = vpop.f32.mrb[32].mxu0 }
0x170b   : > { %v7721_v59 = vpop.f32.mrb[33].mxu0  ;;  %7731 = vmatmul.mubr.msk.f32.vlgmr.msra.gmra.mrb[14].mxu1 %vm1025_vm2, %v2859_v58  ;;  %v3448_v58 = vld [vmem:[#allocation7 + $0x80] sm:$0xff] }
0x170c   : > { %7751 = vmatprep.mubr.msk.f32.mxu1 %vm9230_vm0, %v9231_v1  ;;  %8499 = vmatpush3.bf16.msra.mxu1 %v8498_v13  ;;  %v3449_v59 = vld [vmem:[#allocation7 + $0x88] sm:$0xff] }
0x170d   : > { %8500 = vmatprep.subr.bf16.mxu1 %v9229_v0 }
0x170e   : > { %v3011_v61 = vpop.f32.mrb[34].mxu0 }
0x170f   : > { %v3015_v62 = vmul.f32 0.17677669, %v3011_v61  ;;  %v7737_v63 = vpop.f32.mrb[35].mxu0  ;;  %v3450_v61 = vld [vmem:[#allocation7 + $0x90] sm:$0xff] }
0x1710   : > { %v3451_v63 = vld [vmem:[#allocation7 + $0x98] sm:$0xff] }
0x1711   : > { %v3016_v2 = vsel %vm1103_vm3, %v3015_v62, -inf }
0x1712   : > { %3017 = vmax.xlane.f32.xlu1 %v3016_v2  ;;  %v8513_v2 = vpack.c.bf16 %v3451_v63, %v3450_v61  ;;  %v6996_v61 = vld [vmem:[%s10392_s14 + $0x1] ss:$0 sm:$0xff] }
0x1723   : > { %3179 = vrot.lane.b32.xlu1 %v9742_v35, %s9234_s1  ;;  %v8501_v35 = vpack.c.bf16 %v2447_v14, %v2446_v12  ;;  %v3455_v12 = vld [vmem:[#allocation7 + $0xb8] sm:$0xff]  ;;  %v3456_v14 = vld [vmem:[#allocation7 + $0xc0] sm:$0xff] }
0x1724   : > { %v8519_v13 = vpack.c.bf16 %v3455_v12, %v3454_v11  ;;  %v3669_v11 = vld [vmem:[%s10455_s30 + $0x8] sm:$0xff]  ;;  %v3670_v12 = vld [vmem:[%s10455_s30 + $0x10] sm:$0xff] }
0x1725   : > { %8502 = vmatpush3.bf16.msra.mxu1 %v8501_v35  ;;  %v3457_v35 = vld [vmem:[#allocation7 + $0xc8] sm:$0xff] }
0x1726   : > { %8503 = vmatprep.subr.bf16.mxu1 %v9229_v0 }
0x1727   : > { %3177 = vrot.lane.b32.xlu1 %v9739_v4, %s9234_s1  ;;  %v6974_v4 = vld [vmem:[%s10390_s12 + $0x1] ss:$0 sm:$0xff] }
0x1728   : > { %v2695_v15 = vadd.f32 %v6974_v4, %v2691_v51  ;;  %v3458_v4 = vld [vmem:[#allocation7 + $0xd0] sm:$0xff] }
0x179f   : > { %v3018_v3 = vpop.xlane.xlu1 %3017 }
0x17a0   : > { %v3019_v5 = vsub.f32 %v3015_v62, %v3018_v3  ;;  %v8510_v62 = vpack.c.bf16 %v3449_v59, %v3448_v58  ;;  %v3452_v3 = vld [vmem:[#allocation7 + $0xa0] sm:$0xff]  ;;  %v3559_v58 = vld [vmem:[#allocation8 + $0xf8] sm:$0xff] }
0x17a2   : > { %v3020_v6 = vmul.f32 1.442695, %v3019_v5  ;;  %v3453_v5 = vld [vmem:[#allocation7 + $0xa8] sm:$0xff] }
0x17a3   : > { %v3180_v26 = vpop.permute.xlu1 %3179 }
0x17a4   : > { %8979 = vpow2.f32 %v3020_v6  ;;  %v8516_v6 = vpack.c.bf16 %v3453_v5, %v3452_v3  ;;  %v6998_v5 = vld [vmem:[%s10394_s16 + $0x1] ss:$0 sm:$0xff] }
0x17a7   : > { %v3178_v28 = vpop.permute.xlu1 %3177 }
0x17ae   : > { %v8980_v7 = vpop.eup %8979 }
0x17af   : > { %v3022_v9 = vsel %vm1103_vm3, %v8980_v7, 0.0 }
0x17b0   : > { %3023 = vadd.xlane.f32.xlu0 %v3022_v9 }
0x17c6   : > { %3027 = vrot.lane.b32.xlu0 %v9749_v8, %s9233_s28 }
0x17de   : > { %v2932_v16 = vpop.f32.mrb[14].mxu1 }
0x17df   : > { %v2936_v17 = vadd.f32 %v2932_v16, %v2695_v15  ;;  %v7732_v19 = vpop.f32.mrb[15].mxu1  ;;  %v8522_v15 = vpack.c.bf16 %v3457_v35, %v3456_v14  ;;  %v3459_v16 = vld [vmem:[#allocation7 + $0xd8] sm:$0xff] }
0x17e0   : > { %v3460_v19 = vld [vmem:[#allocation7 + $0xe0] sm:$0xff]  ;;  %v3671_v14 = vld [vmem:[%s10455_s30 + $0x18] sm:$0xff] }
0x17e1   : > { %v8561_v35 = vpack.c.bf16 %v3671_v14, %v3670_v12 }
0x183d   : > { %v3024_v20 = vpop.xlane.xlu0 %3023 }
0x183e   : > { %8981 = vrcp.f32 %v3024_v20  ;;  %v3461_v20 = vld [vmem:[#allocation7 + $0xe8] sm:$0xff] }
0x1841   : > { %v3028_v21 = vpop.permute.xlu0 %3027 }
0x1842   : > { %7739 = vmatpush3.msra.mxu0 %v3028_v21  ;;  %v8528_v21 = vpack.c.bf16 %v3461_v20, %v3460_v19 }
0x1843   : > { %7754 = vmatprep.subr.mxu0 %v9231_v1 }
0x1848   : > { %v8982_v23 = vpop.eup %8981 }
0x1849   : > { %v3026_v27 = vmul.f32 %v8982_v23, %v8980_v7  ;;  %v3462_v23 = vld [vmem:[#allocation7 + $0xf0] sm:$0xff] }
0x184b   : > { %7741 = vmatmul.mubr.msk.f32.vlgmr.msra.gmra.mrb[36].mxu0 %vm1103_vm3, %v3026_v27 }
0x184c   : > { %7755 = vmatpush3.xpose.msk.msra.mxu0 %vm1025_vm2, %v3180_v26  ;;  %7756 = vmatprep.mubr.msk.f32.mxu0 %vm9230_vm0, %v9231_v1  ;;  %v3463_v26 = vld [vmem:[#allocation7 + $0xf8] sm:$0xff] }
0x184d   : > { %7759 = vmatprep.subr.mxu0 %v9231_v1  ;;  %v8531_v27 = vpack.c.bf16 %v3463_v26, %v3462_v23  ;;  %v3674_v23 = vld [vmem:[%s10455_s30 + $0x30] sm:$0xff]  ;;  %v3675_v26 = vld [vmem:[%s10455_s30 + $0x38] sm:$0xff] }
0x184f   : > { %7757 = vmatmul.mubr.msk.f32.vlgmr.msra.gmra.mrb[38].mxu0 %vm1025_vm2, %v3178_v28  ;;  %v3544_v28 = vld [vmem:[#allocation8 + $0x80] sm:$0xff] }
0x1850   : > { %7761 = vmatprep.mubr.msk.f32.mxu0 %vm9230_vm0, %v9231_v1 }
0x191e   : > { %v3099_v29 = vpop.f32.mrb[36].mxu0 }
0x191f   : > { %v7742_v30 = vpop.f32.mrb[37].mxu0  ;;  %7752 = vmatmul.mubr.msk.f32.vlgmr.msra.gmra.mrb[16].mxu1 %vm1025_vm2, %v3099_v29  ;;  %v3545_v29 = vld [vmem:[#allocation8 + $0x88] sm:$0xff] }
0x1920   : > { %7772 = vmatprep.mubr.msk.f32.mxu1 %vm9230_vm0, %v9231_v1  ;;  %8505 = vmatpush3.bf16.msra.mxu1 %v8504_v45  ;;  %v3546_v30 = vld [vmem:[#allocation8 + $0x90] sm:$0xff]  ;;  %v3555_v45 = vld [vmem:[#allocation8 + $0xd8] sm:$0xff] }
0x1921   : > { %8506 = vmatprep.subr.bf16.mxu1 %v9229_v0  ;;  %v8549_v34 = vpack.c.bf16 %v3555_v45, %v3554_v44  ;;  %v7001_v45 = vld [vmem:[%s10397_s19 + $0x1] ss:$0 sm:$0xff] }
0x1922   : > { %v3251_v31 = vpop.f32.mrb[38].mxu0 }
0x1923   : > { %v3255_v18 = vmul.f32 0.17677669, %v3251_v31  ;;  %v7758_v32 = vpop.f32.mrb[39].mxu0  ;;  %v8534_v31 = vpack.c.bf16 %v3545_v29, %v3544_v28  ;;  %v3676_v28 = vld [vmem:[%s10455_s30 + $0x40] sm:$0xff]  ;;  %v3677_v29 = vld [vmem:[%s10455_s30 + $0x48] sm:$0xff] }
0x1924   : > { %8508 = vmatpush3.bf16.msra.mxu1 %v8507_v46  ;;  %v3556_v46 = vld [vmem:[#allocation8 + $0xe0] sm:$0xff] }
0x1925   : > { %v3256_v33 = vsel %vm1103_vm3, %v3255_v18, -inf  ;;  %8533 = vmatprep.subr.bf16.mxu1 %v9229_v0 }
0x1926   : > { %3257 = vmax.xlane.f32.xlu0 %v3256_v33  ;;  %v3548_v33 = vld [vmem:[#allocation8 + $0xa0] sm:$0xff] }
0x193c   : > { %3267 = vrot.lane.b32.xlu0 %v9749_v8, %s9234_s1 }
0x19b3   : > { %v3258_v36 = vpop.xlane.xlu0 %3257 }
0x19b4   : > { %v3259_v37 = vsub.f32 %v3255_v18, %v3258_v36  ;;  %v3547_v18 = vld [vmem:[#allocation8 + $0x98] sm:$0xff]  ;;  %v3549_v36 = vld [vmem:[#allocation8 + $0xa8] sm:$0xff] }
0x19b5   : > { %v8537_v32 = vpack.c.bf16 %v3547_v18, %v3546_v30  ;;  %v3678_v30 = vld [vmem:[%s10455_s30 + $0x50] sm:$0xff]  ;;  %v3679_v18 = vld [vmem:[%s10455_s30 + $0x58] sm:$0xff] }
0x19b6   : > { %v3260_v38 = vmul.f32 1.442695, %v3259_v37  ;;  %v8540_v37 = vpack.c.bf16 %v3549_v36, %v3548_v33  ;;  %v3680_v33 = vld [vmem:[%s10455_s30 + $0x60] sm:$0xff]  ;;  %v3681_v36 = vld [vmem:[%s10455_s30 + $0x68] sm:$0xff] }
0x19b7   : > { %v3268_v39 = vpop.permute.xlu0 %3267 }
0x19b8   : > { %8983 = vpow2.f32 %v3260_v38  ;;  %7760 = vmatpush3.msra.mxu0 %v3268_v39  ;;  %v3550_v38 = vld [vmem:[#allocation8 + $0xb0] sm:$0xff]  ;;  %v3551_v39 = vld [vmem:[#allocation8 + $0xb8] sm:$0xff] }
0x19b9   : > { %8509 = vmatprep.subr.bf16.mxu0 %v9229_v0 }
0x19c2   : > { %v8984_v40 = vpop.eup %8983 }
0x19c3   : > { %v3262_v41 = vsel %vm1103_vm3, %v8984_v40, 0.0 }
0x19c4   : > { %3263 = vadd.xlane.f32.xlu1 %v3262_v41  ;;  %v3552_v41 = vld [vmem:[#allocation8 + $0xc0] sm:$0xff] }
0x19c5   : > { %v8546_v43 = vpack.c.bf16 %v3553_v42, %v3552_v41 }
0x19f2   : > { %v3172_v8 = vpop.f32.mrb[16].mxu1 }
0x19f3   : > { %v3176_v47 = vadd.f32 %v3172_v8, %v2936_v17  ;;  %v7753_v48 = vpop.f32.mrb[17].mxu1  ;;  %v8525_v17 = vpack.c.bf16 %v3459_v16, %v3458_v4  ;;  %v3557_v8 = vld [vmem:[#allocation8 + $0xe8] sm:$0xff]  ;;  %v3672_v4 = vld [vmem:[%s10455_s30 + $0x20] sm:$0xff] }
0x1a51   : > { %v3264_v49 = vpop.xlane.xlu1 %3263 }
0x1a52   : > { %8985 = vrcp.f32 %v3264_v49 }
0x1a5c   : > { %v8986_v50 = vpop.eup %8985 }
0x1a5d   : > { %v3266_v51 = vmul.f32 %v8986_v50, %v8984_v40  ;;  %v8543_v40 = vpack.c.bf16 %v3551_v39, %v3550_v38  ;;  %v3682_v38 = vld [vmem:[%s10455_s30 + $0x70] sm:$0xff]  ;;  %v3683_v39 = vld [vmem:[%s10455_s30 + $0x78] sm:$0xff] }
0x1a5f   : > { %7762 = vmatmul.mubr.msk.f32.vlgmr.msra.gmra.mrb[40].mxu0 %vm1103_vm3, %v3266_v51 }
0x1a60   : > { %7807 = vmatprep.mubr.msk.f32.mxu0 %vm9230_vm0, %v9231_v1  ;;  %8511 = vmatpush3.bf16.msra.mxu0 %v8510_v62 }
0x1a61   : > { %8512 = vmatprep.subr.bf16.mxu0 %v9229_v0 }
0x1a64   : > { %8514 = vmatpush3.bf16.msra.mxu0 %v8513_v2 }
0x1a65   : > { %8515 = vmatprep.subr.bf16.mxu0 %v9229_v0 }
0x1a68   : > { %8517 = vmatpush3.bf16.msra.mxu0 %v8516_v6 }
0x1a69   : > { %8518 = vmatprep.subr.bf16.mxu0 %v9229_v0 }
0x1a6c   : > { %8520 = vmatpush3.bf16.msra.mxu0 %v8519_v13 }
0x1a6d   : > { %8521 = vmatprep.subr.bf16.mxu0 %v9229_v0 }
0x1a70   : > { %8523 = vmatpush3.bf16.msra.mxu0 %v8522_v15  ;;  %v3673_v15 = vld [vmem:[%s10455_s30 + $0x28] sm:$0xff] }
0x1a71   : > { %8524 = vmatprep.subr.bf16.mxu0 %v9229_v0  ;;  %v8564_v16 = vpack.c.bf16 %v3673_v15, %v3672_v4  ;;  %v3844_v15 = vld [vmem:[#allocation2 + $0x300] sm:$0xff] }
0x1a74   : > { %8526 = vmatpush3.bf16.msra.mxu0 %v8525_v17 }
0x1a75   : > { %8527 = vmatprep.subr.bf16.mxu0 %v9229_v0 }
0x1a78   : > { %8529 = vmatpush3.bf16.msra.mxu0 %v8528_v21 }
0x1a79   : > { %8530 = vmatprep.subr.bf16.mxu0 %v9229_v0 }
0x1a7c   : > { %8532 = vmatpush3.bf16.msra.mxu0 %v8531_v27  ;;  %v8567_v27 = vpack.c.bf16 %v3675_v26, %v3674_v23  ;;  %v3850_v23 = vld [vmem:[#allocation2 + $0x330] sm:$0xff]  ;;  %v3853_v26 = vld [vmem:[#allocation2 + $0x348] sm:$0xff] }
0x1a7d   : > { %8557 = vmatprep.subr.bf16.mxu0 %v9229_v0 }
0x1b32   : > { %v3339_v52 = vpop.f32.mrb[40].mxu0 }
0x1b33   : > { %v7763_v53 = vpop.f32.mrb[41].mxu0  ;;  %7773 = vmatmul.mubr.msk.f32.vlgmr.msra.gmra.mrb[18].mxu1 %vm1025_vm2, %v3339_v52  ;;  %v6993_v52 = vld [vmem:[%s10395_s17 + $0x1] ss:$0 sm:$0xff] }
0x1b34   : > { %7842 = vmatprep.mubr.msk.f32.mxu1 %vm9230_vm0, %v9231_v1  ;;  %8535 = vmatpush3.bf16.msra.mxu1 %v8534_v31  ;;  %v8570_v31 = vpack.c.bf16 %v3677_v29, %v3676_v28  ;;  %v3857_v28 = vld [vmem:[#allocation2 + $0x368] sm:$0xff]  ;;  %v3860_v29 = vld [vmem:[#allocation2 + $0x380] sm:$0xff] }
0x1b35   : > { %8536 = vmatprep.subr.bf16.mxu1 %v9229_v0 }
0x1b38   : > { %8538 = vmatpush3.bf16.msra.mxu1 %v8537_v32  ;;  %v8573_v32 = vpack.c.bf16 %v3679_v18, %v3678_v30  ;;  %v8587_v30 = vpack.c.bf16 %v3853_v26, %v3850_v23  ;;  %v3856_v18 = vld [vmem:[#allocation2 + $0x360] sm:$0xff] }
0x1b39   : > { %8539 = vmatprep.subr.bf16.mxu1 %v9229_v0 }
0x1b3c   : > { %8541 = vmatpush3.bf16.msra.mxu1 %v8540_v37  ;;  %v8576_v37 = vpack.c.bf16 %v3681_v36, %v3680_v33  ;;  %v3863_v33 = vld [vmem:[#allocation2 + $0x398] sm:$0xff]  ;;  %v3866_v36 = vld [vmem:[#allocation2 + $0x3b0] sm:$0xff] }
0x1b3d   : > { %8542 = vmatprep.subr.bf16.mxu1 %v9229_v0 }
0x1b40   : > { %8544 = vmatpush3.bf16.msra.mxu1 %v8543_v40  ;;  %v8579_v40 = vpack.c.bf16 %v3683_v39, %v3682_v38  ;;  %v8593_v38 = vpack.c.bf16 %v3866_v36, %v3863_v33  ;;  %v3862_v39 = vld [vmem:[#allocation2 + $0x390] sm:$0xff]  ;;  %v4052_v33 = vld [vmem:[#allocation5 + $0x100] sm:$0xff]  ;;  %v4053_v36 = vld [vmem:[#allocation5 + $0x108] sm:$0xff] }
0x1b41   : > { %8545 = vmatprep.subr.bf16.mxu1 %v9229_v0 }
0x1b44   : > { %8547 = vmatpush3.bf16.msra.mxu1 %v8546_v43 }
0x1b45   : > { %8548 = vmatprep.subr.bf16.mxu1 %v9229_v0 }
0x1b48   : > { %8550 = vmatpush3.bf16.msra.mxu1 %v8549_v34 }
0x1b49   : > { %8551 = vmatprep.subr.bf16.mxu1 %v9229_v0 }
0x1c06   : > { %v3412_v54 = vpop.f32.mrb[18].mxu1 }
0x1c07   : > { %v3416_v55 = vadd.f32 %v3412_v54, %v3176_v47  ;;  %v7774_v56 = vpop.f32.mrb[19].mxu1  ;;  %v8552_v47 = vpack.c.bf16 %v3557_v8, %v3556_v46  ;;  %v6994_v54 = vld [vmem:[%s10396_s18 + $0x1] ss:$0 sm:$0xff] }
0x1c08   : > { %v7002_v46 = vld [vmem:[%s10398_s20 + $0x1] ss:$0 sm:$0xff] }
0x1c09   : > { %v3417_v57 = vadd.f32 %v3416_v55, %v9726_v60  ;;  %8553 = vmatpush3.bf16.msra.mxu1 %v8552_v47 }
0x1c0a   : > { %8554 = vmatprep.subr.bf16.mxu1 %v9229_v0 }
0x1c0b   : > { %3422 = vadd.xlane.f32.xlu1 %v3417_v57 }
0x1c98   : > { %v3423_v60 = vpop.xlane.xlu1 %3422 }
0x1c99   : > { %v3424_v7 = vmul.f32 0.0078125, %v3423_v60 }
0x1c9b   : > { %v9838_v9 = vsub.f32 %v3417_v57, %v3424_v7  ;;  %v3558_v57 = vld [vmem:[#allocation8 + $0xf0] sm:$0xff] }
0x1c9c   : > { %v8555_v59 = vpack.c.bf16 %v3559_v58, %v3558_v57  ;;  %v3858_v58 = vld [vmem:[#allocation2 + $0x370] sm:$0xff] }
0x1c9d   : > { %v3426_v10 = vmul.f32 %v9838_v9, %v9838_v9 }
0x1c9e   : > { %8556 = vmatpush3.bf16.msra.mxu1 %v8555_v59  ;;  %v3861_v59 = vld [vmem:[#allocation2 + $0x388] sm:$0xff] }
0x1c9f   : > { %3427 = vadd.xlane.f32.xlu1 %v3426_v10  ;;  %7880 = vmatprep.subr.mxu1 %v9231_v1  ;;  %v3668_v10 = vld [vmem:[%s10455_s30] sm:$0xff] }
0x1ca0   : > { %v8558_v13 = vpack.c.bf16 %v3669_v11, %v3668_v10  ;;  %v3882_v10 = vld [vmem:[#allocation2 + $0x430] sm:$0xff]  ;;  %v3885_v11 = vld [vmem:[#allocation2 + $0x448] sm:$0xff] }
0x1ca1   : > { %v8632_v12 = vpack.c.bf16 %v3885_v11, %v3882_v10  ;;  %v7006_v11 = vld [vmem:[%s10388_s10 + $0x6] sm:$0x7] }
0x1d2c   : > { %v3428_v48 = vpop.xlane.xlu1 %3427 }
0x1d2d   : > { %v3429_v49 = vmul.f32 0.0078125, %v3428_v48  ;;  %v3762_v48 = vld [vmem:[%s10456_s2] sm:$0xff]  ;;  %s704_s2 = sand.u32 1, %s10458_s21  }
0x1d2e   : > { %s6945_s5 = sshll.u32 %s704_s2, 3  ;;  %s6820_s21 = scalar_lea.sflag [#allocation4], %s704_s2 }
0x1d2f   : > { %v3430_v50 = vadd.f32 1e-05, %v3429_v49  ;;  %v3845_v49 = vld [vmem:[#allocation2 + $0x308] sm:$0xff]  ;;  %s706_s4 = scalar_lea.vmem [#allocation10], %s6945_s5  ;;  %s9149_s5 = sshll.u32 %s9235_s3, 4  ;;  %s9150_s5 = int_to_ptr.vmem [resolvable:$false] %s9149_s5 }
0x1d30   : > { %s6833_s29 = sshll.u32 %s706_s4, 4  ;;  %s9151_s27 = scalar_lea.vmem %s9150_s5, 256  ;;  %s10337_s29 = int_to_ptr.vmem [resolvable:$true] %s6833_s29 }
0x1d31   : > { %8987 = vrsqrt.f32 %v3430_v50  ;;  %v3848_v50 = vld [vmem:[#allocation2 + $0x320] sm:$0xff]  ;;  %p9152_p8 = scmp.lt.s32.totalorder %s10337_s29, %s9150_s5 }
0x1d3b   : > { %v8988_v51 = vpop.eup %8987 }
0x1d3c   : > { %v3432_v53 = vmul.f32 %v8988_v51, %v9838_v9  ;;  %v8581_v51 = vpack.c.bf16 %v3848_v50, %v3845_v49  ;;  %v3874_v49 = vld [vmem:[#allocation2 + $0x3f0] sm:$0xff]  ;;  %v3877_v50 = vld [vmem:[#allocation2 + $0x408] sm:$0xff] }
0x1d3e   : > { %v3439_v55 = vmul.f32 %v6993_v52, %v3432_v53  ;;  %v3846_v52 = vld [vmem:[#allocation2 + $0x310] sm:$0xff]  ;;  %v3849_v53 = vld [vmem:[#allocation2 + $0x328] sm:$0xff] }
0x1d40   : > { %v3446_v56 = vadd.f32 %v6994_v54, %v3439_v55  ;;  %v8614_v54 = vpack.c.bf16 %v3849_v53, %v3846_v52  ;;  %v3852_v55 = vld [vmem:[#allocation2 + $0x340] sm:$0xff]  ;;  %v8603_v53 = vpack.c.bf16 %v3877_v50, %v3874_v49 }
0x1d41   : > { %v3884_v52 = vld [vmem:[#allocation2 + $0x440] sm:$0xff] }
0x1d42   : > { %7808 = vmatmul.mubr.f32.vlgmr.msra.gmra.mrb[42].mxu0 %v3446_v56 }
0x1d43   : > { %7877 = vmatprep.mubr.msk.f32.mxu0 %vm9230_vm0, %v9231_v1  ;;  %8559 = vmatpush3.bf16.msra.mxu0 %v8558_v13  ;;  %v7003_v13 = vld [vmem:[%s10457_s26] ss:$0 sm:$0xff] }
0x1d44   : > { %8560 = vmatprep.subr.bf16.mxu0 %v9229_v0 }
0x1d47   : > { %8562 = vmatpush3.bf16.msra.mxu0 %v8561_v35 }
0x1d48   : > { %8563 = vmatprep.subr.bf16.mxu0 %v9229_v0 }
0x1d4b   : > { %8565 = vmatpush3.bf16.msra.mxu0 %v8564_v16  ;;  %v3847_v16 = vld [vmem:[#allocation2 + $0x318] sm:$0xff] }
0x1d4c   : > { %8566 = vmatprep.subr.bf16.mxu0 %v9229_v0 }
0x1d4f   : > { %8568 = vmatpush3.bf16.msra.mxu0 %v8567_v27 }
0x1d50   : > { %8569 = vmatprep.subr.bf16.mxu0 %v9229_v0 }
0x1d53   : > { %8571 = vmatpush3.bf16.msra.mxu0 %v8570_v31  ;;  %v8589_v31 = vpack.c.bf16 %v3860_v29, %v3857_v28 }
0x1d54   : > { %8572 = vmatprep.subr.bf16.mxu0 %v9229_v0 }
0x1d57   : > { %8574 = vmatpush3.bf16.msra.mxu0 %v8573_v32  ;;  %v3859_v32 = vld [vmem:[#allocation2 + $0x378] sm:$0xff] }
0x1d58   : > { %8575 = vmatprep.subr.bf16.mxu0 %v9229_v0 }
0x1d5b   : > { %8577 = vmatpush3.bf16.msra.mxu0 %v8576_v37  ;;  %v8591_v37 = vpack.c.bf16 %v3859_v32, %v3856_v18 }
0x1d5c   : > { %8578 = vmatprep.subr.bf16.mxu0 %v9229_v0 }
0x1d5f   : > { %8580 = vmatpush3.bf16.msra.mxu0 %v8579_v40  ;;  %v3865_v40 = vld [vmem:[#allocation2 + $0x3a8] sm:$0xff] }
0x1d60   : > { %8613 = vmatprep.subr.bf16.mxu0 %v9229_v0 }
0x1e15   : > { %v3538_v62 = vpop.f32.mrb[42].mxu0 }
0x1e16   : > { %v3539_v63 = vadd.f32 %v6996_v61, %v3538_v62  ;;  %v7809_v2 = vpop.f32.mrb[43].mxu0  ;;  %v8620_v61 = vpack.c.bf16 %v3861_v59, %v3858_v58  ;;  %v3864_v62 = vld [vmem:[#allocation2 + $0x3a0] sm:$0xff]  ;;  %v3890_v58 = vld [vmem:[#allocation2 + $0x470] sm:$0xff] }
0x1e18   : > { %v3542_v3 = vmax.f32 %v3539_v63, 0.0  ;;  %v3867_v63 = vld [vmem:[#allocation2 + $0x3b8] sm:$0xff] }
0x1e19   : > { %v8623_v2 = vpack.c.bf16 %v3867_v63, %v3864_v62  ;;  %v3886_v62 = vld [vmem:[#allocation2 + $0x450] sm:$0xff]  ;;  %v3889_v63 = vld [vmem:[#allocation2 + $0x468] sm:$0xff] }
0x1e1a   : > { %7843 = vmatmul.mubr.f32.vlgmr.msra.gmra.mrb[20].mxu1 %v3542_v3  ;;  %v3870_v3 = vld [vmem:[#allocation2 + $0x3d0] sm:$0xff] }
0x1e1b   : > { %7882 = vmatprep.mubr.msk.f32.mxu1 %vm9230_vm0, %v9231_v1  ;;  %7881 = vmatpush3.msra.mxu1 %v3762_v48 }
0x1e1c   : > { %8582 = vmatprep.subr.bf16.mxu1 %v8581_v51  ;;  %v3881_v51 = vld [vmem:[#allocation2 + $0x428] sm:$0xff] }
0x1eed   : > { %v3634_v6 = vpop.f32.mrb[20].mxu1 }
0x1eee   : > { %v3635_v60 = vadd.f32 %v6998_v5, %v3634_v6  ;;  %v7844_v7 = vpop.f32.mrb[21].mxu1  ;;  %v3873_v5 = vld [vmem:[#allocation2 + $0x3e8] sm:$0xff] }
0x1eef   : > { %v8626_v6 = vpack.c.bf16 %v3873_v5, %v3870_v3  ;;  %v3879_v7 = vld [vmem:[#allocation2 + $0x418] sm:$0xff]  ;;  %v8611_v3 = vpack.c.bf16 %v3889_v63, %v3886_v62 }
0x1ef0   : > { %v3638_v9 = vadd.f32 %v3635_v60, %v3446_v56  ;;  %v3855_v56 = vld [vmem:[#allocation2 + $0x358] sm:$0xff]  ;;  %v3876_v60 = vld [vmem:[#allocation2 + $0x400] sm:$0xff] }
0x1ef1   : > { %v8617_v57 = vpack.c.bf16 %v3855_v56, %v3852_v55  ;;  %v3880_v55 = vld [vmem:[#allocation2 + $0x420] sm:$0xff]  ;;  %v3883_v56 = vld [vmem:[#allocation2 + $0x438] sm:$0xff] }
0x1ef2   : > { %3643 = vadd.xlane.f32.xlu1 %v3638_v9  ;;  %v8607_v59 = vpack.c.bf16 %v3883_v56, %v3880_v55  ;;  %v3891_v5 = vld [vmem:[#allocation2 + $0x478] sm:$0xff] }
0x1ef3   : > { %v4059_v62 = vld [vmem:[#allocation5 + $0x138] sm:$0xff] }
0x1f7f   : > { %v3644_v17 = vpop.xlane.xlu1 %3643 }
0x1f80   : > { %v3645_v19 = vmul.f32 0.0078125, %v3644_v17  ;;  %v3851_v17 = vld [vmem:[#allocation2 + $0x338] sm:$0xff] }
0x1f82   : > { %v3646_v20 = vsub.f32 %v3638_v9, %v3645_v19  ;;  %v8629_v9 = vpack.c.bf16 %v3879_v7, %v3876_v60  ;;  %v3854_v19 = vld [vmem:[#allocation2 + $0x350] sm:$0xff]  ;;  %v7004_v60 = vld [vmem:[%s10384_s6] ss:$0 sm:$0xff] }
0x1f84   : > { %v3647_v21 = vmul.f32 %v3646_v20, %v3646_v20 }
0x1f86   : > { %3648 = vadd.xlane.f32.xlu1 %v3647_v21  ;;  %v8585_v21 = vpack.c.bf16 %v3854_v19, %v3851_v17 }
0x2013   : > { %v3649_v41 = vpop.xlane.xlu1 %3648 }
0x2014   : > { %v3650_v42 = vmul.f32 0.0078125, %v3649_v41  ;;  %v3869_v41 = vld [vmem:[#allocation2 + $0x3c8] sm:$0xff] }
0x2016   : > { %v3651_v43 = vadd.f32 1e-05, %v3650_v42  ;;  %v3872_v42 = vld [vmem:[#allocation2 + $0x3e0] sm:$0xff] }
0x2018   : > { %8989 = vrsqrt.f32 %v3651_v43  ;;  %v8595_v43 = vpack.c.bf16 %v3865_v40, %v3862_v39  ;;  %v4054_v40 = vld [vmem:[#allocation5 + $0x110] sm:$0xff] }
0x2022   : > { %v8990_v44 = vpop.eup %8989 }
0x2023   : > { %v3653_v34 = vmul.f32 %v8990_v44, %v3646_v20  ;;  %v8583_v20 = vpack.c.bf16 %v3847_v16, %v3844_v15  ;;  %v8597_v44 = vpack.c.bf16 %v3872_v42, %v3869_v41  ;;  %v3906_v16 = vrot.slane %v7006_v11, %v9568_v25  ;;  %v4055_v41 = vld [vmem:[#allocation5 + $0x118] sm:$0xff] }
0x2024   : > { %v8641_v42 = vpack.c.bf16 %v4055_v41, %v4054_v40 }
0x2025   : > { %v3660_v8 = vmul.f32 %v7001_v45, %v3653_v34  ;;  %v3868_v45 = vld [vmem:[#allocation2 + $0x3c0] sm:$0xff]  ;;  %v3871_v34 = vld [vmem:[#allocation2 + $0x3d8] sm:$0xff] }
0x2027   : > { %v3667_v47 = vadd.f32 %v7002_v46, %v3660_v8  ;;  %v3875_v46 = vld [vmem:[#allocation2 + $0x3f8] sm:$0xff]  ;;  %v3878_v8 = vld [vmem:[#allocation2 + $0x410] sm:$0xff] }
0x2028   : > { %v8601_v48 = vpack.c.bf16 %v3878_v8, %v3875_v46 }
0x2029   : > { %7878 = vmatmul.mubr.f32.vlgmr.msra.gmra.mrb[44].mxu0 %v3667_v47  ;;  %v8599_v47 = vpack.c.bf16 %v3871_v34, %v3868_v45 }
0x202a   : > { %7917 = vmatprep.mubr.msk.f32.mxu0 %vm9230_vm0, %v9231_v1  ;;  %8615 = vmatpush3.bf16.msra.mxu0 %v8614_v54  ;;  %v8605_v54 = vpack.c.bf16 %v3884_v52, %v3881_v51 }
0x202b   : > { %8616 = vmatprep.subr.bf16.mxu0 %v9229_v0 }
0x202e   : > { %8618 = vmatpush3.bf16.msra.mxu0 %v8617_v57  ;;  %v3887_v57 = vld [vmem:[#allocation2 + $0x458] sm:$0xff] }
0x202f   : > { %8619 = vmatprep.subr.bf16.mxu0 %v9229_v0 }
0x2032   : > { %8621 = vmatpush3.bf16.msra.mxu0 %v8620_v61  ;;  %v8609_v61 = vpack.c.bf16 %v3890_v58, %v3887_v57  ;;  %v4056_v57 = vld [vmem:[#allocation5 + $0x120] sm:$0xff]  ;;  %v4057_v58 = vld [vmem:[#allocation5 + $0x128] sm:$0xff] }
0x2033   : > { %8622 = vmatprep.subr.bf16.mxu0 %v9229_v0 }
0x2036   : > { %8624 = vmatpush3.bf16.msra.mxu0 %v8623_v2  ;;  %v3888_v2 = vld [vmem:[#allocation2 + $0x460] sm:$0xff] }
0x2037   : > { %8625 = vmatprep.subr.bf16.mxu0 %v9229_v0 }
0x203a   : > { %8627 = vmatpush3.bf16.msra.mxu0 %v8626_v6  ;;  %v8635_v6 = vpack.c.bf16 %v3891_v5, %v3888_v2 }
0x203b   : > { %8628 = vmatprep.subr.bf16.mxu0 %v9229_v0 }
0x203e   : > { %8630 = vmatpush3.bf16.msra.mxu0 %v8629_v9 }
0x203f   : > { %8631 = vmatprep.subr.bf16.mxu0 %v9229_v0 }
0x2042   : > { %8633 = vmatpush3.bf16.msra.mxu0 %v8632_v12  ;;  %v3902_v12 = vrot.slane %v7006_v11, %v9561_v22 }
0x2043   : > { %8634 = vmatprep.subr.bf16.mxu0 %v9229_v0 }
0x2046   : > { %8636 = vmatpush3.bf16.msra.mxu0 %v8635_v6 }
0x2047   : > { %8643 = vmatprep.subr.bf16.mxu0 %v9229_v0 }
0x20fc   : > { %v3757_v14 = vpop.f32.mrb[44].mxu0 }
0x20fd   : > { %v3758_v35 = vadd.f32 %v7003_v13, %v3757_v14  ;;  %v7879_v4 = vpop.f32.mrb[45].mxu0 }
0x20ff   : > { %8991 = vtanh.f32 %v3758_v35  ;;  %v3898_v35 = vrot.slane %v7006_v11, %v9566_v24 }
0x2109   : > { %v8992_v27 = vpop.eup %8991 }
0x210a   : > { %7883 = vmatmul.mubr.msk.f32.vlgmr.msra.gmra.mrb[22].mxu1 %vm1103_vm3, %v8992_v27 }
0x210b   : > { %8584 = vmatpush1.bf16.msra.mxu1 %v8583_v20  ;;  %3974 = vmatprep.mubr.f32.mxu1 %v9231_v1 }
0x210c   : > { %8586 = vmatprep.subr.bf16.mxu1 %v8585_v21 }
0x210f   : > { %8588 = vmatpush1.bf16.msra.mxu1 %v8587_v30 }
0x2110   : > { %8590 = vmatprep.subr.bf16.mxu1 %v8589_v31 }
0x2113   : > { %8592 = vmatpush1.bf16.msra.mxu1 %v8591_v37 }
0x2114   : > { %8594 = vmatprep.subr.bf16.mxu1 %v8593_v38  ;;  %v8638_v38 = vpack.c.bf16 %v4053_v36, %v4052_v33 }
0x2117   : > { %8596 = vmatpush1.bf16.msra.mxu1 %v8595_v43 }
0x2118   : > { %8598 = vmatprep.subr.bf16.mxu1 %v8597_v44 }
0x211b   : > { %8600 = vmatpush1.bf16.msra.mxu1 %v8599_v47 }
0x211c   : > { %8602 = vmatprep.subr.bf16.mxu1 %v8601_v48 }
0x211f   : > { %8604 = vmatpush1.bf16.msra.mxu1 %v8603_v53 }
0x2120   : > { %8606 = vmatprep.subr.bf16.mxu1 %v8605_v54 }
0x2123   : > { %8608 = vmatpush1.bf16.msra.mxu1 %v8607_v59  ;;  %v4058_v59 = vld [vmem:[#allocation5 + $0x130] sm:$0xff] }
0x2124   : > { %8610 = vmatprep.subr.bf16.mxu1 %v8609_v61  ;;  %v8644_v61 = vpack.c.bf16 %v4057_v58, %v4056_v57  ;;  %v8647_v63 = vpack.c.bf16 %v4059_v62, %v4058_v59 }
0x2127   : > { %8612 = vmatpush1.bf16.msra.mxu1 %v8611_v3 }
0x2128   : > { %7920 = vmatprep.subr.mxu1 %v9231_v1 }
0x21dd   : > { %v3839_v7 = vpop.f32.mrb[22].mxu1 }
0x21de   : > { %v9956_v9 = vadd.f32 %v7004_v60, %v3839_v7  ;;  %v7884_v10 = vpop.f32.mrb[23].mxu1 }
0x21e0   : > { %3975 = vmatmul.mubr.f32.vlgmr.msra.gmra.mrb[24].mxu1 %v9956_v9  ;;  %7918 = vmatmul.mubr.f32.vlgmr.msra.gmra.mrb[46].mxu0 %v9956_v9 }
0x21e1   : > { %7922 = vmatprep.mubr.msk.f32.mxu1 %vm9230_vm0, %v9231_v1  ;;  %7959 = vmatprep.mubr.msk.f32.mxu0 %vm9230_vm0, %v9231_v1 }
0x21e2   : > { %8645 = vmatpush3.bf16.msra.mxu0 %v8644_v61 }
0x21e3   : > { %8646 = vmatprep.subr.bf16.mxu0 %v9229_v0 }
0x21e6   : > { %8648 = vmatpush3.bf16.msra.mxu0 %v8647_v63 }
0x21e7   : > { %8649 = vmatprep.subr.bf16.mxu0 %v9229_v0 }
0x22b3   : > { %v3976_v13 = vpop.f32.mrb[24].mxu1  ;;  %v4047_v14 = vpop.f32.mrb[46].mxu0 }
0x22b4   : > { %v3978_v4 = vpop.f32.mrb[25].mxu1  ;;  %v7919_v15 = vpop.f32.mrb[47].mxu0  ;;  %v9974_v19 = vadd.f32 %v3976_v13, %v3898_v35  ;;  %v9977_v20 = vadd.f32 %v4047_v14, %v3906_v16 }
0x22b5   : > { %v9970_v17 = vadd.f32 %v3978_v4, %v3902_v12 }
0x22b7   : > { %7921 = vmatpush3.xpose.msk.msra.mxu1 %vm1025_vm2, %v9970_v17 }
0x22b8   : > { %7925 = vmatprep.subr.mxu1 %v9231_v1 }
0x22ba   : > { %7923 = vmatmul.mubr.msk.f32.vlgmr.msra.gmra.mrb[26].mxu1 %vm1025_vm2, %v9974_v19 }
0x22bb   : > { %7926 = vmatpush3.msra.mxu1 %v9977_v20  ;;  %7927 = vmatprep.mubr.msk.f32.mxu1 %vm9230_vm0, %v9231_v1 }
0x22bc   : > { %8637 = vmatprep.subr.bf16.mxu1 %v9229_v0 }
0x238d   : > { %v4149_v21 = vpop.f32.mrb[26].mxu1 }
0x238e   : > { %v4153_v23 = vmul.f32 0.17677669, %v4149_v21  ;;  %v7924_v26 = vpop.f32.mrb[27].mxu1 }
0x238f   : > { %v4060_v26 = vld [vmem:[#allocation5 + $0x140] sm:$0xff] }
0x2390   : > { %v4154_v27 = vsel %vm1103_vm3, %v4153_v23, -inf }
0x2391   : > { %4155 = vmax.xlane.f32.xlu0 %v4154_v27  ;;  %v4061_v27 = vld [vmem:[#allocation5 + $0x148] sm:$0xff] }
0x23a7   : > { %4403 = vrot.lane.b32.xlu0 %v9977_v20, %s9232_s23 }
0x23ab   : > { %4555 = vrot.lane.b32.xlu0 %v9970_v17, %s9233_s28 }
0x241e   : > { %v4156_v28 = vpop.xlane.xlu0 %4155 }
0x241f   : > { %v4157_v29 = vsub.f32 %v4153_v23, %v4156_v28  ;;  %v4062_v28 = vld [vmem:[#allocation5 + $0x150] sm:$0xff] }
0x2421   : > { %v4158_v30 = vmul.f32 1.442695, %v4157_v29  ;;  %v8650_v29 = vpack.c.bf16 %v4061_v27, %v4060_v26  ;;  %v5070_v26 = vld [vmem:[#allocation7 + $0x130] sm:$0xff]  ;;  %v5071_v27 = vld [vmem:[#allocation7 + $0x138] sm:$0xff] }
0x2422   : > { %v4404_v46 = vpop.permute.xlu0 %4403 }
0x2423   : > { %8993 = vpow2.f32 %v4158_v30 }
0x2426   : > { %v4556_v2 = vpop.permute.xlu0 %4555 }
0x242d   : > { %v8994_v31 = vpop.eup %8993 }
0x242e   : > { %v4160_v18 = vsel %vm1103_vm3, %v8994_v31, 0.0 }
0x242f   : > { %4161 = vadd.xlane.f32.xlu1 %v4160_v18 }
0x2440   : > { %4314 = vrot.lane.b32.xlu1 %v9970_v17, %s9232_s23 }
0x2444   : > { %4312 = vrot.lane.b32.xlu1 %v9974_v19, %s9232_s23 }
0x24bc   : > { %v4162_v32 = vpop.xlane.xlu1 %4161 }
0x24bd   : > { %8995 = vrcp.f32 %v4162_v32 }
0x24c0   : > { %v4315_v43 = vpop.permute.xlu1 %4314 }
0x24c4   : > { %v4313_v34 = vpop.permute.xlu1 %4312 }
0x24c7   : > { %v8996_v37 = vpop.eup %8995 }
0x24c8   : > { %v4164_v39 = vmul.f32 %v8996_v37, %v8994_v31 }
0x24ca   : > { %7928 = vmatmul.mubr.msk.f32.vlgmr.msra.gmra.mrb[28].mxu1 %vm1103_vm3, %v4164_v39 }
0x24cb   : > { %8639 = vmatpush3.bf16.msra.mxu1 %v8638_v38  ;;  %7938 = vmatprep.mubr.msk.f32.mxu1 %vm9230_vm0, %v9231_v1 }
0x24cc   : > { %8640 = vmatprep.subr.bf16.mxu1 %v9229_v0 }
0x24cf   : > { %8642 = vmatpush3.bf16.msra.mxu1 %v8641_v42 }
0x24d0   : > { %7941 = vmatprep.subr.mxu1 %v9231_v1 }
0x259d   : > { %v4234_v44 = vpop.f32.mrb[28].mxu1 }
0x259e   : > { %v7929_v45 = vpop.f32.mrb[29].mxu1  ;;  %7939 = vmatmul.mubr.msk.f32.vlgmr.msra.gmra.mrb[30].mxu1 %vm1025_vm2, %v4234_v44 }
0x259f   : > { %7942 = vmatpush3.xpose.msk.msra.mxu1 %vm1025_vm2, %v4315_v43  ;;  %7943 = vmatprep.mubr.msk.f32.mxu1 %vm9230_vm0, %v9231_v1 }
0x25a0   : > { %7946 = vmatprep.subr.mxu1 %v9231_v1 }
0x25a2   : > { %7944 = vmatmul.mubr.msk.f32.vlgmr.msra.gmra.mrb[32].mxu1 %vm1025_vm2, %v4313_v34 }
0x25a3   : > { %7947 = vmatpush3.msra.mxu1 %v4404_v46  ;;  %7948 = vmatprep.mubr.msk.f32.mxu1 %vm9230_vm0, %v9231_v1 }
0x25a4   : > { %7962 = vmatprep.subr.mxu1 %v9231_v1 }
0x2671   : > { %v10009_v8 = vpop.f32.mrb[30].mxu1 }
0x2672   : > { %v7940_v47 = vpop.f32.mrb[31].mxu1 }
0x2675   : > { %v4386_v48 = vpop.f32.mrb[32].mxu1 }
0x2676   : > { %v4390_v49 = vmul.f32 0.17677669, %v4386_v48  ;;  %v7945_v50 = vpop.f32.mrb[33].mxu1 }
0x2677   : > { %v4064_v50 = vld [vmem:[#allocation5 + $0x160] sm:$0xff] }
0x2678   : > { %v4391_v51 = vsel %vm1103_vm3, %v4390_v49, -inf }
0x2679   : > { %4392 = vmax.xlane.f32.xlu1 %v4391_v51  ;;  %v4065_v51 = vld [vmem:[#allocation5 + $0x168] sm:$0xff] }
0x2706   : > { %v4393_v52 = vpop.xlane.xlu1 %4392 }
0x2707   : > { %v4394_v53 = vsub.f32 %v4390_v49, %v4393_v52  ;;  %v4066_v52 = vld [vmem:[#allocation5 + $0x170] sm:$0xff] }
0x2709   : > { %v4395_v54 = vmul.f32 1.442695, %v4394_v53  ;;  %v8656_v53 = vpack.c.bf16 %v4065_v51, %v4064_v50  ;;  %v5168_v50 = vld [vmem:[#allocation8 + $0x140] sm:$0xff]  ;;  %v5169_v51 = vld [vmem:[#allocation8 + $0x148] sm:$0xff] }
0x270b   : > { %8997 = vpow2.f32 %v4395_v54  ;;  %v4067_v54 = vld [vmem:[#allocation5 + $0x178] sm:$0xff] }
0x2715   : > { %v8998_v55 = vpop.eup %8997 }
0x2716   : > { %v4397_v56 = vsel %vm1103_vm3, %v8998_v55, 0.0 }
0x2717   : > { %4398 = vadd.xlane.f32.xlu0 %v4397_v56 }
0x272d   : > { %4553 = vrot.lane.b32.xlu0 %v9974_v19, %s9233_s28 }
0x27a4   : > { %v4399_v3 = vpop.xlane.xlu0 %4398 }
0x27a5   : > { %8999 = vrcp.f32 %v4399_v3 }
0x27a8   : > { %v4554_v60 = vpop.permute.xlu0 %4553 }
0x27af   : > { %v9000_v5 = vpop.eup %8999 }
0x27b0   : > { %v4401_v6 = vmul.f32 %v9000_v5, %v8998_v55  ;;  %v8659_v55 = vpack.c.bf16 %v4067_v54, %v4066_v52  ;;  %v8698_v52 = vpack.c.bf16 %v5169_v51, %v5168_v50  ;;  %v5171_v54 = vld [vmem:[#allocation8 + $0x158] sm:$0xff] }
0x27b2   : > { %7949 = vmatmul.mubr.msk.f32.vlgmr.msra.gmra.mrb[34].mxu1 %vm1103_vm3, %v4401_v6 }
0x27b3   : > { %7963 = vmatpush3.xpose.msk.msra.mxu1 %vm1025_vm2, %v4556_v2  ;;  %7964 = vmatprep.mubr.msk.f32.mxu1 %vm9230_vm0, %v9231_v1 }
0x27b4   : > { %7967 = vmatprep.subr.mxu1 %v9231_v1 }
0x27b6   : > { %7965 = vmatmul.mubr.msk.f32.vlgmr.msra.gmra.mrb[36].mxu1 %vm1025_vm2, %v4554_v60 }
0x27b7   : > { %7969 = vmatprep.mubr.msk.f32.mxu1 %vm9230_vm0, %v9231_v1 }
0x2885   : > { %v4475_v7 = vpop.f32.mrb[34].mxu1 }
0x2886   : > { %v7950_v10 = vpop.f32.mrb[35].mxu1  ;;  %7960 = vmatmul.mubr.msk.f32.vlgmr.msra.gmra.mrb[48].mxu0 %vm1025_vm2, %v4475_v7  ;;  %v5064_v7 = vld [vmem:[#allocation7 + $0x100] sm:$0xff] }
0x2887   : > { %7980 = vmatprep.mubr.msk.f32.mxu0 %vm9230_vm0, %v9231_v1  ;;  %8651 = vmatpush3.bf16.msra.mxu0 %v8650_v29  ;;  %v5065_v10 = vld [vmem:[#allocation7 + $0x108] sm:$0xff]  ;;  %v5072_v29 = vld [vmem:[#allocation7 + $0x140] sm:$0xff] }
0x2888   : > { %8652 = vmatprep.subr.bf16.mxu0 %v9229_v0 }
0x2889   : > { %v4627_v11 = vpop.f32.mrb[36].mxu1 }
0x288a   : > { %v4631_v12 = vmul.f32 0.17677669, %v4627_v11  ;;  %v7966_v13 = vpop.f32.mrb[37].mxu1  ;;  %v5066_v11 = vld [vmem:[#allocation7 + $0x110] sm:$0xff] }
0x288b   : > { %v5067_v13 = vld [vmem:[#allocation7 + $0x118] sm:$0xff] }
0x288c   : > { %v4632_v14 = vsel %vm1103_vm3, %v4631_v12, -inf }
0x288d   : > { %4633 = vmax.xlane.f32.xlu1 %v4632_v14  ;;  %v8665_v14 = vpack.c.bf16 %v5067_v13, %v5066_v11  ;;  %v7030_v11 = vld [vmem:[%s10392_s14 + $0x2] ss:$0 sm:$0xff] }
0x289e   : > { %4643 = vrot.lane.b32.xlu1 %v9977_v20, %s9233_s28 }
0x28a2   : > { %4795 = vrot.lane.b32.xlu1 %v9970_v17, %s9234_s1  ;;  %v4063_v17 = vld [vmem:[#allocation5 + $0x158] sm:$0xff] }
0x28a3   : > { %v8653_v30 = vpack.c.bf16 %v4063_v17, %v4062_v28  ;;  %v8671_v28 = vpack.c.bf16 %v5071_v27, %v5070_v26  ;;  %v5073_v17 = vld [vmem:[#allocation7 + $0x148] sm:$0xff]  ;;  %v5289_v26 = vld [vmem:[#allocation2 + $0x4a0] sm:$0xff] }
0x28a4   : > { %v5285_v27 = vld [vmem:[#allocation2 + $0x480] sm:$0xff] }
0x28a5   : > { %8654 = vmatpush3.bf16.msra.mxu0 %v8653_v30  ;;  %v5074_v30 = vld [vmem:[#allocation7 + $0x150] sm:$0xff] }
0x28a6   : > { %4793 = vrot.lane.b32.xlu1 %v9974_v19, %s9234_s1  ;;  %8655 = vmatprep.subr.bf16.mxu0 %v9229_v0  ;;  %v7008_v19 = vld [vmem:[%s10390_s12 + $0x2] ss:$0 sm:$0xff] }
0x28a7   : > { %v4311_v31 = vadd.f32 %v7008_v19, %v10009_v8  ;;  %v8674_v19 = vpack.c.bf16 %v5073_v17, %v5072_v29  ;;  %v5288_v29 = vld [vmem:[#allocation2 + $0x498] sm:$0xff]  ;;  %v5287_v17 = vld [vmem:[#allocation2 + $0x490] sm:$0xff] }
0x291a   : > { %v4634_v35 = vpop.xlane.xlu1 %4633 }
0x291b   : > { %v4635_v4 = vsub.f32 %v4631_v12, %v4634_v35  ;;  %v8662_v12 = vpack.c.bf16 %v5065_v10, %v5064_v7  ;;  %v5068_v35 = vld [vmem:[#allocation7 + $0x120] sm:$0xff]  ;;  %v5175_v7 = vld [vmem:[#allocation8 + $0x178] sm:$0xff] }
0x291d   : > { %v4636_v15 = vmul.f32 1.442695, %v4635_v4  ;;  %v5069_v4 = vld [vmem:[#allocation7 + $0x128] sm:$0xff] }
0x291e   : > { %v4644_v16 = vpop.permute.xlu1 %4643 }
0x291f   : > { %9001 = vpow2.f32 %v4636_v15  ;;  %7968 = vmatpush3.msra.mxu1 %v4644_v16  ;;  %v8668_v15 = vpack.c.bf16 %v5069_v4, %v5068_v35  ;;  %v7032_v4 = vld [vmem:[%s10394_s16 + $0x2] ss:$0 sm:$0xff] }
0x2920   : > { %7983 = vmatprep.subr.mxu1 %v9231_v1 }
0x2922   : > { %v4796_v38 = vpop.permute.xlu1 %4795 }
0x2926   : > { %v4794_v40 = vpop.permute.xlu1 %4793 }
0x2929   : > { %v9002_v21 = vpop.eup %9001 }
0x292a   : > { %v4638_v23 = vsel %vm1103_vm3, %v9002_v21, 0.0 }
0x292b   : > { %4639 = vadd.xlane.f32.xlu0 %v4638_v23 }
0x2959   : > { %v4548_v18 = vpop.f32.mrb[48].mxu0 }
0x295a   : > { %v4552_v32 = vadd.f32 %v4548_v18, %v4311_v31  ;;  %v7961_v33 = vpop.f32.mrb[49].mxu0  ;;  %v5075_v31 = vld [vmem:[#allocation7 + $0x158] sm:$0xff] }
0x295b   : > { %v8677_v18 = vpack.c.bf16 %v5075_v31, %v5074_v30  ;;  %v5077_v33 = vld [vmem:[#allocation7 + $0x168] sm:$0xff] }
0x295c   : > { %v5290_v30 = vld [vmem:[#allocation2 + $0x4a8] sm:$0xff] }
0x295d   : > { %v8742_v31 = vpack.c.bf16 %v5290_v30, %v5287_v17  ;;  %v5326_v17 = vld [vmem:[#allocation2 + $0x5c8] sm:$0xff]  ;;  %v5328_v30 = vld [vmem:[#allocation2 + $0x5d8] sm:$0xff] }
0x29b8   : > { %v4640_v36 = vpop.xlane.xlu0 %4639 }
0x29b9   : > { %9003 = vrcp.f32 %v4640_v36 }
0x29c3   : > { %v9004_v37 = vpop.eup %9003 }
0x29c4   : > { %v4642_v39 = vmul.f32 %v9004_v37, %v9002_v21  ;;  %v5078_v37 = vld [vmem:[#allocation7 + $0x170] sm:$0xff] }
0x29c6   : > { %7970 = vmatmul.mubr.msk.f32.vlgmr.msra.gmra.mrb[38].mxu1 %vm1103_vm3, %v4642_v39 }
0x29c7   : > { %7984 = vmatpush3.xpose.msk.msra.mxu1 %vm1025_vm2, %v4796_v38  ;;  %7985 = vmatprep.mubr.msk.f32.mxu1 %vm9230_vm0, %v9231_v1  ;;  %v5079_v38 = vld [vmem:[#allocation7 + $0x178] sm:$0xff] }
0x29c8   : > { %7988 = vmatprep.subr.mxu1 %v9231_v1  ;;  %v8683_v39 = vpack.c.bf16 %v5079_v38, %v5078_v37  ;;  %v5294_v37 = vld [vmem:[#allocation2 + $0x4c8] sm:$0xff]  ;;  %v5293_v38 = vld [vmem:[#allocation2 + $0x4c0] sm:$0xff] }
0x29ca   : > { %7986 = vmatmul.mubr.msk.f32.vlgmr.msra.gmra.mrb[40].mxu1 %vm1025_vm2, %v4794_v40  ;;  %v5160_v40 = vld [vmem:[#allocation8 + $0x100] sm:$0xff] }
0x29cb   : > { %7990 = vmatprep.mubr.msk.f32.mxu1 %vm9230_vm0, %v9231_v1 }
0x2a99   : > { %v4715_v41 = vpop.f32.mrb[38].mxu1 }
0x2a9a   : > { %v7971_v42 = vpop.f32.mrb[39].mxu1  ;;  %7981 = vmatmul.mubr.msk.f32.vlgmr.msra.gmra.mrb[50].mxu0 %vm1025_vm2, %v4715_v41  ;;  %v5161_v41 = vld [vmem:[#allocation8 + $0x108] sm:$0xff] }
0x2a9b   : > { %8001 = vmatprep.mubr.msk.f32.mxu0 %vm9230_vm0, %v9231_v1  ;;  %8657 = vmatpush3.bf16.msra.mxu0 %v8656_v53  ;;  %v5162_v42 = vld [vmem:[#allocation8 + $0x110] sm:$0xff] }
0x2a9c   : > { %8658 = vmatprep.subr.bf16.mxu0 %v9229_v0  ;;  %v5170_v53 = vld [vmem:[#allocation8 + $0x150] sm:$0xff] }
0x2a9d   : > { %v4867_v43 = vpop.f32.mrb[40].mxu1 }
0x2a9e   : > { %v4871_v44 = vmul.f32 0.17677669, %v4867_v43  ;;  %v7987_v45 = vpop.f32.mrb[41].mxu1  ;;  %v8686_v43 = vpack.c.bf16 %v5161_v41, %v5160_v40 }
0x2a9f   : > { %8660 = vmatpush3.bf16.msra.mxu0 %v8659_v55  ;;  %v8701_v55 = vpack.c.bf16 %v5171_v54, %v5170_v53  ;;  %v5304_v53 = vld [vmem:[#allocation2 + $0x518] sm:$0xff]  ;;  %v5307_v54 = vld [vmem:[#allocation2 + $0x530] sm:$0xff] }
0x2aa0   : > { %v4872_v34 = vsel %vm1103_vm3, %v4871_v44, -inf  ;;  %8685 = vmatprep.subr.bf16.mxu0 %v9229_v0 }
0x2aa1   : > { %4873 = vmax.xlane.f32.xlu1 %v4872_v34  ;;  %v5164_v34 = vld [vmem:[#allocation8 + $0x120] sm:$0xff] }
0x2b2e   : > { %v4874_v46 = vpop.xlane.xlu1 %4873 }
0x2b2f   : > { %v4875_v8 = vsub.f32 %v4871_v44, %v4874_v46  ;;  %v5163_v44 = vld [vmem:[#allocation8 + $0x118] sm:$0xff]  ;;  %v5165_v46 = vld [vmem:[#allocation8 + $0x128] sm:$0xff] }
0x2b30   : > { %v8689_v45 = vpack.c.bf16 %v5163_v44, %v5162_v42  ;;  %v5298_v42 = vld [vmem:[#allocation2 + $0x4e8] sm:$0xff]  ;;  %v5297_v44 = vld [vmem:[#allocation2 + $0x4e0] sm:$0xff] }
0x2b31   : > { %v4876_v47 = vmul.f32 1.442695, %v4875_v8  ;;  %v8692_v8 = vpack.c.bf16 %v5165_v46, %v5164_v34  ;;  %v5300_v34 = vld [vmem:[#allocation2 + $0x4f8] sm:$0xff]  ;;  %v5299_v46 = vld [vmem:[#allocation2 + $0x4f0] sm:$0xff] }
0x2b33   : > { %9005 = vpow2.f32 %v4876_v47  ;;  %v5166_v47 = vld [vmem:[#allocation8 + $0x130] sm:$0xff] }
0x2b3d   : > { %v9006_v48 = vpop.eup %9005 }
0x2b3e   : > { %v4878_v49 = vsel %vm1103_vm3, %v9006_v48, 0.0 }
0x2b3f   : > { %4879 = vadd.xlane.f32.xlu0 %v4878_v49 }
0x2b55   : > { %4883 = vrot.lane.b32.xlu0 %v9977_v20, %s9234_s1 }
0x2b6d   : > { %v4788_v56 = vpop.f32.mrb[50].mxu0 }
0x2b6e   : > { %v4792_v57 = vadd.f32 %v4788_v56, %v4552_v32  ;;  %v7982_v58 = vpop.f32.mrb[51].mxu0  ;;  %v5076_v32 = vld [vmem:[#allocation7 + $0x160] sm:$0xff] }
0x2b6f   : > { %v8680_v36 = vpack.c.bf16 %v5077_v33, %v5076_v32  ;;  %v5172_v56 = vld [vmem:[#allocation8 + $0x160] sm:$0xff]  ;;  %v5295_v32 = vld [vmem:[#allocation2 + $0x4d0] sm:$0xff] }
0x2b70   : > { %v5291_v33 = vld [vmem:[#allocation2 + $0x4b0] sm:$0xff] }
0x2b71   : > { %v8715_v40 = vpack.c.bf16 %v5294_v37, %v5291_v33  ;;  %v5327_v33 = vld [vmem:[#allocation2 + $0x5d0] sm:$0xff]  ;;  %v5329_v37 = vld [vmem:[#allocation2 + $0x5e0] sm:$0xff] }
0x2bcc   : > { %v4880_v59 = vpop.xlane.xlu0 %4879 }
0x2bcd   : > { %9007 = vrcp.f32 %v4880_v59 }
0x2bd0   : > { %v4884_v61 = vpop.permute.xlu0 %4883 }
0x2bd1   : > { %7989 = vmatpush3.msra.mxu1 %v4884_v61 }
0x2bd2   : > { %8661 = vmatprep.subr.bf16.mxu1 %v9229_v0 }
0x2bd7   : > { %v9008_v20 = vpop.eup %9007 }
0x2bd8   : > { %v4882_v62 = vmul.f32 %v9008_v20, %v9006_v48  ;;  %v5167_v48 = vld [vmem:[#allocation8 + $0x138] sm:$0xff] }
0x2bd9   : > { %v8695_v49 = vpack.c.bf16 %v5167_v48, %v5166_v47  ;;  %v8719_v47 = vpack.c.bf16 %v5300_v34, %v5297_v44 }
0x2bda   : > { %7991 = vmatmul.mubr.msk.f32.vlgmr.msra.gmra.mrb[42].mxu1 %vm1103_vm3, %v4882_v62 }
0x2bdb   : > { %8036 = vmatprep.mubr.msk.f32.mxu1 %vm9230_vm0, %v9231_v1  ;;  %8663 = vmatpush3.bf16.msra.mxu1 %v8662_v12 }
0x2bdc   : > { %8664 = vmatprep.subr.bf16.mxu1 %v9229_v0 }
0x2bdf   : > { %8666 = vmatpush3.bf16.msra.mxu1 %v8665_v14 }
0x2be0   : > { %8667 = vmatprep.subr.bf16.mxu1 %v9229_v0 }
0x2be3   : > { %8669 = vmatpush3.bf16.msra.mxu1 %v8668_v15 }
0x2be4   : > { %8670 = vmatprep.subr.bf16.mxu1 %v9229_v0 }
0x2be7   : > { %8672 = vmatpush3.bf16.msra.mxu1 %v8671_v28 }
0x2be8   : > { %8673 = vmatprep.subr.bf16.mxu1 %v9229_v0 }
0x2beb   : > { %8675 = vmatpush3.bf16.msra.mxu1 %v8674_v19  ;;  %v8711_v19 = vpack.c.bf16 %v5288_v29, %v5285_v27  ;;  %v5321_v27 = vld [vmem:[#allocation2 + $0x5a0] sm:$0xff]  ;;  %v5323_v29 = vld [vmem:[#allocation2 + $0x5b0] sm:$0xff] }
0x2bec   : > { %8676 = vmatprep.subr.bf16.mxu1 %v9229_v0 }
0x2bef   : > { %8678 = vmatpush3.bf16.msra.mxu1 %v8677_v18  ;;  %v5292_v18 = vld [vmem:[#allocation2 + $0x4b8] sm:$0xff] }
0x2bf0   : > { %8679 = vmatprep.subr.bf16.mxu1 %v9229_v0 }
0x2bf3   : > { %8681 = vmatpush3.bf16.msra.mxu1 %v8680_v36  ;;  %v8713_v36 = vpack.c.bf16 %v5295_v32, %v5292_v18  ;;  %v8760_v18 = vpack.c.bf16 %v5326_v17, %v5323_v29 }
0x2bf4   : > { %8682 = vmatprep.subr.bf16.mxu1 %v9229_v0 }
0x2bf7   : > { %8684 = vmatpush3.bf16.msra.mxu1 %v8683_v39  ;;  %v5296_v39 = vld [vmem:[#allocation2 + $0x4d8] sm:$0xff] }
0x2bf8   : > { %v8745_v41 = vpack.c.bf16 %v5296_v39, %v5293_v38  ;;  %v5332_v38 = vld [vmem:[#allocation2 + $0x5f8] sm:$0xff] }
0x2cad   : > { %v4955_v63 = vpop.f32.mrb[42].mxu1 }
0x2cae   : > { %v7992_v2 = vpop.f32.mrb[43].mxu1  ;;  %8002 = vmatmul.mubr.msk.f32.vlgmr.msra.gmra.mrb[52].mxu0 %vm1025_vm2, %v4955_v63  ;;  %v7027_v63 = vld [vmem:[%s10395_s17 + $0x2] ss:$0 sm:$0xff] }
0x2caf   : > { %8071 = vmatprep.mubr.msk.f32.mxu0 %vm9230_vm0, %v9231_v1  ;;  %8687 = vmatpush3.bf16.msra.mxu0 %v8686_v43  ;;  %v5301_v43 = vld [vmem:[#allocation2 + $0x500] sm:$0xff] }
0x2cb0   : > { %8688 = vmatprep.subr.bf16.mxu0 %v9229_v0 }
0x2cb3   : > { %8690 = vmatpush3.bf16.msra.mxu0 %v8689_v45  ;;  %v8717_v45 = vpack.c.bf16 %v5301_v43, %v5298_v42 }
0x2cb4   : > { %8691 = vmatprep.subr.bf16.mxu0 %v9229_v0 }
0x2cb7   : > { %8693 = vmatpush3.bf16.msra.mxu0 %v8692_v8  ;;  %v5302_v8 = vld [vmem:[#allocation2 + $0x508] sm:$0xff] }
0x2cb8   : > { %8694 = vmatprep.subr.bf16.mxu0 %v9229_v0  ;;  %v8748_v48 = vpack.c.bf16 %v5302_v8, %v5299_v46  ;;  %v7036_v46 = vld [vmem:[%s10398_s20 + $0x2] ss:$0 sm:$0xff] }
0x2cbb   : > { %8696 = vmatpush3.bf16.msra.mxu0 %v8695_v49 }
0x2cbc   : > { %8697 = vmatprep.subr.bf16.mxu0 %v9229_v0 }
0x2cbf   : > { %8699 = vmatpush3.bf16.msra.mxu0 %v8698_v52 }
0x2cc0   : > { %8700 = vmatprep.subr.bf16.mxu0 %v9229_v0 }
0x2cc3   : > { %8702 = vmatpush3.bf16.msra.mxu0 %v8701_v55  ;;  %v8721_v55 = vpack.c.bf16 %v5307_v54, %v5304_v53 }
0x2cc4   : > { %8703 = vmatprep.subr.bf16.mxu0 %v9229_v0 }
0x2d81   : > { %v5028_v3 = vpop.f32.mrb[52].mxu0 }
0x2d82   : > { %v5032_v5 = vadd.f32 %v5028_v3, %v4792_v57  ;;  %v8003_v6 = vpop.f32.mrb[53].mxu0  ;;  %v5173_v57 = vld [vmem:[#allocation8 + $0x168] sm:$0xff]  ;;  %v7028_v3 = vld [vmem:[%s10396_s18 + $0x2] ss:$0 sm:$0xff] }
0x2d83   : > { %v8704_v58 = vpack.c.bf16 %v5173_v57, %v5172_v56  ;;  %v5303_v56 = vld [vmem:[#allocation2 + $0x510] sm:$0xff]  ;;  %v5306_v57 = vld [vmem:[#allocation2 + $0x528] sm:$0xff] }
0x2d84   : > { %v5033_v60 = vadd.f32 %v5032_v5, %v9956_v9 }
0x2d85   : > { %8705 = vmatpush3.bf16.msra.mxu0 %v8704_v58  ;;  %v5305_v58 = vld [vmem:[#allocation2 + $0x520] sm:$0xff] }
0x2d86   : > { %5038 = vadd.xlane.f32.xlu0 %v5033_v60  ;;  %8706 = vmatprep.subr.bf16.mxu0 %v9229_v0 }
0x2e13   : > { %v5039_v9 = vpop.xlane.xlu0 %5038 }
0x2e14   : > { %v5040_v16 = vmul.f32 0.0078125, %v5039_v9 }
0x2e16   : > { %v10071_v21 = vsub.f32 %v5033_v60, %v5040_v16  ;;  %v5174_v60 = vld [vmem:[#allocation8 + $0x170] sm:$0xff] }
0x2e17   : > { %v8707_v10 = vpack.c.bf16 %v5175_v7, %v5174_v60  ;;  %v5314_v7 = vld [vmem:[#allocation2 + $0x568] sm:$0xff] }
0x2e18   : > { %v5042_v23 = vmul.f32 %v10071_v21, %v10071_v21 }
0x2e19   : > { %8708 = vmatpush3.bf16.msra.mxu0 %v8707_v10  ;;  %v5316_v10 = vld [vmem:[#allocation2 + $0x578] sm:$0xff] }
0x2e1a   : > { %5043 = vadd.xlane.f32.xlu1 %v5042_v23  ;;  %8741 = vmatprep.subr.bf16.mxu0 %v9229_v0  ;;  %v5286_v23 = vld [vmem:[#allocation2 + $0x488] sm:$0xff] }
0x2e1b   : > { %v8709_v28 = vpack.c.bf16 %v5289_v26, %v5286_v23 }
0x2e1d   : > { %8710 = vmatprep.subr.bf16.mxu1 %v8709_v28  ;;  %v5324_v28 = vld [vmem:[#allocation2 + $0x5b8] sm:$0xff] }
0x2ea7   : > { %v5044_v59 = vpop.xlane.xlu1 %5043 }
0x2ea8   : > { %v5045_v61 = vmul.f32 0.0078125, %v5044_v59  ;;  %v8723_v59 = vpack.c.bf16 %v5306_v57, %v5303_v56 }
0x2eaa   : > { %v5046_v20 = vadd.f32 1e-05, %v5045_v61  ;;  %v5308_v61 = vld [vmem:[#allocation2 + $0x538] sm:$0xff] }
0x2eac   : > { %9009 = vrsqrt.f32 %v5046_v20  ;;  %v8751_v20 = vpack.c.bf16 %v5308_v61, %v5305_v58 }
0x2eb6   : > { %v9010_v62 = vpop.eup %9009 }
0x2eb7   : > { %v5048_v2 = vmul.f32 %v9010_v62, %v10071_v21  ;;  %v5310_v62 = vld [vmem:[#allocation2 + $0x548] sm:$0xff] }
0x2eb9   : > { %v5055_v5 = vmul.f32 %v7027_v63, %v5048_v2  ;;  %v5313_v63 = vld [vmem:[#allocation2 + $0x560] sm:$0xff] }
0x2eba   : > { %v8725_v2 = vpack.c.bf16 %v5313_v63, %v5310_v62 }
0x2ebb   : > { %v5062_v6 = vadd.f32 %v7028_v3, %v5055_v5  ;;  %v5309_v3 = vld [vmem:[#allocation2 + $0x540] sm:$0xff]  ;;  %v5312_v5 = vld [vmem:[#allocation2 + $0x558] sm:$0xff] }
0x2ebc   : > { %v8727_v60 = vpack.c.bf16 %v5312_v5, %v5309_v3  ;;  %v5493_v3 = vld [vmem:[#allocation5 + $0x180] sm:$0xff]  ;;  %v5494_v5 = vld [vmem:[#allocation5 + $0x188] sm:$0xff] }
0x2ebd   : > { %8037 = vmatmul.mubr.f32.vlgmr.msra.gmra.mrb[44].mxu1 %v5062_v6 }
0x2ebe   : > { %5415 = vmatprep.mubr.f32.mxu1 %v9231_v1  ;;  %8712 = vmatpush1.bf16.msra.mxu1 %v8711_v19  ;;  %v5331_v19 = vld [vmem:[#allocation2 + $0x5f0] sm:$0xff] }
0x2ebf   : > { %8714 = vmatprep.subr.bf16.mxu1 %v8713_v36  ;;  %v8737_v32 = vpack.c.bf16 %v5331_v19, %v5328_v30  ;;  %v5330_v36 = vld [vmem:[#allocation2 + $0x5e8] sm:$0xff]  ;;  %v5497_v19 = vld [vmem:[#allocation5 + $0x1a0] sm:$0xff] }
0x2ec0   : > { %v8739_v39 = vpack.c.bf16 %v5330_v36, %v5327_v33  ;;  %v5500_v33 = vld [vmem:[#allocation5 + $0x1b8] sm:$0xff] }
0x2ec2   : > { %8716 = vmatpush1.bf16.msra.mxu1 %v8715_v40  ;;  %v8763_v40 = vpack.c.bf16 %v5332_v38, %v5329_v37 }
0x2ec3   : > { %8718 = vmatprep.subr.bf16.mxu1 %v8717_v45  ;;  %v7035_v45 = vld [vmem:[%s10397_s19 + $0x2] ss:$0 sm:$0xff] }
0x2ec6   : > { %8720 = vmatpush1.bf16.msra.mxu1 %v8719_v47 }
0x2ec7   : > { %8722 = vmatprep.subr.bf16.mxu1 %v8721_v55 }
0x2eca   : > { %8724 = vmatpush1.bf16.msra.mxu1 %v8723_v59 }
0x2ecb   : > { %8726 = vmatprep.subr.bf16.mxu1 %v8725_v2 }
0x2ece   : > { %8728 = vmatpush1.bf16.msra.mxu1 %v8727_v60  ;;  %v8766_v60 = vpack.c.bf16 %v5494_v5, %v5493_v3 }
0x2f90   : > { %v5154_v12 = vpop.f32.mrb[44].mxu1 }
0x2f91   : > { %v5155_v13 = vadd.f32 %v7030_v11, %v5154_v12  ;;  %v8038_v14 = vpop.f32.mrb[45].mxu1  ;;  %v5319_v11 = vld [vmem:[#allocation2 + $0x590] sm:$0xff] }
0x2f92   : > { %v5315_v14 = vld [vmem:[#allocation2 + $0x570] sm:$0xff] }
0x2f93   : > { %v5158_v35 = vmax.f32 %v5155_v13, 0.0  ;;  %v8729_v13 = vpack.c.bf16 %v5319_v11, %v5316_v10 }
0x2f95   : > { %8072 = vmatmul.mubr.f32.vlgmr.msra.gmra.mrb[54].mxu0 %v5158_v35  ;;  %v5318_v35 = vld [vmem:[#allocation2 + $0x588] sm:$0xff]  ;;  %8730 = vmatprep.subr.bf16.mxu1 %v8729_v13 }
0x2f96   : > { %8106 = vmatprep.mubr.msk.f32.mxu0 %vm9230_vm0, %v9231_v1  ;;  %8743 = vmatpush3.bf16.msra.mxu0 %v8742_v31  ;;  %v8735_v31 = vpack.c.bf16 %v5324_v28, %v5321_v27 }
0x2f97   : > { %8744 = vmatprep.subr.bf16.mxu0 %v9229_v0 }
0x2f9a   : > { %8746 = vmatpush3.bf16.msra.mxu0 %v8745_v41 }
0x2f9b   : > { %8747 = vmatprep.subr.bf16.mxu0 %v9229_v0 }
0x2f9e   : > { %8749 = vmatpush3.bf16.msra.mxu0 %v8748_v48  ;;  %v7037_v48 = vld [vmem:[%s10388_s10 + $0x9] sm:$0x7] }
0x2f9f   : > { %8750 = vmatprep.subr.bf16.mxu0 %v9229_v0  ;;  %v5347_v56 = vrot.slane %v7037_v48, %v9568_v25 }
0x2fa2   : > { %8752 = vmatpush3.bf16.msra.mxu0 %v8751_v20 }
0x2fa3   : > { %8753 = vmatprep.subr.bf16.mxu0 %v9229_v0 }
0x3068   : > { %v5250_v15 = vpop.f32.mrb[54].mxu0 }
0x3069   : > { %v5251_v9 = vadd.f32 %v7032_v4, %v5250_v15  ;;  %v8073_v16 = vpop.f32.mrb[55].mxu0  ;;  %v5317_v4 = vld [vmem:[#allocation2 + $0x580] sm:$0xff]  ;;  %v8731_v15 = vpack.c.bf16 %v5318_v35, %v5315_v14 }
0x306a   : > { %v5322_v16 = vld [vmem:[#allocation2 + $0x5a8] sm:$0xff] }
0x306b   : > { %v5254_v21 = vadd.f32 %v5251_v9, %v5062_v6  ;;  %v5311_v6 = vld [vmem:[#allocation2 + $0x550] sm:$0xff]  ;;  %v5320_v9 = vld [vmem:[#allocation2 + $0x598] sm:$0xff]  ;;  %8732 = vmatpush1.bf16.msra.mxu1 %v8731_v15 }
0x306c   : > { %v8754_v12 = vpack.c.bf16 %v5314_v7, %v5311_v6  ;;  %v8757_v23 = vpack.c.bf16 %v5320_v9, %v5317_v4  ;;  %v5495_v6 = vld [vmem:[#allocation5 + $0x190] sm:$0xff]  ;;  %v5496_v7 = vld [vmem:[#allocation5 + $0x198] sm:$0xff] }
0x306d   : > { %5259 = vadd.xlane.f32.xlu1 %v5254_v21  ;;  %v8769_v10 = vpack.c.bf16 %v5496_v7, %v5495_v6 }
0x306e   : > { %8755 = vmatpush3.bf16.msra.mxu0 %v8754_v12 }
0x306f   : > { %8756 = vmatprep.subr.bf16.mxu0 %v9229_v0 }
0x3072   : > { %8758 = vmatpush3.bf16.msra.mxu0 %v8757_v23 }
0x3073   : > { %8759 = vmatprep.subr.bf16.mxu0 %v9229_v0 }
0x3076   : > { %8761 = vmatpush3.bf16.msra.mxu0 %v8760_v18  ;;  %v5499_v18 = vld [vmem:[#allocation5 + $0x1b0] sm:$0xff] }
0x3077   : > { %8762 = vmatprep.subr.bf16.mxu0 %v9229_v0  ;;  %v8775_v36 = vpack.c.bf16 %v5500_v33, %v5499_v18 }
0x307a   : > { %8764 = vmatpush3.bf16.msra.mxu0 %v8763_v40 }
0x307b   : > { %8765 = vmatprep.subr.bf16.mxu0 %v9229_v0 }
0x30fa   : > { %v5260_v49 = vpop.xlane.xlu1 %5259 }
0x30fb   : > { %v5261_v50 = vmul.f32 0.0078125, %v5260_v49  ;;  %v5339_v49 = vrot.slane %v7037_v48, %v9566_v24 }
0x30fd   : > { %v10106_v51 = vsub.f32 %v5254_v21, %v5261_v50  ;;  %v5325_v21 = vld [vmem:[#allocation2 + $0x5c0] sm:$0xff]  ;;  %v5343_v50 = vrot.slane %v7037_v48, %v9561_v22 }
0x30fe   : > { %v8733_v26 = vpack.c.bf16 %v5325_v21, %v5322_v16 }
0x30ff   : > { %v5263_v52 = vmul.f32 %v10106_v51, %v10106_v51 }
0x3100   : > { %8734 = vmatprep.subr.bf16.mxu1 %v8733_v26 }
0x3101   : > { %5264 = vadd.xlane.f32.xlu1 %v5263_v52  ;;  %8736 = vmatpush1.bf16.msra.mxu1 %v8735_v31  ;;  %v5498_v31 = vld [vmem:[#allocation5 + $0x1a8] sm:$0xff] }
0x3102   : > { %8738 = vmatprep.subr.bf16.mxu1 %v8737_v32  ;;  %v8772_v32 = vpack.c.bf16 %v5498_v31, %v5497_v19 }
0x3105   : > { %8740 = vmatpush1.bf16.msra.mxu1 %v8739_v39 }
0x3106   : > { %8109 = vmatprep.subr.mxu1 %v9231_v1 }
0x318e   : > { %v5265_v41 = vpop.xlane.xlu1 %5264 }
0x318f   : > { %v5266_v42 = vmul.f32 0.0078125, %v5265_v41 }
0x3191   : > { %v5267_v43 = vadd.f32 1e-05, %v5266_v42 }
0x3193   : > { %9011 = vrsqrt.f32 %v5267_v43 }
0x319d   : > { %v9012_v44 = vpop.eup %9011 }
0x319e   : > { %v5269_v34 = vmul.f32 %v9012_v44, %v10106_v51 }
0x31a0   : > { %v5276_v8 = vmul.f32 %v7035_v45, %v5269_v34 }
0x31a2   : > { %v10123_v47 = vadd.f32 %v7036_v46, %v5276_v8 }
0x31a4   : > { %5416 = vmatmul.mubr.f32.vlgmr.msra.gmra.mrb[46].mxu1 %v10123_v47  ;;  %8107 = vmatmul.mubr.f32.vlgmr.msra.gmra.mrb[56].mxu0 %v10123_v47 }
0x31a5   : > { %8111 = vmatprep.mubr.msk.f32.mxu1 %vm9230_vm0, %v9231_v1  ;;  %8127 = vmatprep.mubr.msk.f32.mxu0 %vm9230_vm0, %v9231_v1 }
0x31a6   : > { %8767 = vmatpush3.bf16.msra.mxu0 %v8766_v60 }
0x31a7   : > { %8768 = vmatprep.subr.bf16.mxu0 %v9229_v0 }
0x31aa   : > { %8770 = vmatpush3.bf16.msra.mxu0 %v8769_v10 }
0x31ab   : > { %8771 = vmatprep.subr.bf16.mxu0 %v9229_v0 }
0x3277   : > { %v5417_v51 = vpop.f32.mrb[46].mxu1  ;;  %v5488_v52 = vpop.f32.mrb[56].mxu0 }
0x3278   : > { %v10136_v53 = vadd.f32 %v5417_v51, %v5339_v49  ;;  %v5419_v54 = vpop.f32.mrb[47].mxu1  ;;  %v8108_v55 = vpop.f32.mrb[57].mxu0  ;;  %v10146_v24 = vadd.f32 %v5488_v52, %v5347_v56  ;;  %v5501_v56 = vld [vmem:[#allocation5 + $0x1c0] sm:$0xff] }
0x3279   : > { %v10139_v57 = vadd.f32 %v5419_v54, %v5343_v50 }
0x327a   : > { %5753 = vrot.lane.b32.xlu0 %v10136_v53, %s9232_s23 }
0x327b   : > { %8110 = vmatpush3.xpose.msk.msra.mxu1 %vm1025_vm2, %v10139_v57 }
0x327c   : > { %8114 = vmatprep.subr.mxu1 %v9231_v1 }
0x327e   : > { %8112 = vmatmul.mubr.msk.f32.vlgmr.msra.gmra.mrb[48].mxu1 %vm1025_vm2, %v10136_v53 }
0x327f   : > { %8115 = vmatpush3.msra.mxu1 %v10146_v24  ;;  %8116 = vmatprep.mubr.msk.f32.mxu1 %vm9230_vm0, %v9231_v1 }
0x3280   : > { %8130 = vmatprep.subr.mxu1 %v9231_v1 }
0x32ec   : > { %v5754_v35 = vpop.permute.xlu0 %5753 }
0x3351   : > { %v5590_v22 = vpop.f32.mrb[48].mxu1 }
0x3352   : > { %v5594_v25 = vmul.f32 0.17677669, %v5590_v22  ;;  %v8113_v58 = vpop.f32.mrb[49].mxu1  ;;  %v5502_v22 = vld [vmem:[#allocation5 + $0x1c8] sm:$0xff] }
0x3353   : > { %v8778_v58 = vpack.c.bf16 %v5502_v22, %v5501_v56  ;;  %v6513_v56 = vld [vmem:[#allocation7 + $0x1c0] sm:$0xff]  ;;  %v6514_v22 = vld [vmem:[#allocation7 + $0x1c8] sm:$0xff] }
0x3354   : > { %v5595_v59 = vsel %vm1103_vm3, %v5594_v25, -inf }
0x3355   : > { %5596 = vmax.xlane.f32.xlu1 %v5595_v59 }
0x33e2   : > { %v5597_v61 = vpop.xlane.xlu1 %5596 }
0x33e3   : > { %v5598_v20 = vsub.f32 %v5594_v25, %v5597_v61  ;;  %v5503_v25 = vld [vmem:[#allocation5 + $0x1d0] sm:$0xff]  ;;  %v7039_v61 = vld [vmem:[%s10390_s12 + $0x3] ss:$0 sm:$0xff] }
0x33e5   : > { %v5599_v62 = vmul.f32 1.442695, %v5598_v20 }
0x33e7   : > { %9013 = vpow2.f32 %v5599_v62 }
0x33f1   : > { %v9014_v63 = vpop.eup %9013 }
0x33f2   : > { %v5601_v2 = vsel %vm1103_vm3, %v9014_v63, 0.0 }
0x33f3   : > { %5602 = vadd.xlane.f32.xlu1 %v5601_v2 }
0x3404   : > { %5755 = vrot.lane.b32.xlu1 %v10139_v57, %s9232_s23 }
0x3480   : > { %v5603_v11 = vpop.xlane.xlu1 %5602 }
0x3481   : > { %9015 = vrcp.f32 %v5603_v11 }
0x3484   : > { %v5756_v14 = vpop.permute.xlu1 %5755 }
0x348b   : > { %v9016_v12 = vpop.eup %9015 }
0x348c   : > { %v5605_v13 = vmul.f32 %v9016_v12, %v9014_v63 }
0x348e   : > { %8117 = vmatmul.mubr.msk.f32.vlgmr.msra.gmra.mrb[50].mxu1 %vm1103_vm3, %v5605_v13 }
0x348f   : > { %8131 = vmatpush3.xpose.msk.msra.mxu1 %vm1025_vm2, %v5756_v14  ;;  %8132 = vmatprep.mubr.msk.f32.mxu1 %vm9230_vm0, %v9231_v1 }
0x3490   : > { %8135 = vmatprep.subr.mxu1 %v9231_v1 }
0x3492   : > { %8133 = vmatmul.mubr.msk.f32.vlgmr.msra.gmra.mrb[52].mxu1 %vm1025_vm2, %v5754_v35 }
0x3493   : > { %8137 = vmatprep.mubr.msk.f32.mxu1 %vm9230_vm0, %v9231_v1 }
0x3561   : > { %v5675_v4 = vpop.f32.mrb[50].mxu1 }
0x3562   : > { %v8118_v15 = vpop.f32.mrb[51].mxu1  ;;  %8128 = vmatmul.mubr.msk.f32.vlgmr.msra.gmra.mrb[58].mxu0 %vm1025_vm2, %v5675_v4 }
0x3563   : > { %8148 = vmatprep.mubr.msk.f32.mxu0 %vm9230_vm0, %v9231_v1  ;;  %8773 = vmatpush3.bf16.msra.mxu0 %v8772_v32 }
0x3564   : > { %8774 = vmatprep.subr.bf16.mxu0 %v9229_v0 }
0x3565   : > { %v5827_v9 = vpop.f32.mrb[52].mxu1 }
0x3566   : > { %v5831_v16 = vmul.f32 0.17677669, %v5827_v9  ;;  %v8134_v21 = vpop.f32.mrb[53].mxu1 }
0x3567   : > { %8776 = vmatpush3.bf16.msra.mxu0 %v8775_v36  ;;  %v5505_v21 = vld [vmem:[#allocation5 + $0x1e0] sm:$0xff] }
0x3568   : > { %v5832_v23 = vsel %vm1103_vm3, %v5831_v16, -inf  ;;  %8777 = vmatprep.subr.bf16.mxu0 %v9229_v0 }
0x3569   : > { %5833 = vmax.xlane.f32.xlu1 %v5832_v23  ;;  %v5506_v23 = vld [vmem:[#allocation5 + $0x1e8] sm:$0xff] }
0x357a   : > { %5844 = vrot.lane.b32.xlu1 %v10146_v24, %s9232_s23  ;;  %s10335_s23 = scalar_lea.hbm %s10461_s11, %s7070_s25 }
0x357e   : > { %5994 = vrot.lane.b32.xlu1 %v10136_v53, %s9233_s28 }
0x35f6   : > { %v5834_v26 = vpop.xlane.xlu1 %5833 }
0x35f7   : > { %v5835_v27 = vsub.f32 %v5831_v16, %v5834_v26  ;;  %v5507_v26 = vld [vmem:[#allocation5 + $0x1f0] sm:$0xff] }
0x35f9   : > { %v5836_v28 = vmul.f32 1.442695, %v5835_v27  ;;  %v8784_v27 = vpack.c.bf16 %v5506_v23, %v5505_v21  ;;  %v6611_v21 = vld [vmem:[#allocation8 + $0x1d0] sm:$0xff]  ;;  %v6612_v23 = vld [vmem:[#allocation8 + $0x1d8] sm:$0xff] }
0x35fa   : > { %v5845_v29 = vpop.permute.xlu1 %5844 }
0x35fb   : > { %9017 = vpow2.f32 %v5836_v28  ;;  %8136 = vmatpush3.msra.mxu1 %v5845_v29  ;;  %v5508_v28 = vld [vmem:[#allocation5 + $0x1f8] sm:$0xff] }
0x35fc   : > { %8151 = vmatprep.subr.mxu1 %v9231_v1  ;;  %v8787_v29 = vpack.c.bf16 %v5508_v28, %v5507_v26  ;;  %v8829_v26 = vpack.c.bf16 %v6612_v23, %v6611_v21  ;;  %v6614_v28 = vld [vmem:[#allocation8 + $0x1e8] sm:$0xff] }
0x35fe   : > { %v5995_v43 = vpop.permute.xlu1 %5994 }
0x3605   : > { %v9018_v17 = vpop.eup %9017 }
0x3606   : > { %v5838_v30 = vsel %vm1103_vm3, %v9018_v17, 0.0 }
0x3607   : > { %5839 = vadd.xlane.f32.xlu0 %v5838_v30 }
0x361d   : > { %5996 = vrot.lane.b32.xlu0 %v10139_v57, %s9233_s28 }
0x3635   : > { %v5748_v37 = vpop.f32.mrb[58].mxu0 }
0x3636   : > { %v8129_v38 = vpop.f32.mrb[59].mxu0  ;;  %v5752_v20 = vadd.f32 %v7039_v61, %v5748_v37  ;;  %v6517_v61 = vld [vmem:[#allocation7 + $0x1e0] sm:$0xff] }
0x3694   : > { %v5840_v39 = vpop.xlane.xlu0 %5839 }
0x3695   : > { %9019 = vrcp.f32 %v5840_v39 }
0x3698   : > { %v5997_v42 = vpop.permute.xlu0 %5996 }
0x369f   : > { %v9020_v40 = vpop.eup %9019 }
0x36a0   : > { %v5842_v41 = vmul.f32 %v9020_v40, %v9018_v17 }
0x36a2   : > { %8138 = vmatmul.mubr.msk.f32.vlgmr.msra.gmra.mrb[54].mxu1 %vm1103_vm3, %v5842_v41  ;;  %v6505_v41 = vld [vmem:[#allocation7 + $0x180] sm:$0xff] }
0x36a3   : > { %8152 = vmatpush3.xpose.msk.msra.mxu1 %vm1025_vm2, %v5997_v42  ;;  %8153 = vmatprep.mubr.msk.f32.mxu1 %vm9230_vm0, %v9231_v1  ;;  %v6506_v42 = vld [vmem:[#allocation7 + $0x188] sm:$0xff] }
0x36a4   : > { %8156 = vmatprep.subr.mxu1 %v9231_v1 }
0x36a6   : > { %8154 = vmatmul.mubr.msk.f32.vlgmr.msra.gmra.mrb[56].mxu1 %vm1025_vm2, %v5995_v43  ;;  %v6507_v43 = vld [vmem:[#allocation7 + $0x190] sm:$0xff] }
0x36a7   : > { %8158 = vmatprep.mubr.msk.f32.mxu1 %vm9230_vm0, %v9231_v1 }
0x3775   : > { %v5916_v44 = vpop.f32.mrb[54].mxu1 }
0x3776   : > { %v8139_v45 = vpop.f32.mrb[55].mxu1  ;;  %8149 = vmatmul.mubr.msk.f32.vlgmr.msra.gmra.mrb[60].mxu0 %vm1025_vm2, %v5916_v44  ;;  %v8790_v44 = vpack.c.bf16 %v6506_v42, %v6505_v41 }
0x3777   : > { %8169 = vmatprep.mubr.msk.f32.mxu0 %vm9230_vm0, %v9231_v1  ;;  %8779 = vmatpush3.bf16.msra.mxu0 %v8778_v58  ;;  %v6508_v45 = vld [vmem:[#allocation7 + $0x198] sm:$0xff]  ;;  %v8802_v58 = vpack.c.bf16 %v6514_v22, %v6513_v56 }
0x3778   : > { %8780 = vmatprep.subr.bf16.mxu0 %v9229_v0 }
0x3779   : > { %v6068_v34 = vpop.f32.mrb[56].mxu1 }
0x377a   : > { %v6072_v46 = vmul.f32 0.17677669, %v6068_v34  ;;  %v8155_v8 = vpop.f32.mrb[57].mxu1  ;;  %v8793_v34 = vpack.c.bf16 %v6508_v45, %v6507_v43  ;;  %v7063_v45 = vld [vmem:[%s10394_s16 + $0x3] ss:$0 sm:$0xff] }
0x377b   : > { %v6510_v8 = vld [vmem:[#allocation7 + $0x1a8] sm:$0xff] }
0x377c   : > { %v6073_v48 = vsel %vm1103_vm3, %v6072_v46, -inf }
0x377d   : > { %6074 = vmax.xlane.f32.xlu1 %v6073_v48 }
0x378e   : > { %6084 = vrot.lane.b32.xlu1 %v10146_v24, %s9233_s28  ;;  %s9145_s28 = scalar_lea.vmem %s10337_s29, 128 }
0x378f   : > { %p9146_p2 = scmp.ne.s32.totalorder %s10337_s29, %s9145_s28  ;;  %p9153_p11 = scmp.lt.s32.totalorder %s9151_s27, %s9145_s28 }
0x3791   : > { %p9154_p5 = por %p9153_p11, %p9152_p8 }
0x3792   : > { %6234 = vrot.lane.b32.xlu1 %v10136_v53, %s9234_s1  ;;  %v5504_v53 = vld [vmem:[#allocation5 + $0x1d8] sm:$0xff] }
0x3793   : > { %v8781_v59 = vpack.c.bf16 %v5504_v53, %v5503_v25  ;;  %v6515_v25 = vld [vmem:[#allocation7 + $0x1d0] sm:$0xff]  ;;  %v6516_v53 = vld [vmem:[#allocation7 + $0x1d8] sm:$0xff] }
0x3795   : > { %8782 = vmatpush3.bf16.msra.mxu0 %v8781_v59  ;;  %v8805_v59 = vpack.c.bf16 %v6516_v53, %v6515_v25 }
0x3796   : > { %8783 = vmatprep.subr.bf16.mxu0 %v9229_v0 }
0x380a   : > { %v6075_v49 = vpop.xlane.xlu1 %6074 }
0x380b   : > { %v6076_v50 = vsub.f32 %v6072_v46, %v6075_v49  ;;  %v6509_v46 = vld [vmem:[#allocation7 + $0x1a0] sm:$0xff] }
0x380c   : > { %v8796_v48 = vpack.c.bf16 %v6510_v8, %v6509_v46 }
0x380d   : > { %v6077_v51 = vmul.f32 1.442695, %v6076_v50 }
0x380e   : > { %v6085_v52 = vpop.permute.xlu1 %6084 }
0x380f   : > { %9021 = vpow2.f32 %v6077_v51  ;;  %8157 = vmatpush3.msra.mxu1 %v6085_v52  ;;  %v6511_v52 = vld [vmem:[#allocation7 + $0x1b0] sm:$0xff] }
0x3810   : > { %8172 = vmatprep.subr.mxu1 %v9231_v1 }
0x3812   : > { %v6235_v60 = vpop.permute.xlu1 %6234 }
0x3819   : > { %v9022_v54 = vpop.eup %9021 }
0x381a   : > { %v6079_v55 = vsel %vm1103_vm3, %v9022_v54, 0.0 }
0x381b   : > { %6080 = vadd.xlane.f32.xlu0 %v6079_v55 }
0x3831   : > { %6236 = vrot.lane.b32.xlu0 %v10139_v57, %s9234_s1 }
0x3849   : > { %v5989_v62 = vpop.f32.mrb[60].mxu0 }
0x384a   : > { %v5993_v63 = vadd.f32 %v5989_v62, %v5752_v20  ;;  %v8150_v57 = vpop.f32.mrb[61].mxu0  ;;  %v6518_v20 = vld [vmem:[#allocation7 + $0x1e8] sm:$0xff] }
0x384b   : > { %v8808_v62 = vpack.c.bf16 %v6518_v20, %v6517_v61  ;;  %v6520_v57 = vld [vmem:[#allocation7 + $0x1f8] sm:$0xff] }
0x384c   : > { %v6732_v61 = vld [vmem:[%s10385_s7 + $0x38] sm:$0xff] }
0x38a8   : > { %v6081_v2 = vpop.xlane.xlu0 %6080 }
0x38a9   : > { %9023 = vrcp.f32 %v6081_v2 }
0x38ac   : > { %v6237_v6 = vpop.permute.xlu0 %6236 }
0x38b3   : > { %v9024_v3 = vpop.eup %9023 }
0x38b4   : > { %v6083_v5 = vmul.f32 %v9024_v3, %v9022_v54  ;;  %v6512_v54 = vld [vmem:[#allocation7 + $0x1b8] sm:$0xff]  ;;  %v6601_v3 = vld [vmem:[#allocation8 + $0x180] sm:$0xff] }
0x38b5   : > { %v8799_v55 = vpack.c.bf16 %v6512_v54, %v6511_v52  ;;  %v6729_v54 = vld [vmem:[%s10385_s7 + $0x20] sm:$0xff] }
0x38b6   : > { %8159 = vmatmul.mubr.msk.f32.vlgmr.msra.gmra.mrb[58].mxu1 %vm1103_vm3, %v6083_v5  ;;  %v6602_v5 = vld [vmem:[#allocation8 + $0x188] sm:$0xff] }
0x38b7   : > { %8173 = vmatpush3.xpose.msk.msra.mxu1 %vm1025_vm2, %v6237_v6  ;;  %8174 = vmatprep.mubr.msk.f32.mxu1 %vm9230_vm0, %v9231_v1  ;;  %v6603_v6 = vld [vmem:[#allocation8 + $0x190] sm:$0xff] }
0x38b8   : > { %8177 = vmatprep.subr.mxu1 %v9231_v1 }
0x38ba   : > { %8175 = vmatmul.mubr.msk.f32.vlgmr.msra.gmra.mrb[60].mxu1 %vm1025_vm2, %v6235_v60  ;;  %v8814_v60 = vpack.c.bf16 %v6602_v5, %v6601_v3  ;;  %v6736_v3 = vld [vmem:[%s10385_s7 + $0x58] sm:$0xff] }
0x38bb   : > { %8179 = vmatprep.mubr.msk.f32.mxu1 %vm9230_vm0, %v9231_v1 }
0x3989   : > { %v6156_v7 = vpop.f32.mrb[58].mxu1 }
0x398a   : > { %v8160_v10 = vpop.f32.mrb[59].mxu1  ;;  %8170 = vmatmul.mubr.msk.f32.vlgmr.msra.gmra.mrb[62].mxu0 %vm1025_vm2, %v6156_v7  ;;  %v6604_v7 = vld [vmem:[#allocation8 + $0x198] sm:$0xff] }
0x398b   : > { %8190 = vmatprep.mubr.msk.f32.mxu0 %vm9230_vm0, %v9231_v1  ;;  %8785 = vmatpush3.bf16.msra.mxu0 %v8784_v27  ;;  %v8817_v10 = vpack.c.bf16 %v6604_v7, %v6603_v6  ;;  %v6613_v27 = vld [vmem:[#allocation8 + $0x1e0] sm:$0xff] }
0x398c   : > { %8786 = vmatprep.subr.bf16.mxu0 %v9229_v0  ;;  %v6737_v6 = vld [vmem:[%s10385_s7 + $0x60] sm:$0xff] }
0x398d   : > { %v6308_v11 = vpop.f32.mrb[60].mxu1 }
0x398e   : > { %v6312_v12 = vmul.f32 0.17677669, %v6308_v11  ;;  %v8176_v13 = vpop.f32.mrb[61].mxu1  ;;  %v6605_v11 = vld [vmem:[#allocation8 + $0x1a0] sm:$0xff] }
0x398f   : > { %8788 = vmatpush3.bf16.msra.mxu0 %v8787_v29  ;;  %v8832_v29 = vpack.c.bf16 %v6614_v28, %v6613_v27 }
0x3990   : > { %v6313_v14 = vsel %vm1103_vm3, %v6312_v12, -inf  ;;  %8813 = vmatprep.subr.bf16.mxu0 %v9229_v0 }
0x3991   : > { %6314 = vmax.xlane.f32.xlu1 %v6313_v14  ;;  %v6607_v14 = vld [vmem:[#allocation8 + $0x1b0] sm:$0xff] }
0x3a1e   : > { %v6315_v35 = vpop.xlane.xlu1 %6314 }
0x3a1f   : > { %v6316_v4 = vsub.f32 %v6312_v12, %v6315_v35  ;;  %v6606_v12 = vld [vmem:[#allocation8 + $0x1a8] sm:$0xff]  ;;  %v6608_v35 = vld [vmem:[#allocation8 + $0x1b8] sm:$0xff] }
0x3a20   : > { %v8820_v13 = vpack.c.bf16 %v6606_v12, %v6605_v11  ;;  %v6740_v11 = vld [vmem:[%s10385_s7 + $0x78] sm:$0xff] }
0x3a21   : > { %v6317_v15 = vmul.f32 1.442695, %v6316_v4  ;;  %v8823_v4 = vpack.c.bf16 %v6608_v35, %v6607_v14 }
0x3a23   : > { %9025 = vpow2.f32 %v6317_v15  ;;  %v6609_v15 = vld [vmem:[#allocation8 + $0x1c0] sm:$0xff] }
0x3a2d   : > { %v9026_v9 = vpop.eup %9025 }
0x3a2e   : > { %v6319_v16 = vsel %vm1103_vm3, %v9026_v9, 0.0 }
0x3a2f   : > { %6320 = vadd.xlane.f32.xlu0 %v6319_v16 }
0x3a45   : > { %6324 = vrot.lane.b32.xlu0 %v10146_v24, %s9234_s1  ;;  %s10459_s1 = sld [smem:[#allocation21_spill]] }
0x3a4b   : > { %p10462_p3 = scmp.ne.s32.totalorder %s10459_s1, 0 }
0x3a4d   : > { %p9147_p4 = pnand %p9146_p2, %p10462_p3 }
0x3a4f   : > { %p9148_p7 = pneg %p9147_p4 }
0x3a51   : > { %p9155_p0 = pnand %p9154_p5, %p9148_p7 }
0x3a5d   : > { %v6229_v17 = vpop.f32.mrb[62].mxu0 }
0x3a5e   : > { %v6233_v30 = vadd.f32 %v6229_v17, %v5993_v63  ;;  %v8171_v19 = vpop.f32.mrb[63].mxu0  ;;  %v6519_v63 = vld [vmem:[#allocation7 + $0x1f0] sm:$0xff] }
0x3a5f   : > { %v8811_v2 = vpack.c.bf16 %v6520_v57, %v6519_v63  ;;  %v6734_v63 = vld [vmem:[%s10385_s7 + $0x48] sm:$0xff]  ;;  %v6735_v57 = vld [vmem:[%s10385_s7 + $0x50] sm:$0xff] }
0x3a60   : > { %v8853_v5 = vpack.c.bf16 %v6736_v3, %v6735_v57 }
0x3abc   : > { %v6321_v31 = vpop.xlane.xlu0 %6320 }
0x3abd   : > { %9027 = vrcp.f32 %v6321_v31 }
0x3ac0   : > { %v6325_v18 = vpop.permute.xlu0 %6324 }
0x3ac1   : > { %8178 = vmatpush3.msra.mxu1 %v6325_v18  ;;  %v7058_v18 = vld [vmem:[%s10395_s17 + $0x3] ss:$0 sm:$0xff] }
0x3ac2   : > { %8789 = vmatprep.subr.bf16.mxu1 %v9229_v0 }
0x3ac7   : > { %v9028_v24 = vpop.eup %9027 }
0x3ac8   : > { %v6323_v32 = vmul.f32 %v9028_v24, %v9026_v9  ;;  %v6610_v9 = vld [vmem:[#allocation8 + $0x1c8] sm:$0xff] }
0x3ac9   : > { %v8826_v16 = vpack.c.bf16 %v6610_v9, %v6609_v15  ;;  %v7066_v15 = vld [vmem:[%s10397_s19 + $0x3] ss:$0 sm:$0xff] }
0x3aca   : > { %8180 = vmatmul.mubr.msk.f32.vlgmr.msra.gmra.mrb[62].mxu1 %vm1103_vm3, %v6323_v32  ;;  %v7059_v32 = vld [vmem:[%s10396_s18 + $0x3] ss:$0 sm:$0xff] }
0x3acb   : > { %8225 = vmatprep.mubr.msk.f32.mxu1 %vm9230_vm0, %v9231_v1  ;;  %8791 = vmatpush3.bf16.msra.mxu1 %v8790_v44 }
0x3acc   : > { %8792 = vmatprep.subr.bf16.mxu1 %v9229_v0 }
0x3acf   : > { %8794 = vmatpush3.bf16.msra.mxu1 %v8793_v34 }
0x3ad0   : > { %8795 = vmatprep.subr.bf16.mxu1 %v9229_v0 }
0x3ad3   : > { %8797 = vmatpush3.bf16.msra.mxu1 %v8796_v48  ;;  %v6725_v48 = vld [vmem:[%s10385_s7] sm:$0xff] }
0x3ad4   : > { %8798 = vmatprep.subr.bf16.mxu1 %v9229_v0 }
0x3ad7   : > { %8800 = vmatpush3.bf16.msra.mxu1 %v8799_v55  ;;  %v6730_v55 = vld [vmem:[%s10385_s7 + $0x28] sm:$0xff] }
0x3ad8   : > { %8801 = vmatprep.subr.bf16.mxu1 %v9229_v0  ;;  %v8844_v56 = vpack.c.bf16 %v6730_v55, %v6729_v54 }
0x3adb   : > { %8803 = vmatpush3.bf16.msra.mxu1 %v8802_v58 }
0x3adc   : > { %8804 = vmatprep.subr.bf16.mxu1 %v9229_v0 }
0x3adf   : > { %8806 = vmatpush3.bf16.msra.mxu1 %v8805_v59  ;;  %v6731_v59 = vld [vmem:[%s10385_s7 + $0x30] sm:$0xff] }
0x3ae0   : > { %8807 = vmatprep.subr.bf16.mxu1 %v9229_v0  ;;  %v8847_v20 = vpack.c.bf16 %v6732_v61, %v6731_v59 }
0x3ae3   : > { %8809 = vmatpush3.bf16.msra.mxu1 %v8808_v62  ;;  %v6733_v62 = vld [vmem:[%s10385_s7 + $0x40] sm:$0xff] }
0x3ae4   : > { %8810 = vmatprep.subr.bf16.mxu1 %v9229_v0 }
0x3ae7   : > { %8812 = vmatpush3.bf16.msra.mxu1 %v8811_v2  ;;  %v8850_v2 = vpack.c.bf16 %v6734_v63, %v6733_v62 }
0x3ae8   : > { %8837 = vmatprep.subr.bf16.mxu1 %v9229_v0 }
0x3b9d   : > { %v6396_v33 = vpop.f32.mrb[62].mxu1 }
0x3b9e   : > { %v8181_v36 = vpop.f32.mrb[63].mxu1  ;;  %8191 = vmatmul.mubr.msk.f32.vlgmr.msra.gmra.mrb[64].mxu0 %vm1025_vm2, %v6396_v33 }
0x3b9f   : > { %8260 = vmatprep.mubr.msk.f32.mxu0 %vm9230_vm0, %v9231_v1  ;;  %8815 = vmatpush3.bf16.msra.mxu0 %v8814_v60  ;;  %v6738_v60 = vld [vmem:[%s10385_s7 + $0x68] sm:$0xff] }
0x3ba0   : > { %8816 = vmatprep.subr.bf16.mxu0 %v9229_v0  ;;  %v8856_v7 = vpack.c.bf16 %v6738_v60, %v6737_v6 }
0x3ba3   : > { %8818 = vmatpush3.bf16.msra.mxu0 %v8817_v10  ;;  %v6739_v10 = vld [vmem:[%s10385_s7 + $0x70] sm:$0xff] }
0x3ba4   : > { %8819 = vmatprep.subr.bf16.mxu0 %v9229_v0  ;;  %v8859_v12 = vpack.c.bf16 %v6740_v11, %v6739_v10 }
0x3ba7   : > { %8821 = vmatpush3.bf16.msra.mxu0 %v8820_v13 }
0x3ba8   : > { %8822 = vmatprep.subr.bf16.mxu0 %v9229_v0 }
0x3bab   : > { %8824 = vmatpush3.bf16.msra.mxu0 %v8823_v4 }
0x3bac   : > { %8825 = vmatprep.subr.bf16.mxu0 %v9229_v0 }
0x3baf   : > { %8827 = vmatpush3.bf16.msra.mxu0 %v8826_v16  ;;  %v7067_v16 = vld [vmem:[%s10398_s20 + $0x3] ss:$0 sm:$0xff] }
0x3bb0   : > { %8828 = vmatprep.subr.bf16.mxu0 %v9229_v0 }
0x3bb3   : > { %8830 = vmatpush3.bf16.msra.mxu0 %v8829_v26 }
0x3bb4   : > { %8831 = vmatprep.subr.bf16.mxu0 %v9229_v0 }
0x3bb7   : > { %8833 = vmatpush3.bf16.msra.mxu0 %v8832_v29 }
0x3bb8   : > { %8834 = vmatprep.subr.bf16.mxu0 %v9229_v0 }
0x3c71   : > { %v6469_v37 = vpop.f32.mrb[64].mxu0 }
0x3c72   : > { %v6473_v38 = vadd.f32 %v6469_v37, %v6233_v30  ;;  %v8192_v39 = vpop.f32.mrb[65].mxu0  ;;  %v6615_v37 = vld [vmem:[#allocation8 + $0x1f0] sm:$0xff] }
0x3c74   : > { %v6474_v40 = vadd.f32 %v6473_v38, %v10123_v47  ;;  %v6616_v38 = vld [vmem:[#allocation8 + $0x1f8] sm:$0xff] }
0x3c75   : > { %v8835_v39 = vpack.c.bf16 %v6616_v38, %v6615_v37 }
0x3c76   : > { %6479 = vadd.xlane.f32.xlu1 %v6474_v40 }
0x3c77   : > { %8836 = vmatpush3.bf16.msra.mxu0 %v8835_v39 }
0x3d03   : > { %v6480_v47 = vpop.xlane.xlu1 %6479 }
0x3d04   : > { %v6481_v49 = vmul.f32 0.0078125, %v6480_v47  ;;  %v6726_v47 = vld [vmem:[%s10385_s7 + $0x8] sm:$0xff] }
0x3d06   : > { %v10235_v50 = vsub.f32 %v6474_v40, %v6481_v49  ;;  %v7061_v40 = vld [vmem:[%s10392_s14 + $0x3] ss:$0 sm:$0xff]  ;;  %v6727_v49 = vld [vmem:[%s10385_s7 + $0x10] sm:$0xff] }
0x3d08   : > { %v6483_v51 = vmul.f32 %v10235_v50, %v10235_v50 }
0x3d0a   : > { %6484 = vadd.xlane.f32.xlu1 %v6483_v51  ;;  %v6728_v51 = vld [vmem:[%s10385_s7 + $0x18] sm:$0xff] }
0x3d0b   : > { %v8841_v52 = vpack.c.bf16 %v6728_v51, %v6727_v49 }
0x3d97   : > { %v6485_v17 = vpop.xlane.xlu1 %6484 }
0x3d98   : > { %v6486_v30 = vmul.f32 0.0078125, %v6485_v17 }
0x3d9a   : > { %v6487_v19 = vadd.f32 1e-05, %v6486_v30 }
0x3d9c   : > { %9029 = vrsqrt.f32 %v6487_v19 }
0x3da6   : > { %v9030_v31 = vpop.eup %9029 }
0x3da7   : > { %v6489_v24 = vmul.f32 %v9030_v31, %v10235_v50  ;;  %v8838_v50 = vpack.c.bf16 %v6726_v47, %v6725_v48 }
0x3da9   : > { %v6496_v33 = vmul.f32 %v7058_v18, %v6489_v24 }
0x3dab   : > { %v6503_v36 = vadd.f32 %v7059_v32, %v6496_v33 }
0x3dad   : > { %8226 = vmatmul.mubr.f32.vlgmr.msra.gmra.mrb[64].mxu1 %v6503_v36 }
0x3dae   : > { %8295 = vmatprep.mubr.msk.f32.mxu1 %vm9230_vm0, %v9231_v1  ;;  %8839 = vmatpush3.bf16.msra.mxu1 %v8838_v50 }
0x3daf   : > { %8840 = vmatprep.subr.bf16.mxu1 %v9229_v0 }
0x3db2   : > { %8842 = vmatpush3.bf16.msra.mxu1 %v8841_v52 }
0x3db3   : > { %8843 = vmatprep.subr.bf16.mxu1 %v9229_v0 }
0x3db6   : > { %8845 = vmatpush3.bf16.msra.mxu1 %v8844_v56 }
0x3db7   : > { %8846 = vmatprep.subr.bf16.mxu1 %v9229_v0 }
0x3dba   : > { %8848 = vmatpush3.bf16.msra.mxu1 %v8847_v20 }
0x3dbb   : > { %8849 = vmatprep.subr.bf16.mxu1 %v9229_v0 }
0x3dbe   : > { %8851 = vmatpush3.bf16.msra.mxu1 %v8850_v2 }
0x3dbf   : > { %8852 = vmatprep.subr.bf16.mxu1 %v9229_v0 }
0x3dc2   : > { %8854 = vmatpush3.bf16.msra.mxu1 %v8853_v5 }
0x3dc3   : > { %8855 = vmatprep.subr.bf16.mxu1 %v9229_v0 }
0x3dc6   : > { %8857 = vmatpush3.bf16.msra.mxu1 %v8856_v7 }
0x3dc7   : > { %8858 = vmatprep.subr.bf16.mxu1 %v9229_v0  ;;  %v7068_v0 = vld [vmem:[%s10460_s24] ss:$0 sm:$0xff] }
0x3dca   : > { %8860 = vmatpush3.bf16.msra.mxu1 %v8859_v12 }
0x3e80   : > { %v6595_v41 = vpop.f32.mrb[64].mxu1 }
0x3e81   : > { %v6596_v42 = vadd.f32 %v7061_v40, %v6595_v41  ;;  %v8227_v43 = vpop.f32.mrb[65].mxu1 }
0x3e83   : > { %v6599_v44 = vmax.f32 %v6596_v42, 0.0 }
0x3e85   : > { %8261 = vmatmul.mubr.f32.vlgmr.msra.gmra.mrb[66].mxu0 %v6599_v44 }
0x3f58   : > { %v6691_v34 = vpop.f32.mrb[66].mxu0 }
0x3f59   : > { %v6692_v46 = vadd.f32 %v7063_v45, %v6691_v34  ;;  %v8262_v1 = vpop.f32.mrb[67].mxu0 }
0x3f5b   : > { %v6695_v8 = vadd.f32 %v6692_v46, %v6503_v36 }
0x3f5d   : > { %6700 = vadd.xlane.f32.xlu1 %v6695_v8 }
0x3fea   : > { %v6701_v22 = vpop.xlane.xlu1 %6700 }
0x3feb   : > { %v6702_v25 = vmul.f32 0.0078125, %v6701_v22 }
0x3fed   : > { %v6703_v58 = vsub.f32 %v6695_v8, %v6702_v25 }
0x3fef   : > { %v6704_v53 = vmul.f32 %v6703_v58, %v6703_v58 }
0x3ff1   : > { %6705 = vadd.xlane.f32.xlu1 %v6704_v53 }
0x407e   : > { %v6706_v13 = vpop.xlane.xlu1 %6705 }
0x407f   : > { %v6707_v14 = vmul.f32 0.0078125, %v6706_v13 }
0x4081   : > { %v6708_v35 = vadd.f32 1e-05, %v6707_v14 }
0x4083   : > { %9031 = vrsqrt.f32 %v6708_v35 }
0x408d   : > { %v9032_v4 = vpop.eup %9031 }
0x408e   : > { %v6710_v9 = vmul.f32 %v9032_v4, %v6703_v58 }
0x4090   : > { %v6717_v21 = vmul.f32 %v7066_v15, %v6710_v9 }
0x4092   : > { %v6724_v23 = vadd.f32 %v7067_v16, %v6717_v21 }
0x4094   : > { %8296 = vmatmul.mubr.f32.vlgmr.msra.gmra.mrb[66].mxu1 %v6724_v23 }
0x4167   : > { %v6814_v26 = vpop.f32.mrb[66].mxu1 }
0x4168   : > { %v6815_v27 = vadd.f32 %v7068_v0, %v6814_v26  ;;  %v8297_v28 = vpop.f32.mrb[67].mxu1 }
0x416a   : > { %6818 = vst.msk [vmem:[%s706_s4] sm:$0xff] %vm721_vm1, %v6815_v27 }
0x416b   : > { %9158 = shalt.err (!%p9155_p0)
}
0x416c   : > { %s9159_s2 = scalar_lea.hbm %s10335_s23, 128  ;;  %s9163_s25 = scalar_lea.hbm %s10461_s11, 256 }
0x416d   : > { %p9160_p6 = scmp.ne.s32.totalorder %s10335_s23, %s9159_s2  ;;  %p9164_p13 = scmp.lt.u32.totalorder %s10335_s23, %s10461_s11 }
0x416e   : > { %p9165_p12 = scmp.lt.u32.totalorder %s9163_s25, %s9159_s2  ;;  %p9167_p2 = scmp.lt.u32.totalorder %s9159_s2, %s10335_s23 }
0x416f   : > { %p9161_p9 = pnand %p9160_p6, %p10462_p3 }
0x4170   : > { %p9166_p1 = por %p9165_p12, %p9164_p13 }
0x4171   : > { %p9162_p10 = pneg %p9161_p9 }
0x4172   : > { %p9168_p4 = por %p9167_p2, %p9166_p1 }
0x4174   : > { %p9169_p7 = pnand %p9168_p4, %p9162_p10 }
0x4176   : > { %9172 = shalt.err (!%p9169_p7)
}
0x4177   : > { %8877 = dma.vmem_to_hbm [thread:$0]  (%p10462_p3), %s10337_s29, 128, %s10335_s23, %s6820_s21  }
0x4178 PF: > { %s10463_s0 = sld [smem:[#allocation18_spill]]  ;;  %s10464_s28 = sld [smem:[#allocation15_spill]] }
0x4179   : > { %s10465_s3 = sld [smem:[#allocation22_spill]] }
0x417e   : > { %p8904_p8 = scmp.ge.s32.totalorder %s10463_s0, 2  ;;  %s6845_s5 = sand.u32 1, %s10464_s28  }
0x417f   : > { %p10466_p11 = scmp.ne.s32.totalorder %s10465_s3, 0  ;;  %s6846_s27 = scalar_lea.sflag [#allocation4], %s6845_s5 }
0x4181   : > { %p8893_p5 = pnand %p8904_p8, %p10466_p11 }
0x4183   : > { %9202 = dma.done.wait (!%p8893_p5), %s6846_s27, 128  }
0x4184   : > { %9204 = vsyncadd (!%p8893_p5), %s6846_s27, 4294967168  ;;  %s10467_s27 = sld [smem:[#allocation19_spill]]  ;;  %s10468_s2 = sld [smem:[#allocation16_spill]] }
0x4185   : > { %s10469_s25 = sld [smem:[#allocation17_spill]]  ;;  %s10470_s26 = sld [smem:[#allocation20_spill]] }
0x418a   : > { %p34_p0 = scmp.ge.s32.totalorder %s10467_s27, 4  }
0x418c   :  { %36 = sbr.rel (!%p34_p0) target bundleno = 16 (0x10), region = 192 }
0x4193   :  { %6851 = vsyncpa [#allocation3], 1 }
0x4194   :  { %6853 = vsyncpa [#allocation3 + $0x1], 1 }
0x4195   :  { %6854 = vsyncpa [#allocation6], 1 }
0x4196   :  { %6855 = vsyncpa [#allocation9], 1 }
0x4197   :  { %6856 = vsyncpa [#allocation4], 1 }
0x4198   :  { %6858 = vsyncpa [#allocation4 + $0x1], 1 }

</bundles_post_ra>
